<compile_context>
chip_gen: v5e
topology: v5e:2x2
jax: 0.10.0
libtpu: 0.0.40
codegen_flags: <defaults>
</compile_context>

<pallas_src>
import functools

import jax
import jax.numpy as jnp
from jax.experimental import pallas as pl
from jax.experimental.pallas import tpu as pltpu

IN_CH = 3
HIDDEN = 128
OUT_CH = 120
EPS = 1e-5
_VMEM_LIMIT = 32 * 1024 * 1024
_TM_TARGET = 2048            # rows per tile; multiple of 16 for bf16 sublane packing


def _round_up(x, m):
    return ((x + m - 1) // m) * m


def _elu(x):
    # F.elu with alpha=1.0 (computed in f32)
    return jnp.where(x > 0, x, jnp.exp(jnp.minimum(x, 0.0)) - 1.0)


def _row_mask(needs_mask, m_valid, tm):
    """(tm, 1) validity mask for padded rows; None when M is a tile multiple."""
    if not needs_mask:
        return None
    rows = jax.lax.broadcasted_iota(jnp.int32, (tm, 1), 0) + pl.program_id(0) * tm
    return (rows < m_valid).astype(jnp.float32)


def _partial_stats(st_ref, t, row_mask):
    """Write per-tile [sum(t); sum(t*t)] into a (1, 2, 128) stats block (f32)."""
    tw = t if row_mask is None else t * row_mask
    s1 = jnp.sum(tw, axis=0, keepdims=True)
    s2 = jnp.sum(t * tw, axis=0, keepdims=True)
    st_ref[...] = jnp.concatenate([s1, s2], axis=0)[None]


def conv1_kernel(stats_on_elu, needs_mask, m_valid, tm,
                 x_ref, w1_ref, b1_ref, h_ref, st_ref):
    # GraphConv1x1(3, 128) as three rank-1 VPU updates (no zero-padded K=128 weights).
    x = x_ref[...]                                        # (tm, 3) f32
    h = (x[:, 0:1] * w1_ref[0:1, :]
         + x[:, 1:2] * w1_ref[1:2, :]
         + x[:, 2:3] * w1_ref[2:3, :]
         + b1_ref[...])
    h_bf = h.astype(jnp.bfloat16)
    h_ref[...] = h_bf                                     # bf16 activation storage
    t = h_bf.astype(jnp.float32)                          # stats on what consumer reads
    if stats_on_elu:
        t = _elu(t)
    _partial_stats(st_ref, t, _row_mask(needs_mask, m_valid, tm))


def half_kernel(elu_in, add_residual, elu_out, stats_elu, needs_mask, m_valid, tm,
                *refs):
    # One half of an MlpResNet2 block with BN pre-folded into (W', b'):
    #   [elu ->] Linear(W', b') [+res] [-> elu]
    if add_residual:
        act_ref, res_ref, w_ref, b_ref, out_ref, st_ref = refs
    else:
        act_ref, w_ref, b_ref, out_ref, st_ref = refs
    a = act_ref[...]                                      # (tm, 128) bf16
    if elu_in:
        a = _elu(a.astype(jnp.float32)).astype(jnp.bfloat16)
    z = jnp.dot(a, w_ref[...], preferred_element_type=jnp.float32) + b_ref[...]
    if add_residual:
        z = z + res_ref[...].astype(jnp.float32)          # residual add in f32
    y = _elu(z) if elu_out else z
    y_bf = y.astype(jnp.bfloat16)
    out_ref[...] = y_bf
    t = y_bf.astype(jnp.float32)
    if stats_elu:
        t = _elu(t)
    _partial_stats(st_ref, t, _row_mask(needs_mask, m_valid, tm))


def final_kernel(h_ref, x_ref, ss_ref, w2_ref, b2_ref, rep_ref, out_ref):
    # bn -> elu -> conv2(128->120) -> + inputs[:, :, -3:].repeat(1, 1, 40)
    # (BN cannot be folded into w2 here because elu sits between them.)
    n = h_ref[...].astype(jnp.float32) * ss_ref[0:1, :] + ss_ref[1:2, :]
    a = _elu(n)
    y = jnp.dot(a.astype(jnp.bfloat16), w2_ref[...],
                preferred_element_type=jnp.float32) + b2_ref[...]   # (tm, 120)
    x = x_ref[...]                                        # (tm, 3) f32
    res = (x[:, 0:1] * rep_ref[0:1, :]
           + x[:, 1:2] * rep_ref[1:2, :]
           + x[:, 2:3] * rep_ref[2:3, :])                 # 40x channel tiling
    out_ref[...] = y + res


def _bn_stats(stats, m):
    """Global mean/var from per-tile (sum, sum-of-squares) rows."""
    s = jnp.sum(stats[:, 0, :], axis=0)
    sq = jnp.sum(stats[:, 1, :], axis=0)
    mean = s / m
    var = jnp.maximum(sq / m - mean * mean, 0.0)          # biased (BatchNorm1d training)
    return mean, var


def _bn_fold_linear(stats, gamma, beta, m, w, b):
    """Fold BN(scale, shift) into the following Linear: W' = scale*W, b' = b + shift@W."""
    mean, var = _bn_stats(stats, m)
    scale = gamma * jax.lax.rsqrt(var + EPS)
    shift = beta - mean * scale
    w_f = (scale[:, None] * w).astype(jnp.bfloat16)       # (128, 128) bf16
    b_f = b + (shift @ w)[None, :]                        # (1, 128) f32
    return w_f, b_f


def _bn_fold_scale_shift(stats, gamma, beta, m):
    mean, var = _bn_stats(stats, m)
    scale = gamma * jax.lax.rsqrt(var + EPS)
    shift = beta - mean * scale
    return jnp.stack([scale, shift], axis=0)              # (2, 128)


def _const_spec(arr):
    ndim = arr.ndim
    return pl.BlockSpec(arr.shape, lambda *_: (0,) * ndim)


def _cost(flops, transc, bytes_):
    return pl.CostEstimate(flops=int(flops), transcendentals=int(transc),
                           bytes_accessed=int(bytes_))


def init_params(key, layer):
    ks = jax.random.split(key, 6)

    def uni(k, shape, fan_in):
        bound = 1.0 / jnp.sqrt(jnp.float32(fan_in))
        return jax.random.uniform(k, shape, jnp.float32, -bound, bound)

    return dict(
        w1=uni(ks[0], (IN_CH, HIDDEN), IN_CH),              # Linear(3,128), (in,out)
        b1=uni(ks[1], (1, HIDDEN), IN_CH),
        rnw=uni(ks[2], (layer, 2, HIDDEN, HIDDEN), HIDDEN),  # 2x Linear(128,128)/block
        rnb=uni(ks[3], (layer, 2, 1, HIDDEN), HIDDEN),
        rng=jnp.ones((layer, 2, HIDDEN), jnp.float32),       # BN gamma
        rnbt=jnp.zeros((layer, 2, HIDDEN), jnp.float32),     # BN beta
        bng=jnp.ones((HIDDEN,), jnp.float32),                # final BN gamma
        bnb=jnp.zeros((HIDDEN,), jnp.float32),               # final BN beta
        w2=uni(ks[4], (HIDDEN, OUT_CH), HIDDEN),             # Linear(128,120)
        b2=uni(ks[5], (1, OUT_CH), HIDDEN),
    )


def mlp_model_forward(L, mask, inputs, params):
    # L, mask are accepted for signature parity; the MLP baseline ignores them.
    del L, mask
    B, N, C = inputs.shape
    assert C == IN_CH
    M = B * N
    x = inputs.reshape(M, C).astype(jnp.float32)

    # Row tiling: fixed target tile; pad M up to a tile multiple (padded rows are
    # masked out of the BN sums and sliced off the final output). No full-M fallback.
    tm = _round_up(M, 16) if M <= _TM_TARGET else _TM_TARGET
    m_pad = _round_up(M, tm)
    nt = m_pad // tm
    needs_mask = m_pad != M
    if needs_mask:
        x = jnp.pad(x, ((0, m_pad - M), (0, 0)))

    layer = params["rnw"].shape[0]
    w1, b1 = params["w1"], params["b1"]
    rnw, rnb = params["rnw"], params["rnb"]                   # f32 (folded per pass)
    rng, rnbt = params["rng"], params["rnbt"]
    w2 = params["w2"].astype(jnp.bfloat16)
    b2 = params["b2"]
    # 3 -> 120 channel-replication masks implementing repeat(1, 1, 40).
    rep = (jnp.arange(OUT_CH)[None, :] % IN_CH
           == jnp.arange(IN_CH)[:, None]).astype(jnp.float32)        # (3, 120)

    act_spec = pl.BlockSpec((tm, HIDDEN), lambda i: (i, 0))
    x_spec = pl.BlockSpec((tm, IN_CH), lambda i: (i, 0))
    st_spec = pl.BlockSpec((1, 2, HIDDEN), lambda i: (i, 0, 0))
    act_shape = jax.ShapeDtypeStruct((m_pad, HIDDEN), jnp.bfloat16)   # bf16 activations
    st_shape = jax.ShapeDtypeStruct((nt, 2, HIDDEN), jnp.float32)

    cparams = pltpu.CompilerParams(
        dimension_semantics=("parallel",),
        vmem_limit_bytes=_VMEM_LIMIT)

    st_bytes = nt * 2 * HIDDEN * 4

    # conv1 (+ fused per-tile stats of the next BatchNorm's input)
    h, st = pl.pallas_call(
        functools.partial(conv1_kernel, layer > 0, needs_mask, M, tm),
        grid=(nt,),
        in_specs=[x_spec, _const_spec(w1), _const_spec(b1)],
        out_specs=(act_spec, st_spec),
        out_shape=(act_shape, st_shape),
        compiler_params=cparams,
        cost_estimate=_cost(10 * M * HIDDEN, M * HIDDEN,
                            m_pad * (IN_CH * 4 + HIDDEN * 2) + st_bytes),
    )(x, w1, b1)

    def half_cost(n_act):
        return _cost(2 * M * HIDDEN * HIDDEN + 8 * M * HIDDEN,
                     2 * M * HIDDEN,
                     n_act * m_pad * HIDDEN * 2 + st_bytes
                     + HIDDEN * HIDDEN * 2 + 3 * HIDDEN * 4)

    # TODO(synk): for tiny M the 2L+1 inter-pass XLA folds dominate launch latency;
    # they could be moved into the consumer pass under pl.when(program_id==0).
    for i in range(layer):
        # first half: elu -> [BN folded into W',b'] -> Linear -> elu
        wf, bf = _bn_fold_linear(st, rng[i, 0], rnbt[i, 0], M, rnw[i, 0], rnb[i, 0])
        a2, st = pl.pallas_call(
            functools.partial(half_kernel, True, False, True, False,
                              needs_mask, M, tm),
            grid=(nt,),
            in_specs=[act_spec, _const_spec(wf), _const_spec(bf)],
            out_specs=(act_spec, st_spec),
            out_shape=(act_shape, st_shape),
            compiler_params=cparams,
            cost_estimate=half_cost(2),
        )(h, wf, bf)

        # second half: [BN folded] -> Linear -> + residual
        wf, bf = _bn_fold_linear(st, rng[i, 1], rnbt[i, 1], M, rnw[i, 1], rnb[i, 1])
        last = i == layer - 1
        h, st = pl.pallas_call(
            functools.partial(half_kernel, False, True, False, not last,
                              needs_mask, M, tm),
            grid=(nt,),
            in_specs=[act_spec, act_spec, _const_spec(wf), _const_spec(bf)],
            out_specs=(act_spec, st_spec),
            out_shape=(act_shape, st_shape),
            compiler_params=cparams,
            cost_estimate=half_cost(3),
        )(a2, h, wf, bf)

    # final BN -> elu -> conv2 -> + tiled residual; writes (m_pad, 120) directly.
    ss = _bn_fold_scale_shift(st, params["bng"], params["bnb"], M)
    out = pl.pallas_call(
        final_kernel,
        grid=(nt,),
        in_specs=[act_spec, x_spec, _const_spec(ss),
                  _const_spec(w2), _const_spec(b2), _const_spec(rep)],
        out_specs=pl.BlockSpec((tm, OUT_CH), lambda i: (i, 0)),
        out_shape=jax.ShapeDtypeStruct((m_pad, OUT_CH), jnp.float32),
        compiler_params=cparams,
        cost_estimate=_cost(2 * M * HIDDEN * OUT_CH + 10 * M * OUT_CH,
                            M * HIDDEN,
                            m_pad * (HIDDEN * 2 + IN_CH * 4 + OUT_CH * 4)
                            + HIDDEN * OUT_CH * 2),
    )(h, x, ss, w2, b2, rep)

    if needs_mask:
        out = out[:M]
    return out.reshape(B, N, OUT_CH)


if __name__ == "__main__":
    key = jax.random.PRNGKey(0)
    k_in, k_par = jax.random.split(key)

    B, N, LAYER = 2, 64, 2
    inputs = jax.random.normal(k_in, (B, N, IN_CH), jnp.float32)
    # Placeholders for the (unused-by-MLP) graph Laplacian and mask.
    L = jnp.zeros((B, N, N), jnp.float32)
    mask = jnp.ones((B, N, 1), jnp.float32)

    params = init_params(k_par, LAYER)

    fwd = jax.jit(mlp_model_forward)
    out = jax.block_until_ready(fwd(L, mask, inputs, params))

    assert out.shape == (B, N, OUT_CH), out.shape
    assert bool(jnp.all(jnp.isfinite(out)))
    print("KERNEL_OK")
</pallas_src>

<mosaic_0001>
module attributes {stable_mosaic.version = 11 : i64} {
  func.func @conv1_kernel(%arg0: i32, %arg1: memref<128x3xf32, #tpu.memory_space<vmem>>, %arg2: memref<3x128xf32, #tpu.memory_space<vmem>>, %arg3: memref<1x128xf32, #tpu.memory_space<vmem>>, %arg4: memref<128x128xbf16, #tpu.memory_space<vmem>>, %arg5: memref<1x2x128xf32, #tpu.memory_space<vmem>>) attributes {dimension_semantics = [#tpu.dimension_semantics<parallel>], iteration_bounds = array<i64: 1>, scalar_prefetch = 0 : i64, scratch_operands = 0 : i64, tpu.core_type = #tpu.core_type<tc>, window_params = [{transform_indices = @transform_0, window_bounds = array<i64: 128, 3>}, {pipeline_mode = #tpu.pipeline_mode<synchronous>, transform_indices = @transform_1, window_bounds = array<i64: 3, 128>}, {pipeline_mode = #tpu.pipeline_mode<synchronous>, transform_indices = @transform_2, window_bounds = array<i64: 1, 128>}, {transform_indices = @transform_3, window_bounds = array<i64: 128, 128>}, {transform_indices = @transform_4, window_bounds = array<i64: 1, 2, 128>}]} {
    %c0 = arith.constant 0 : index
    %c0_0 = arith.constant 0 : index
    %0 = vector.load %arg1[%c0, %c0_0] : memref<128x3xf32, #tpu.memory_space<vmem>>, vector<128x3xf32>
    %1 = vector.extract_strided_slice %0 {offsets = [0, 0], sizes = [128, 1], strides = [1, 1]} : vector<128x3xf32> to vector<128x1xf32>
    %c0_1 = arith.constant 0 : index
    %c0_2 = arith.constant 0 : index
    %2 = vector.load %arg2[%c0_1, %c0_2] : memref<3x128xf32, #tpu.memory_space<vmem>>, vector<1x128xf32>
    %3 = vector.broadcast %1 : vector<128x1xf32> to vector<128x128xf32>
    %4 = vector.broadcast %2 : vector<1x128xf32> to vector<128x128xf32>
    %5 = arith.mulf %3, %4 : vector<128x128xf32>
    %6 = vector.extract_strided_slice %0 {offsets = [0, 1], sizes = [128, 1], strides = [1, 1]} : vector<128x3xf32> to vector<128x1xf32>
    %c1 = arith.constant 1 : index
    %c0_3 = arith.constant 0 : index
    %7 = vector.load %arg2[%c1, %c0_3] : memref<3x128xf32, #tpu.memory_space<vmem>>, vector<1x128xf32>
    %8 = vector.broadcast %6 : vector<128x1xf32> to vector<128x128xf32>
    %9 = vector.broadcast %7 : vector<1x128xf32> to vector<128x128xf32>
    %10 = arith.mulf %8, %9 : vector<128x128xf32>
    %11 = arith.addf %5, %10 : vector<128x128xf32>
    %12 = vector.extract_strided_slice %0 {offsets = [0, 2], sizes = [128, 1], strides = [1, 1]} : vector<128x3xf32> to vector<128x1xf32>
    %c2 = arith.constant 2 : index
    %c0_4 = arith.constant 0 : index
    %13 = vector.load %arg2[%c2, %c0_4] : memref<3x128xf32, #tpu.memory_space<vmem>>, vector<1x128xf32>
    %14 = vector.broadcast %12 : vector<128x1xf32> to vector<128x128xf32>
    %15 = vector.broadcast %13 : vector<1x128xf32> to vector<128x128xf32>
    %16 = arith.mulf %14, %15 : vector<128x128xf32>
    %17 = arith.addf %11, %16 : vector<128x128xf32>
    %c0_5 = arith.constant 0 : index
    %c0_6 = arith.constant 0 : index
    %18 = vector.load %arg3[%c0_5, %c0_6] : memref<1x128xf32, #tpu.memory_space<vmem>>, vector<1x128xf32>
    %19 = vector.broadcast %18 : vector<1x128xf32> to vector<128x128xf32>
    %20 = arith.addf %17, %19 : vector<128x128xf32>
    %21 = arith.truncf %20 : vector<128x128xf32> to vector<128x128xbf16>
    %c0_7 = arith.constant 0 : index
    %c0_8 = arith.constant 0 : index
    %22 = vector.load %arg4[%c0_7, %c0_8] : memref<128x128xbf16, #tpu.memory_space<vmem>>, vector<128x128xbf16>
    tpu.vector_store %arg4[%c0_7, %c0_8], %21 {strides = array<i32>} : memref<128x128xbf16, #tpu.memory_space<vmem>>, vector<128x128xbf16>,
    %23 = arith.extf %21 : vector<128x128xbf16> to vector<128x128xf32>
    %cst = arith.constant 0.000000e+00 : f32
    %24 = vector.broadcast %cst : f32 to vector<128x128xf32>
    %25 = arith.cmpf ogt, %23, %24 : vector<128x128xf32>
    %cst_9 = arith.constant 0.000000e+00 : f32
    %26 = vector.broadcast %cst_9 : f32 to vector<128x128xf32>
    %27 = arith.minimumf %23, %26 : vector<128x128xf32>
    %28 = math.exp %27 : vector<128x128xf32>
    %cst_10 = arith.constant 1.000000e+00 : f32
    %29 = vector.broadcast %cst_10 : f32 to vector<128x128xf32>
    %30 = arith.subf %28, %29 : vector<128x128xf32>
    %31 = arith.select %25, %23, %30 : vector<128x128xi1>, vector<128x128xf32>
    %cst_11 = arith.constant dense<0.000000e+00> : vector<128xf32>
    %32 = vector.multi_reduction <add>, %31, %cst_11 [0] : vector<128x128xf32> to vector<128xf32>
    %33 = vector.shape_cast %32 : vector<128xf32> to vector<1x128xf32>
    %34 = arith.mulf %31, %31 : vector<128x128xf32>
    %cst_12 = arith.constant dense<0.000000e+00> : vector<128xf32>
    %35 = vector.multi_reduction <add>, %34, %cst_12 [0] : vector<128x128xf32> to vector<128xf32>
    %36 = vector.shape_cast %35 : vector<128xf32> to vector<1x128xf32>
    %37 = tpu.concatenate %33, %36 in 0 : vector<1x128xf32>, vector<1x128xf32> -> vector<2x128xf32>
    %38 = vector.shape_cast %37 : vector<2x128xf32> to vector<1x2x128xf32>
    %c0_13 = arith.constant 0 : index
    %c0_14 = arith.constant 0 : index
    %c0_15 = arith.constant 0 : index
    %39 = vector.load %arg5[%c0_13, %c0_14, %c0_15] : memref<1x2x128xf32, #tpu.memory_space<vmem>>, vector<1x2x128xf32>
    tpu.vector_store %arg5[%c0_13, %c0_14, %c0_15], %38 {strides = array<i32>} : memref<1x2x128xf32, #tpu.memory_space<vmem>>, vector<1x2x128xf32>,
    return
  }
  func.func @transform_0(%arg0: i32) -> (i32, i32) {
    %c0_i32 = arith.constant 0 : i32
    %c0_i32_0 = arith.constant 0 : i32
    return %arg0, %c0_i32 : i32, i32
  }
  func.func @transform_1(%arg0: i32) -> (i32, i32) {
    %c0_i32 = arith.constant 0 : i32
    %c0_i32_0 = arith.constant 0 : i32
    %c0_i32_1 = arith.constant 0 : i32
    return %c0_i32, %c0_i32_0 : i32, i32
  }
  func.func @transform_2(%arg0: i32) -> (i32, i32) {
    %c0_i32 = arith.constant 0 : i32
    %c0_i32_0 = arith.constant 0 : i32
    %c0_i32_1 = arith.constant 0 : i32
    return %c0_i32, %c0_i32_0 : i32, i32
  }
  func.func @transform_3(%arg0: i32) -> (i32, i32) {
    %c0_i32 = arith.constant 0 : i32
    %c0_i32_0 = arith.constant 0 : i32
    return %arg0, %c0_i32 : i32, i32
  }
  func.func @transform_4(%arg0: i32) -> (i32, i32, i32) {
    %c0_i32 = arith.constant 0 : i32
    %c0_i32_0 = arith.constant 0 : i32
    %c0_i32_1 = arith.constant 0 : i32
    return %arg0, %c0_i32, %c0_i32_0 : i32, i32, i32
  }
}

module attributes {stable_mosaic.version = 11 : i64} {
  func.func @half_kernel(%arg0: i32, %arg1: memref<128x128xbf16, #tpu.memory_space<vmem>>, %arg2: memref<128x128xbf16, #tpu.memory_space<vmem>>, %arg3: memref<1x128xf32, #tpu.memory_space<vmem>>, %arg4: memref<128x128xbf16, #tpu.memory_space<vmem>>, %arg5: memref<1x2x128xf32, #tpu.memory_space<vmem>>) attributes {dimension_semantics = [#tpu.dimension_semantics<parallel>], iteration_bounds = array<i64: 1>, scalar_prefetch = 0 : i64, scratch_operands = 0 : i64, tpu.core_type = #tpu.core_type<tc>, window_params = [{transform_indices = @transform_0, window_bounds = array<i64: 128, 128>}, {pipeline_mode = #tpu.pipeline_mode<synchronous>, transform_indices = @transform_1, window_bounds = array<i64: 128, 128>}, {pipeline_mode = #tpu.pipeline_mode<synchronous>, transform_indices = @transform_2, window_bounds = array<i64: 1, 128>}, {transform_indices = @transform_3, window_bounds = array<i64: 128, 128>}, {transform_indices = @transform_4, window_bounds = array<i64: 1, 2, 128>}]} {
    %c0 = arith.constant 0 : index
    %c0_0 = arith.constant 0 : index
    %0 = vector.load %arg1[%c0, %c0_0] : memref<128x128xbf16, #tpu.memory_space<vmem>>, vector<128x128xbf16>
    %1 = arith.extf %0 : vector<128x128xbf16> to vector<128x128xf32>
    %cst = arith.constant 0.000000e+00 : f32
    %2 = vector.broadcast %cst : f32 to vector<128x128xf32>
    %3 = arith.cmpf ogt, %1, %2 : vector<128x128xf32>
    %cst_1 = arith.constant 0.000000e+00 : f32
    %4 = vector.broadcast %cst_1 : f32 to vector<128x128xf32>
    %5 = arith.minimumf %1, %4 : vector<128x128xf32>
    %6 = math.exp %5 : vector<128x128xf32>
    %cst_2 = arith.constant 1.000000e+00 : f32
    %7 = vector.broadcast %cst_2 : f32 to vector<128x128xf32>
    %8 = arith.subf %6, %7 : vector<128x128xf32>
    %9 = arith.select %3, %1, %8 : vector<128x128xi1>, vector<128x128xf32>
    %10 = arith.truncf %9 : vector<128x128xf32> to vector<128x128xbf16>
    %c0_3 = arith.constant 0 : index
    %c0_4 = arith.constant 0 : index
    %11 = vector.load %arg2[%c0_3, %c0_4] : memref<128x128xbf16, #tpu.memory_space<vmem>>, vector<128x128xbf16>
    %cst_5 = arith.constant dense<0.000000e+00> : vector<128x128xf32>
    %12 = tpu.matmul %10, %11, %cst_5 {dimension_numbers = #tpu.dot_dimension_numbers<[1], [0], [0], [1], [0, 0, 1, 1], [], []>} : vector<128x128xbf16>, vector<128x128xbf16>, vector<128x128xf32> -> vector<128x128xf32>
    %c0_6 = arith.constant 0 : index
    %c0_7 = arith.constant 0 : index
    %13 = vector.load %arg3[%c0_6, %c0_7] : memref<1x128xf32, #tpu.memory_space<vmem>>, vector<1x128xf32>
    %14 = vector.broadcast %13 : vector<1x128xf32> to vector<128x128xf32>
    %15 = arith.addf %12, %14 : vector<128x128xf32>
    %cst_8 = arith.constant 0.000000e+00 : f32
    %16 = vector.broadcast %cst_8 : f32 to vector<128x128xf32>
    %17 = arith.cmpf ogt, %15, %16 : vector<128x128xf32>
    %cst_9 = arith.constant 0.000000e+00 : f32
    %18 = vector.broadcast %cst_9 : f32 to vector<128x128xf32>
    %19 = arith.minimumf %15, %18 : vector<128x128xf32>
    %20 = math.exp %19 : vector<128x128xf32>
    %cst_10 = arith.constant 1.000000e+00 : f32
    %21 = vector.broadcast %cst_10 : f32 to vector<128x128xf32>
    %22 = arith.subf %20, %21 : vector<128x128xf32>
    %23 = arith.select %17, %15, %22 : vector<128x128xi1>, vector<128x128xf32>
    %24 = arith.truncf %23 : vector<128x128xf32> to vector<128x128xbf16>
    %c0_11 = arith.constant 0 : index
    %c0_12 = arith.constant 0 : index
    %25 = vector.load %arg4[%c0_11, %c0_12] : memref<128x128xbf16, #tpu.memory_space<vmem>>, vector<128x128xbf16>
    tpu.vector_store %arg4[%c0_11, %c0_12], %24 {strides = array<i32>} : memref<128x128xbf16, #tpu.memory_space<vmem>>, vector<128x128xbf16>,
    %26 = arith.extf %24 : vector<128x128xbf16> to vector<128x128xf32>
    %cst_13 = arith.constant dense<0.000000e+00> : vector<128xf32>
    %27 = vector.multi_reduction <add>, %26, %cst_13 [0] : vector<128x128xf32> to vector<128xf32>
    %28 = vector.shape_cast %27 : vector<128xf32> to vector<1x128xf32>
    %29 = arith.mulf %26, %26 : vector<128x128xf32>
    %cst_14 = arith.constant dense<0.000000e+00> : vector<128xf32>
    %30 = vector.multi_reduction <add>, %29, %cst_14 [0] : vector<128x128xf32> to vector<128xf32>
    %31 = vector.shape_cast %30 : vector<128xf32> to vector<1x128xf32>
    %32 = tpu.concatenate %28, %31 in 0 : vector<1x128xf32>, vector<1x128xf32> -> vector<2x128xf32>
    %33 = vector.shape_cast %32 : vector<2x128xf32> to vector<1x2x128xf32>
    %c0_15 = arith.constant 0 : index
    %c0_16 = arith.constant 0 : index
    %c0_17 = arith.constant 0 : index
    %34 = vector.load %arg5[%c0_15, %c0_16, %c0_17] : memref<1x2x128xf32, #tpu.memory_space<vmem>>, vector<1x2x128xf32>
    tpu.vector_store %arg5[%c0_15, %c0_16, %c0_17], %33 {strides = array<i32>} : memref<1x2x128xf32, #tpu.memory_space<vmem>>, vector<1x2x128xf32>,
    return
  }
  func.func @transform_0(%arg0: i32) -> (i32, i32) {
    %c0_i32 = arith.constant 0 : i32
    %c0_i32_0 = arith.constant 0 : i32
    return %arg0, %c0_i32 : i32, i32
  }
  func.func @transform_1(%arg0: i32) -> (i32, i32) {
    %c0_i32 = arith.constant 0 : i32
    %c0_i32_0 = arith.constant 0 : i32
    %c0_i32_1 = arith.constant 0 : i32
    return %c0_i32, %c0_i32_0 : i32, i32
  }
  func.func @transform_2(%arg0: i32) -> (i32, i32) {
    %c0_i32 = arith.constant 0 : i32
    %c0_i32_0 = arith.constant 0 : i32
    %c0_i32_1 = arith.constant 0 : i32
    return %c0_i32, %c0_i32_0 : i32, i32
  }
  func.func @transform_3(%arg0: i32) -> (i32, i32) {
    %c0_i32 = arith.constant 0 : i32
    %c0_i32_0 = arith.constant 0 : i32
    return %arg0, %c0_i32 : i32, i32
  }
  func.func @transform_4(%arg0: i32) -> (i32, i32, i32) {
    %c0_i32 = arith.constant 0 : i32
    %c0_i32_0 = arith.constant 0 : i32
    %c0_i32_1 = arith.constant 0 : i32
    return %arg0, %c0_i32, %c0_i32_0 : i32, i32, i32
  }
}

module attributes {stable_mosaic.version = 11 : i64} {
  func.func @half_kernel(%arg0: i32, %arg1: memref<128x128xbf16, #tpu.memory_space<vmem>>, %arg2: memref<128x128xbf16, #tpu.memory_space<vmem>>, %arg3: memref<128x128xbf16, #tpu.memory_space<vmem>>, %arg4: memref<1x128xf32, #tpu.memory_space<vmem>>, %arg5: memref<128x128xbf16, #tpu.memory_space<vmem>>, %arg6: memref<1x2x128xf32, #tpu.memory_space<vmem>>) attributes {dimension_semantics = [#tpu.dimension_semantics<parallel>], iteration_bounds = array<i64: 1>, scalar_prefetch = 0 : i64, scratch_operands = 0 : i64, tpu.core_type = #tpu.core_type<tc>, window_params = [{transform_indices = @transform_0, window_bounds = array<i64: 128, 128>}, {transform_indices = @transform_1, window_bounds = array<i64: 128, 128>}, {pipeline_mode = #tpu.pipeline_mode<synchronous>, transform_indices = @transform_2, window_bounds = array<i64: 128, 128>}, {pipeline_mode = #tpu.pipeline_mode<synchronous>, transform_indices = @transform_3, window_bounds = array<i64: 1, 128>}, {transform_indices = @transform_4, window_bounds = array<i64: 128, 128>}, {transform_indices = @transform_5, window_bounds = array<i64: 1, 2, 128>}]} {
    %c0 = arith.constant 0 : index
    %c0_0 = arith.constant 0 : index
    %0 = vector.load %arg1[%c0, %c0_0] : memref<128x128xbf16, #tpu.memory_space<vmem>>, vector<128x128xbf16>
    %c0_1 = arith.constant 0 : index
    %c0_2 = arith.constant 0 : index
    %1 = vector.load %arg3[%c0_1, %c0_2] : memref<128x128xbf16, #tpu.memory_space<vmem>>, vector<128x128xbf16>
    %cst = arith.constant dense<0.000000e+00> : vector<128x128xf32>
    %2 = tpu.matmul %0, %1, %cst {dimension_numbers = #tpu.dot_dimension_numbers<[1], [0], [0], [1], [0, 0, 1, 1], [], []>} : vector<128x128xbf16>, vector<128x128xbf16>, vector<128x128xf32> -> vector<128x128xf32>
    %c0_3 = arith.constant 0 : index
    %c0_4 = arith.constant 0 : index
    %3 = vector.load %arg4[%c0_3, %c0_4] : memref<1x128xf32, #tpu.memory_space<vmem>>, vector<1x128xf32>
    %4 = vector.broadcast %3 : vector<1x128xf32> to vector<128x128xf32>
    %5 = arith.addf %2, %4 : vector<128x128xf32>
    %c0_5 = arith.constant 0 : index
    %c0_6 = arith.constant 0 : index
    %6 = vector.load %arg2[%c0_5, %c0_6] : memref<128x128xbf16, #tpu.memory_space<vmem>>, vector<128x128xbf16>
    %7 = arith.extf %6 : vector<128x128xbf16> to vector<128x128xf32>
    %8 = arith.addf %5, %7 : vector<128x128xf32>
    %9 = arith.truncf %8 : vector<128x128xf32> to vector<128x128xbf16>
    %c0_7 = arith.constant 0 : index
    %c0_8 = arith.constant 0 : index
    %10 = vector.load %arg5[%c0_7, %c0_8] : memref<128x128xbf16, #tpu.memory_space<vmem>>, vector<128x128xbf16>
    tpu.vector_store %arg5[%c0_7, %c0_8], %9 {strides = array<i32>} : memref<128x128xbf16, #tpu.memory_space<vmem>>, vector<128x128xbf16>,
    %11 = arith.extf %9 : vector<128x128xbf16> to vector<128x128xf32>
    %cst_9 = arith.constant 0.000000e+00 : f32
    %12 = vector.broadcast %cst_9 : f32 to vector<128x128xf32>
    %13 = arith.cmpf ogt, %11, %12 : vector<128x128xf32>
    %cst_10 = arith.constant 0.000000e+00 : f32
    %14 = vector.broadcast %cst_10 : f32 to vector<128x128xf32>
    %15 = arith.minimumf %11, %14 : vector<128x128xf32>
    %16 = math.exp %15 : vector<128x128xf32>
    %cst_11 = arith.constant 1.000000e+00 : f32
    %17 = vector.broadcast %cst_11 : f32 to vector<128x128xf32>
    %18 = arith.subf %16, %17 : vector<128x128xf32>
    %19 = arith.select %13, %11, %18 : vector<128x128xi1>, vector<128x128xf32>
    %cst_12 = arith.constant dense<0.000000e+00> : vector<128xf32>
    %20 = vector.multi_reduction <add>, %19, %cst_12 [0] : vector<128x128xf32> to vector<128xf32>
    %21 = vector.shape_cast %20 : vector<128xf32> to vector<1x128xf32>
    %22 = arith.mulf %19, %19 : vector<128x128xf32>
    %cst_13 = arith.constant dense<0.000000e+00> : vector<128xf32>
    %23 = vector.multi_reduction <add>, %22, %cst_13 [0] : vector<128x128xf32> to vector<128xf32>
    %24 = vector.shape_cast %23 : vector<128xf32> to vector<1x128xf32>
    %25 = tpu.concatenate %21, %24 in 0 : vector<1x128xf32>, vector<1x128xf32> -> vector<2x128xf32>
    %26 = vector.shape_cast %25 : vector<2x128xf32> to vector<1x2x128xf32>
    %c0_14 = arith.constant 0 : index
    %c0_15 = arith.constant 0 : index
    %c0_16 = arith.constant 0 : index
    %27 = vector.load %arg6[%c0_14, %c0_15, %c0_16] : memref<1x2x128xf32, #tpu.memory_space<vmem>>, vector<1x2x128xf32>
    tpu.vector_store %arg6[%c0_14, %c0_15, %c0_16], %26 {strides = array<i32>} : memref<1x2x128xf32, #tpu.memory_space<vmem>>, vector<1x2x128xf32>,
    return
  }
  func.func @transform_0(%arg0: i32) -> (i32, i32) {
    %c0_i32 = arith.constant 0 : i32
    %c0_i32_0 = arith.constant 0 : i32
    return %arg0, %c0_i32 : i32, i32
  }
  func.func @transform_1(%arg0: i32) -> (i32, i32) {
    %c0_i32 = arith.constant 0 : i32
    %c0_i32_0 = arith.constant 0 : i32
    return %arg0, %c0_i32 : i32, i32
  }
  func.func @transform_2(%arg0: i32) -> (i32, i32) {
    %c0_i32 = arith.constant 0 : i32
    %c0_i32_0 = arith.constant 0 : i32
    %c0_i32_1 = arith.constant 0 : i32
    return %c0_i32, %c0_i32_0 : i32, i32
  }
  func.func @transform_3(%arg0: i32) -> (i32, i32) {
    %c0_i32 = arith.constant 0 : i32
    %c0_i32_0 = arith.constant 0 : i32
    %c0_i32_1 = arith.constant 0 : i32
    return %c0_i32, %c0_i32_0 : i32, i32
  }
  func.func @transform_4(%arg0: i32) -> (i32, i32) {
    %c0_i32 = arith.constant 0 : i32
    %c0_i32_0 = arith.constant 0 : i32
    return %arg0, %c0_i32 : i32, i32
  }
  func.func @transform_5(%arg0: i32) -> (i32, i32, i32) {
    %c0_i32 = arith.constant 0 : i32
    %c0_i32_0 = arith.constant 0 : i32
    %c0_i32_1 = arith.constant 0 : i32
    return %arg0, %c0_i32, %c0_i32_0 : i32, i32, i32
  }
}

module attributes {stable_mosaic.version = 11 : i64} {
  func.func @half_kernel(%arg0: i32, %arg1: memref<128x128xbf16, #tpu.memory_space<vmem>>, %arg2: memref<128x128xbf16, #tpu.memory_space<vmem>>, %arg3: memref<128x128xbf16, #tpu.memory_space<vmem>>, %arg4: memref<1x128xf32, #tpu.memory_space<vmem>>, %arg5: memref<128x128xbf16, #tpu.memory_space<vmem>>, %arg6: memref<1x2x128xf32, #tpu.memory_space<vmem>>) attributes {dimension_semantics = [#tpu.dimension_semantics<parallel>], iteration_bounds = array<i64: 1>, scalar_prefetch = 0 : i64, scratch_operands = 0 : i64, tpu.core_type = #tpu.core_type<tc>, window_params = [{transform_indices = @transform_0, window_bounds = array<i64: 128, 128>}, {transform_indices = @transform_1, window_bounds = array<i64: 128, 128>}, {pipeline_mode = #tpu.pipeline_mode<synchronous>, transform_indices = @transform_2, window_bounds = array<i64: 128, 128>}, {pipeline_mode = #tpu.pipeline_mode<synchronous>, transform_indices = @transform_3, window_bounds = array<i64: 1, 128>}, {transform_indices = @transform_4, window_bounds = array<i64: 128, 128>}, {transform_indices = @transform_5, window_bounds = array<i64: 1, 2, 128>}]} {
    %c0 = arith.constant 0 : index
    %c0_0 = arith.constant 0 : index
    %0 = vector.load %arg1[%c0, %c0_0] : memref<128x128xbf16, #tpu.memory_space<vmem>>, vector<128x128xbf16>
    %c0_1 = arith.constant 0 : index
    %c0_2 = arith.constant 0 : index
    %1 = vector.load %arg3[%c0_1, %c0_2] : memref<128x128xbf16, #tpu.memory_space<vmem>>, vector<128x128xbf16>
    %cst = arith.constant dense<0.000000e+00> : vector<128x128xf32>
    %2 = tpu.matmul %0, %1, %cst {dimension_numbers = #tpu.dot_dimension_numbers<[1], [0], [0], [1], [0, 0, 1, 1], [], []>} : vector<128x128xbf16>, vector<128x128xbf16>, vector<128x128xf32> -> vector<128x128xf32>
    %c0_3 = arith.constant 0 : index
    %c0_4 = arith.constant 0 : index
    %3 = vector.load %arg4[%c0_3, %c0_4] : memref<1x128xf32, #tpu.memory_space<vmem>>, vector<1x128xf32>
    %4 = vector.broadcast %3 : vector<1x128xf32> to vector<128x128xf32>
    %5 = arith.addf %2, %4 : vector<128x128xf32>
    %c0_5 = arith.constant 0 : index
    %c0_6 = arith.constant 0 : index
    %6 = vector.load %arg2[%c0_5, %c0_6] : memref<128x128xbf16, #tpu.memory_space<vmem>>, vector<128x128xbf16>
    %7 = arith.extf %6 : vector<128x128xbf16> to vector<128x128xf32>
    %8 = arith.addf %5, %7 : vector<128x128xf32>
    %9 = arith.truncf %8 : vector<128x128xf32> to vector<128x128xbf16>
    %c0_7 = arith.constant 0 : index
    %c0_8 = arith.constant 0 : index
    %10 = vector.load %arg5[%c0_7, %c0_8] : memref<128x128xbf16, #tpu.memory_space<vmem>>, vector<128x128xbf16>
    tpu.vector_store %arg5[%c0_7, %c0_8], %9 {strides = array<i32>} : memref<128x128xbf16, #tpu.memory_space<vmem>>, vector<128x128xbf16>,
    %11 = arith.extf %9 : vector<128x128xbf16> to vector<128x128xf32>
    %cst_9 = arith.constant dense<0.000000e+00> : vector<128xf32>
    %12 = vector.multi_reduction <add>, %11, %cst_9 [0] : vector<128x128xf32> to vector<128xf32>
    %13 = vector.shape_cast %12 : vector<128xf32> to vector<1x128xf32>
    %14 = arith.mulf %11, %11 : vector<128x128xf32>
    %cst_10 = arith.constant dense<0.000000e+00> : vector<128xf32>
    %15 = vector.multi_reduction <add>, %14, %cst_10 [0] : vector<128x128xf32> to vector<128xf32>
    %16 = vector.shape_cast %15 : vector<128xf32> to vector<1x128xf32>
    %17 = tpu.concatenate %13, %16 in 0 : vector<1x128xf32>, vector<1x128xf32> -> vector<2x128xf32>
    %18 = vector.shape_cast %17 : vector<2x128xf32> to vector<1x2x128xf32>
    %c0_11 = arith.constant 0 : index
    %c0_12 = arith.constant 0 : index
    %c0_13 = arith.constant 0 : index
    %19 = vector.load %arg6[%c0_11, %c0_12, %c0_13] : memref<1x2x128xf32, #tpu.memory_space<vmem>>, vector<1x2x128xf32>
    tpu.vector_store %arg6[%c0_11, %c0_12, %c0_13], %18 {strides = array<i32>} : memref<1x2x128xf32, #tpu.memory_space<vmem>>, vector<1x2x128xf32>,
    return
  }
  func.func @transform_0(%arg0: i32) -> (i32, i32) {
    %c0_i32 = arith.constant 0 : i32
    %c0_i32_0 = arith.constant 0 : i32
    return %arg0, %c0_i32 : i32, i32
  }
  func.func @transform_1(%arg0: i32) -> (i32, i32) {
    %c0_i32 = arith.constant 0 : i32
    %c0_i32_0 = arith.constant 0 : i32
    return %arg0, %c0_i32 : i32, i32
  }
  func.func @transform_2(%arg0: i32) -> (i32, i32) {
    %c0_i32 = arith.constant 0 : i32
    %c0_i32_0 = arith.constant 0 : i32
    %c0_i32_1 = arith.constant 0 : i32
    return %c0_i32, %c0_i32_0 : i32, i32
  }
  func.func @transform_3(%arg0: i32) -> (i32, i32) {
    %c0_i32 = arith.constant 0 : i32
    %c0_i32_0 = arith.constant 0 : i32
    %c0_i32_1 = arith.constant 0 : i32
    return %c0_i32, %c0_i32_0 : i32, i32
  }
  func.func @transform_4(%arg0: i32) -> (i32, i32) {
    %c0_i32 = arith.constant 0 : i32
    %c0_i32_0 = arith.constant 0 : i32
    return %arg0, %c0_i32 : i32, i32
  }
  func.func @transform_5(%arg0: i32) -> (i32, i32, i32) {
    %c0_i32 = arith.constant 0 : i32
    %c0_i32_0 = arith.constant 0 : i32
    %c0_i32_1 = arith.constant 0 : i32
    return %arg0, %c0_i32, %c0_i32_0 : i32, i32, i32
  }
}

module attributes {stable_mosaic.version = 11 : i64} {
  func.func @final_kernel(%arg0: i32, %arg1: memref<128x128xbf16, #tpu.memory_space<vmem>>, %arg2: memref<128x3xf32, #tpu.memory_space<vmem>>, %arg3: memref<2x128xf32, #tpu.memory_space<vmem>>, %arg4: memref<128x120xbf16, #tpu.memory_space<vmem>>, %arg5: memref<1x120xf32, #tpu.memory_space<vmem>>, %arg6: memref<3x120xf32, #tpu.memory_space<vmem>>, %arg7: memref<128x120xf32, #tpu.memory_space<vmem>>) attributes {dimension_semantics = [#tpu.dimension_semantics<parallel>], iteration_bounds = array<i64: 1>, scalar_prefetch = 0 : i64, scratch_operands = 0 : i64, tpu.core_type = #tpu.core_type<tc>, window_params = [{transform_indices = @transform_0, window_bounds = array<i64: 128, 128>}, {transform_indices = @transform_1, window_bounds = array<i64: 128, 3>}, {pipeline_mode = #tpu.pipeline_mode<synchronous>, transform_indices = @transform_2, window_bounds = array<i64: 2, 128>}, {pipeline_mode = #tpu.pipeline_mode<synchronous>, transform_indices = @transform_3, window_bounds = array<i64: 128, 120>}, {pipeline_mode = #tpu.pipeline_mode<synchronous>, transform_indices = @transform_4, window_bounds = array<i64: 1, 120>}, {pipeline_mode = #tpu.pipeline_mode<synchronous>, transform_indices = @transform_5, window_bounds = array<i64: 3, 120>}, {transform_indices = @transform_6, window_bounds = array<i64: 128, 120>}]} {
    %c0 = arith.constant 0 : index
    %c0_0 = arith.constant 0 : index
    %0 = vector.load %arg1[%c0, %c0_0] : memref<128x128xbf16, #tpu.memory_space<vmem>>, vector<128x128xbf16>
    %1 = arith.extf %0 : vector<128x128xbf16> to vector<128x128xf32>
    %c0_1 = arith.constant 0 : index
    %c0_2 = arith.constant 0 : index
    %2 = vector.load %arg3[%c0_1, %c0_2] : memref<2x128xf32, #tpu.memory_space<vmem>>, vector<1x128xf32>
    %3 = vector.broadcast %2 : vector<1x128xf32> to vector<128x128xf32>
    %4 = arith.mulf %1, %3 : vector<128x128xf32>
    %c1 = arith.constant 1 : index
    %c0_3 = arith.constant 0 : index
    %5 = vector.load %arg3[%c1, %c0_3] : memref<2x128xf32, #tpu.memory_space<vmem>>, vector<1x128xf32>
    %6 = vector.broadcast %5 : vector<1x128xf32> to vector<128x128xf32>
    %7 = arith.addf %4, %6 : vector<128x128xf32>
    %cst = arith.constant 0.000000e+00 : f32
    %8 = vector.broadcast %cst : f32 to vector<128x128xf32>
    %9 = arith.cmpf ogt, %7, %8 : vector<128x128xf32>
    %cst_4 = arith.constant 0.000000e+00 : f32
    %10 = vector.broadcast %cst_4 : f32 to vector<128x128xf32>
    %11 = arith.minimumf %7, %10 : vector<128x128xf32>
    %12 = math.exp %11 : vector<128x128xf32>
    %cst_5 = arith.constant 1.000000e+00 : f32
    %13 = vector.broadcast %cst_5 : f32 to vector<128x128xf32>
    %14 = arith.subf %12, %13 : vector<128x128xf32>
    %15 = arith.select %9, %7, %14 : vector<128x128xi1>, vector<128x128xf32>
    %16 = arith.truncf %15 : vector<128x128xf32> to vector<128x128xbf16>
    %c0_6 = arith.constant 0 : index
    %c0_7 = arith.constant 0 : index
    %17 = vector.load %arg4[%c0_6, %c0_7] : memref<128x120xbf16, #tpu.memory_space<vmem>>, vector<128x120xbf16>
    %cst_8 = arith.constant dense<0.000000e+00> : vector<128x120xf32>
    %18 = tpu.matmul %16, %17, %cst_8 {dimension_numbers = #tpu.dot_dimension_numbers<[1], [0], [0], [1], [0, 0, 1, 1], [], []>} : vector<128x128xbf16>, vector<128x120xbf16>, vector<128x120xf32> -> vector<128x120xf32>
    %c0_9 = arith.constant 0 : index
    %c0_10 = arith.constant 0 : index
    %19 = vector.load %arg5[%c0_9, %c0_10] : memref<1x120xf32, #tpu.memory_space<vmem>>, vector<1x120xf32>
    %20 = vector.broadcast %19 : vector<1x120xf32> to vector<128x120xf32>
    %21 = arith.addf %18, %20 : vector<128x120xf32>
    %c0_11 = arith.constant 0 : index
    %c0_12 = arith.constant 0 : index
    %22 = vector.load %arg2[%c0_11, %c0_12] : memref<128x3xf32, #tpu.memory_space<vmem>>, vector<128x3xf32>
    %23 = vector.extract_strided_slice %22 {offsets = [0, 0], sizes = [128, 1], strides = [1, 1]} : vector<128x3xf32> to vector<128x1xf32>
    %c0_13 = arith.constant 0 : index
    %c0_14 = arith.constant 0 : index
    %24 = vector.load %arg6[%c0_13, %c0_14] : memref<3x120xf32, #tpu.memory_space<vmem>>, vector<1x120xf32>
    %25 = vector.broadcast %23 : vector<128x1xf32> to vector<128x120xf32>
    %26 = vector.broadcast %24 : vector<1x120xf32> to vector<128x120xf32>
    %27 = arith.mulf %25, %26 : vector<128x120xf32>
    %28 = vector.extract_strided_slice %22 {offsets = [0, 1], sizes = [128, 1], strides = [1, 1]} : vector<128x3xf32> to vector<128x1xf32>
    %c1_15 = arith.constant 1 : index
    %c0_16 = arith.constant 0 : index
    %29 = vector.load %arg6[%c1_15, %c0_16] : memref<3x120xf32, #tpu.memory_space<vmem>>, vector<1x120xf32>
    %30 = vector.broadcast %28 : vector<128x1xf32> to vector<128x120xf32>
    %31 = vector.broadcast %29 : vector<1x120xf32> to vector<128x120xf32>
    %32 = arith.mulf %30, %31 : vector<128x120xf32>
    %33 = arith.addf %27, %32 : vector<128x120xf32>
    %34 = vector.extract_strided_slice %22 {offsets = [0, 2], sizes = [128, 1], strides = [1, 1]} : vector<128x3xf32> to vector<128x1xf32>
    %c2 = arith.constant 2 : index
    %c0_17 = arith.constant 0 : index
    %35 = vector.load %arg6[%c2, %c0_17] : memref<3x120xf32, #tpu.memory_space<vmem>>, vector<1x120xf32>
    %36 = vector.broadcast %34 : vector<128x1xf32> to vector<128x120xf32>
    %37 = vector.broadcast %35 : vector<1x120xf32> to vector<128x120xf32>
    %38 = arith.mulf %36, %37 : vector<128x120xf32>
    %39 = arith.addf %33, %38 : vector<128x120xf32>
    %40 = arith.addf %21, %39 : vector<128x120xf32>
    %c0_18 = arith.constant 0 : index
    %c0_19 = arith.constant 0 : index
    %41 = vector.load %arg7[%c0_18, %c0_19] : memref<128x120xf32, #tpu.memory_space<vmem>>, vector<128x120xf32>
    tpu.vector_store %arg7[%c0_18, %c0_19], %40 {strides = array<i32>} : memref<128x120xf32, #tpu.memory_space<vmem>>, vector<128x120xf32>,
    return
  }
  func.func @transform_0(%arg0: i32) -> (i32, i32) {
    %c0_i32 = arith.constant 0 : i32
    %c0_i32_0 = arith.constant 0 : i32
    return %arg0, %c0_i32 : i32, i32
  }
  func.func @transform_1(%arg0: i32) -> (i32, i32) {
    %c0_i32 = arith.constant 0 : i32
    %c0_i32_0 = arith.constant 0 : i32
    return %arg0, %c0_i32 : i32, i32
  }
  func.func @transform_2(%arg0: i32) -> (i32, i32) {
    %c0_i32 = arith.constant 0 : i32
    %c0_i32_0 = arith.constant 0 : i32
    %c0_i32_1 = arith.constant 0 : i32
    return %c0_i32, %c0_i32_0 : i32, i32
  }
  func.func @transform_3(%arg0: i32) -> (i32, i32) {
    %c0_i32 = arith.constant 0 : i32
    %c0_i32_0 = arith.constant 0 : i32
    %c0_i32_1 = arith.constant 0 : i32
    return %c0_i32, %c0_i32_0 : i32, i32
  }
  func.func @transform_4(%arg0: i32) -> (i32, i32) {
    %c0_i32 = arith.constant 0 : i32
    %c0_i32_0 = arith.constant 0 : i32
    %c0_i32_1 = arith.constant 0 : i32
    return %c0_i32, %c0_i32_0 : i32, i32
  }
  func.func @transform_5(%arg0: i32) -> (i32, i32) {
    %c0_i32 = arith.constant 0 : i32
    %c0_i32_0 = arith.constant 0 : i32
    %c0_i32_1 = arith.constant 0 : i32
    return %c0_i32, %c0_i32_0 : i32, i32
  }
  func.func @transform_6(%arg0: i32) -> (i32, i32) {
    %c0_i32 = arith.constant 0 : i32
    %c0_i32_0 = arith.constant 0 : i32
    return %arg0, %c0_i32 : i32, i32
  }
}

</mosaic_0001>

<bundles_post_ra>
// kernel: mlp_model_forward.7
= control target key start
LH: loop header
LB: loop body
LE: loop exit
PB: predicated region body
PF: predicated region fallthrough
CT: control target
= control target key end

     0   :  { %s1031_s1 = inlined_call_operand.vmem [shape: bf16[128,128], index: 1, kind: input, shape index: {}]   ;;  %s1032_s0 = inlined_call_operand.vmem [shape: bf16[128,128], index: 0, kind: input, shape index: {}]   ;;  %s1033_s2 = inlined_call_operand.vmem [shape: f32[1,128], index: 2, kind: input, shape index: {}]   ;;  %s1034_s3 = inlined_call_operand.vmem [shape: bf16[128,128], index: 3, kind: output, shape index: {0}]   ;;  %s1035_s4 = inlined_call_operand.vmem [shape: f32[1,2,128], index: 4, kind: output, shape index: {1}]  }
   0x1   :  { %v553_v0 = vld [vmem:[%s1031_s1 + $0x38] sm:$0xff]  ;;  %v552_v1 = vld [vmem:[%s1031_s1 + $0x30] sm:$0xff]  ;;  %v555_v2 = vld [vmem:[%s1032_s0] sm:$0xff]  }
   0x2   :  { %220 = vmatpush.bf16.msra.mxu0 %v553_v0  ;;  %640 = vmatpush.bf16.msra.mxu1 %v553_v0  ;;  %v763_v3 = vunpack.c.l.bf16 %v555_v2  ;;  %v765_v4 = vunpack.c.h.bf16 %v555_v2  ;;  %v627_v5 = vld [vmem:[%s1032_s0 + $0x10] sm:$0xff]   ;;  %v629_v6 = vld [vmem:[%s1032_s0 + $0x20] sm:$0xff]   ;;  %v551_v13 = vld [vmem:[%s1031_s1 + $0x28] sm:$0xff] }
   0x3   :  { %641 = vmatpush.bf16.msra.mxu2 %v553_v0  ;;  %642 = vmatpush.bf16.msra.mxu3 %v553_v0  ;;  %v773_v7 = vunpack.c.l.bf16 %v627_v5  ;;  %v775_v8 = vunpack.c.h.bf16 %v627_v5  ;;  %v777_v9 = vunpack.c.l.bf16 %v629_v6  ;;  %v779_v10 = vunpack.c.h.bf16 %v629_v6  ;;  %v631_v16 = vld [vmem:[%s1032_s0 + $0x30] sm:$0xff]   ;;  %v626_v19 = vld [vmem:[%s1032_s0 + $0x8] sm:$0xff]   ;;  %v550_v26 = vld [vmem:[%s1031_s1 + $0x20] sm:$0xff] }
   0x4   :  { %v64_v11 = vmin.f32 %v763_v3, 0.0  ;;  %v65_v12 = vmin.f32 %v765_v4, 0.0  ;;  %v796_v24 = vunpack.c.l.bf16 %v631_v16  ;;  %v798_v25 = vunpack.c.h.bf16 %v631_v16  ;;  %v628_v31 = vld [vmem:[%s1032_s0 + $0x18] sm:$0xff]   ;;  %v630_v43 = vld [vmem:[%s1032_s0 + $0x28] sm:$0xff]   ;;  %v548_v46 = vld [vmem:[%s1031_s1 + $0x10] sm:$0xff] }
   0x5   :  { %v68_v14 = vmin.f32 %v773_v7, 0.0  ;;  %v69_v15 = vmin.f32 %v775_v8, 0.0  ;;  %v72_v22 = vmin.f32 %v777_v9, 0.0  ;;  %v73_v23 = vmin.f32 %v779_v10, 0.0  ;;  %v549_v35 = vld [vmem:[%s1031_s1 + $0x18] sm:$0xff]  ;;  %v547_v62 = vld [vmem:[%s1031_s1 + $0x8] sm:$0xff] }
   0x6   :  { %221 = vmatpush.bf16.msra.mxu0 %v552_v1  ;;  %643 = vmatpush.bf16.msra.mxu1 %v552_v1  ;;  %v80_v17 = vmul.f32 1.442695, %v64_v11  ;;  %v82_v18 = vmul.f32 1.442695, %v65_v12  ;;  %v803_v29 = vunpack.c.l.bf16 %v626_v19  ;;  %v76_v30 = vmin.f32 %v796_v24, 0.0  ;;  %v632_v60 = vld [vmem:[%s1032_s0 + $0x38] sm:$0xff]  }
   0x7   :  { %644 = vmatpush.bf16.msra.mxu2 %v552_v1  ;;  %645 = vmatpush.bf16.msra.mxu3 %v552_v1  ;;  %v88_v20 = vmul.f32 1.442695, %v68_v14  ;;  %v90_v21 = vmul.f32 1.442695, %v69_v15  ;;  %v96_v27 = vmul.f32 1.442695, %v72_v22  ;;  %v810_v33 = vunpack.c.h.bf16 %v626_v19 }
   0x8   :  { %665 = vpow2.f32 %v80_v17  ;;  %v98_v28 = vmul.f32 1.442695, %v73_v23  ;;  %v77_v32 = vmin.f32 %v798_v25, 0.0  ;;  %v104_v34 = vmul.f32 1.442695, %v76_v30 }
   0x9   :  { %667 = vpow2.f32 %v82_v18  ;;  %v66_v37 = vmin.f32 %v803_v29, 0.0  ;;  %v816_v38 = vunpack.c.l.bf16 %v628_v31  ;;  %v67_v41 = vmin.f32 %v810_v33, 0.0 }
   0xa   :  { %222 = vmatpush.bf16.msra.mxu0 %v551_v13  ;;  %646 = vmatpush.bf16.msra.mxu1 %v551_v13  ;;  %669 = vpow2.f32 %v88_v20  ;;  %v106_v36 = vmul.f32 1.442695, %v77_v32  ;;  %v819_v42 = vunpack.c.h.bf16 %v628_v31  ;;  %vm48_vm0 = vcmp.gt.f32.partialorder %v763_v3, 0.0 }
   0xb   :  { %647 = vmatpush.bf16.msra.mxu2 %v551_v13  ;;  %648 = vmatpush.bf16.msra.mxu3 %v551_v13  ;;  %671 = vpow2.f32 %v90_v21  ;;  %vm49_vm1 = vcmp.gt.f32.partialorder %v765_v4, 0.0  ;;  %vm52_vm2 = vcmp.gt.f32.partialorder %v773_v7, 0.0  ;;  %vm53_vm3 = vcmp.gt.f32.partialorder %v775_v8, 0.0 }
   0xc   :  { %673 = vpow2.f32 %v96_v27  ;;  %v84_v47 = vmul.f32 1.442695, %v66_v37  ;;  %v70_v48 = vmin.f32 %v816_v38, 0.0  ;;  %vm56_vm4 = vcmp.gt.f32.partialorder %v777_v9, 0.0 }
   0xd   :  { %675 = vpow2.f32 %v98_v28  ;;  %vm57_vm5 = vcmp.gt.f32.partialorder %v779_v10, 0.0  ;;  %v834_v50 = vunpack.c.l.bf16 %v630_v43  ;;  %v836_v51 = vunpack.c.h.bf16 %v630_v43 }
   0xe   :  { %223 = vmatpush.bf16.msra.mxu0 %v550_v26  ;;  %649 = vmatpush.bf16.msra.mxu1 %v550_v26  ;;  %v666_v39 = vpop.eup %665  ;;  %677 = vpow2.f32 %v104_v34  ;;  %vm60_vm6 = vcmp.gt.f32.partialorder %v796_v24, 0.0  ;;  %v86_v54 = vmul.f32 1.442695, %v67_v41  ;;  %v71_v55 = vmin.f32 %v819_v42, 0.0 }
   0xf   :  { %650 = vmatpush.bf16.msra.mxu2 %v550_v26  ;;  %651 = vmatpush.bf16.msra.mxu3 %v550_v26  ;;  %v668_v40 = vpop.eup %667  ;;  %679 = vpow2.f32 %v106_v36  ;;  %v482_v53 = vadd.f32 -1.0, %v666_v39  ;;  %vm61_vm7 = vcmp.gt.f32.partialorder %v798_v25, 0.0  ;;  %v92_v1 = vmul.f32 1.442695, %v70_v48 }
  0x10   :  { %v670_v44 = vpop.eup %669  ;;  %v483_v57 = vadd.f32 -1.0, %v668_v40  ;;  %681 = vpow2.f32 %v84_v47  ;;  %v74_v6 = vmin.f32 %v834_v50, 0.0  ;;  %v75_v11 = vmin.f32 %v836_v51, 0.0 }
  0x11   :  { %v672_v45 = vpop.eup %671  ;;  %v486_v58 = vadd.f32 -1.0, %v670_v44  ;;  %v128_v12 = vsel %vm48_vm0, %v763_v3, %v482_v53  ;;  %683 = vpow2.f32 %v86_v54  ;;  %v94_v13 = vmul.f32 1.442695, %v71_v55  ;;  %v546_v3 = vld [vmem:[%s1031_s1] sm:$0xff] }
  0x12   :  { %224 = vmatpush.bf16.msra.mxu0 %v549_v35  ;;  %652 = vmatpush.bf16.msra.mxu1 %v549_v35  ;;  %v674_v49 = vpop.eup %673  ;;  %v487_v59 = vadd.f32 -1.0, %v672_v45  ;;  %v852_v14 = vunpack.c.l.bf16 %v632_v60  ;;  %v129_v15 = vsel %vm49_vm1, %v765_v4, %v483_v57  ;;  %v100_v18 = vmul.f32 1.442695, %v74_v6 }
  0x13   :  { %653 = vmatpush.bf16.msra.mxu2 %v549_v35  ;;  %654 = vmatpush.bf16.msra.mxu3 %v549_v35  ;;  %v676_v52 = vpop.eup %675  ;;  %v490_v63 = vadd.f32 -1.0, %v674_v49  ;;  %v132_v16 = vsel %vm52_vm2, %v773_v7, %v486_v58  ;;  %685 = vpow2.f32 %v92_v1  ;;  %v102_v4 = vmul.f32 1.442695, %v75_v11 }
  0x14   :  { %v678_v56 = vpop.eup %677  ;;  %v491_v0 = vadd.f32 -1.0, %v676_v52  ;;  %v133_v17 = vsel %vm53_vm3, %v775_v8, %v487_v59  ;;  %v585_v20 = vunpack.c.h.bf16 %v632_v60  ;;  %v78_v22 = vmin.f32 %v852_v14, 0.0 }
  0x15   :  { %v680_v61 = vpop.eup %679  ;;  %v494_v2 = vadd.f32 -1.0, %v678_v56  ;;  %v136_v19 = vsel %vm56_vm4, %v777_v9, %v490_v63  ;;  %v144_v23 = vpack.c.bf16 %v129_v15, %v128_v12  ;;  %687 = vpow2.f32 %v94_v13 }
  0x16   :  { %225 = vmatpush.bf16.msra.mxu0 %v548_v46  ;;  %655 = vmatpush.bf16.msra.mxu1 %v548_v46  ;;  %v495_v5 = vadd.f32 -1.0, %v680_v61  ;;  %v137_v7 = vsel %vm57_vm5, %v779_v10, %v491_v0  ;;  %v682_v9 = vpop.eup %681  ;;  %v146_v26 = vpack.c.bf16 %v133_v17, %v132_v16  ;;  %689 = vpow2.f32 %v100_v18 }
  0x17   :  { %656 = vmatpush.bf16.msra.mxu2 %v548_v46  ;;  %657 = vmatpush.bf16.msra.mxu3 %v548_v46  ;;  %v140_v8 = vsel %vm60_vm6, %v796_v24, %v494_v2  ;;  %v79_v27 = vmin.f32 %v585_v20, 0.0  ;;  %v108_v28 = vmul.f32 1.442695, %v78_v22  ;;  %v684_v30 = vpop.eup %683  ;;  %v148_v10 = vpack.c.bf16 %v137_v7, %v136_v19 }
  0x18   :  { %v141_v21 = vsel %vm61_vm7, %v798_v25, %v495_v5  ;;  %691 = vpow2.f32 %v102_v4  ;;  %vm50_vm8 = vcmp.gt.f32.partialorder %v803_v29, 0.0  ;;  %vm51_vm9 = vcmp.gt.f32.partialorder %v810_v33, 0.0 }
  0x19   :  { %v150_v31 = vpack.c.bf16 %v141_v21, %v140_v8  ;;  %693 = vpow2.f32 %v108_v28  ;;  %v110_v24 = vmul.f32 1.442695, %v79_v27  ;;  %v686_v25 = vpop.eup %685  ;;  %vm54_vm10 = vcmp.gt.f32.partialorder %v816_v38, 0.0 }
  0x1a   :  { %226 = vmatpush.bf16.msra.mxu0 %v547_v62  ;;  %658 = vmatpush.bf16.msra.mxu1 %v547_v62  ;;  %vm55_vm11 = vcmp.gt.f32.partialorder %v819_v42, 0.0  ;;  %v484_v37 = vadd.f32 -1.0, %v682_v9  ;;  %v485_v39 = vadd.f32 -1.0, %v684_v30  ;;  %v488_v40 = vadd.f32 -1.0, %v686_v25 }
  0x1b   :  { %659 = vmatpush.bf16.msra.mxu2 %v547_v62  ;;  %660 = vmatpush.bf16.msra.mxu3 %v547_v62  ;;  %695 = vpow2.f32 %v110_v24  ;;  %v688_v32 = vpop.eup %687  ;;  %vm58_vm12 = vcmp.gt.f32.partialorder %v834_v50, 0.0  ;;  %vm59_vm13 = vcmp.gt.f32.partialorder %v836_v51, 0.0  ;;  %vm62_vm14 = vcmp.gt.f32.partialorder %v852_v14, 0.0 }
  0x1c   :  { %v690_v34 = vpop.eup %689  ;;  %v489_v41 = vadd.f32 -1.0, %v688_v32  ;;  %vm63_vm15 = vcmp.gt.f32.partialorder %v585_v20, 0.0  ;;  %v130_v48 = vsel %vm50_vm8, %v803_v29, %v484_v37  ;;  %v131_v49 = vsel %vm51_vm9, %v810_v33, %v485_v39  ;;  %v904_v33 = vld [vmem:[%s1033_s2] ss:$0 sm:$0xff] }
  0x1d   :  { %v492_v44 = vadd.f32 -1.0, %v690_v34  ;;  %v134_v52 = vsel %vm54_vm10, %v816_v38, %v488_v40  ;;  %v145_v29 = vpack.c.bf16 %v131_v49, %v130_v48 }
  0x1e   :  { %227 = vmatpush.bf16.msra.mxu0 %v546_v3  ;;  %661 = vmatpush.bf16.msra.mxu1 %v546_v3  ;;  %v692_v35 = vpop.eup %691  ;;  %v135_v53 = vsel %vm55_vm11, %v819_v42, %v489_v41 }
  0x1f   :  { %662 = vmatpush.bf16.msra.mxu2 %v546_v3  ;;  %663 = vmatpush.bf16.msra.mxu3 %v546_v3  ;;  %v694_v36 = vpop.eup %693  ;;  %v493_v45 = vadd.f32 -1.0, %v692_v35  ;;  %v138_v54 = vsel %vm58_vm12, %v834_v50, %v492_v44  ;;  %v147_v58 = vpack.c.bf16 %v135_v53, %v134_v52 }
  0x20   :  { %v496_v46 = vadd.f32 -1.0, %v694_v36 }
  0x21   :  { %228 = vmatmul.bf16.vlgmr.msra.gmra.mxu0 %v144_v23  ;;  %238 = vmatmul.bf16.vlgmr.msra.gmra.mxu1 %v146_v26  ;;  %v696_v43 = vpop.eup %695  ;;  %v139_v55 = vsel %vm59_vm13, %v836_v51, %v493_v45 }
  0x22   :  { %248 = vmatmul.bf16.vlgmr.msra.gmra.mxu2 %v148_v10  ;;  %258 = vmatmul.bf16.vlgmr.msra.gmra.mxu3 %v150_v31  ;;  %v497_v47 = vadd.f32 -1.0, %v696_v43  ;;  %v142_v56 = vsel %vm62_vm14, %v852_v14, %v496_v46  ;;  %v149_v59 = vpack.c.bf16 %v139_v55, %v138_v54 }
  0x24   :  { %v143_v57 = vsel %vm63_vm15, %v585_v20, %v497_v47 }
  0x25   :  { %v151_v60 = vpack.c.bf16 %v143_v57, %v142_v56 }
  0x31   :  { %233 = vmatmul.bf16.gmra.mxu0 %v145_v29  ;;  %243 = vmatmul.bf16.gmra.mxu1 %v147_v58 }
  0x32   :  { %253 = vmatmul.bf16.gmra.mxu2 %v149_v59  ;;  %263 = vmatmul.bf16.gmra.mxu3 %v151_v60 }
  0x9e   :  { %v229_v38 = vpop.f32.mrf.mxu0  ;;  %v239_v42 = vpop.f32.mrf.mxu1 }
  0x9f   :  { %v230_v50 = vadd.f32 %v904_v33, %v229_v38  ;;  %v240_v51 = vadd.f32 %v904_v33, %v239_v42 }
  0xa1   :  { %v285_v61 = vmin.f32 %v230_v50, 0.0  ;;  %v289_v62 = vmin.f32 %v240_v51, 0.0  ;;  %vm269_vm0 = vcmp.gt.f32.partialorder %v230_v50, 0.0  ;;  %vm273_vm1 = vcmp.gt.f32.partialorder %v240_v51, 0.0 }
  0xa3   :  { %v301_v63 = vmul.f32 1.442695, %v285_v61  ;;  %v309_v2 = vmul.f32 1.442695, %v289_v62 }
  0xa5   :  { %v249_v0 = vpop.f32.mrf.mxu2  ;;  %v259_v1 = vpop.f32.mrf.mxu3  ;;  %697 = vpow2.f32 %v301_v63 }
  0xa6   :  { %v909_v5 = vadd.f32 %v904_v33, %v249_v0  ;;  %v912_v6 = vadd.f32 %v904_v33, %v259_v1  ;;  %v231_v11 = vpop.f32.mrf.mxu0  ;;  %v241_v12 = vpop.f32.mrf.mxu1  ;;  %699 = vpow2.f32 %v309_v2 }
  0xa7   :  { %v232_v13 = vadd.f32 %v904_v33, %v231_v11  ;;  %v242_v14 = vadd.f32 %v904_v33, %v241_v12 }
  0xa8   :  { %v293_v15 = vmin.f32 %v909_v5, 0.0  ;;  %v297_v16 = vmin.f32 %v912_v6, 0.0  ;;  %vm277_vm4 = vcmp.gt.f32.partialorder %v909_v5, 0.0  ;;  %vm281_vm5 = vcmp.gt.f32.partialorder %v912_v6, 0.0 }
  0xa9   :  { %v286_v17 = vmin.f32 %v232_v13, 0.0  ;;  %v290_v18 = vmin.f32 %v242_v14, 0.0  ;;  %vm270_vm2 = vcmp.gt.f32.partialorder %v232_v13, 0.0  ;;  %vm274_vm3 = vcmp.gt.f32.partialorder %v242_v14, 0.0 }
  0xaa   :  { %v317_v4 = vmul.f32 1.442695, %v293_v15  ;;  %v325_v20 = vmul.f32 1.442695, %v297_v16 }
  0xab   :  { %v303_v3 = vmul.f32 1.442695, %v286_v17  ;;  %v311_v19 = vmul.f32 1.442695, %v290_v18  ;;  %v698_v23 = vpop.eup %697 }
  0xac   :  { %v700_v27 = vpop.eup %699  ;;  %v530_v25 = vadd.f32 -1.0, %v698_v23 }
  0xad   :  { %v251_v7 = vpop.f32.mrf.mxu2  ;;  %v261_v8 = vpop.f32.mrf.mxu3  ;;  %701 = vpow2.f32 %v303_v3  ;;  %v534_v32 = vadd.f32 -1.0, %v700_v27 }
  0xae   :  { %v252_v21 = vadd.f32 %v904_v33, %v251_v7  ;;  %v920_v22 = vadd.f32 %v904_v33, %v261_v8  ;;  %v234_v9 = vpop.f32.mrf.mxu0  ;;  %703 = vpow2.f32 %v311_v19  ;;  %v244_v31 = vpop.f32.mrf.mxu1  ;;  %v930_v46 = vsel %vm269_vm0, %v230_v50, %v530_v25 }
  0xaf   :  { %v923_v26 = vadd.f32 %v904_v33, %v234_v9  ;;  %705 = vpow2.f32 %v317_v4  ;;  %v928_v37 = vadd.f32 %v904_v33, %v244_v31  ;;  %v932_v47 = vsel %vm273_vm1, %v240_v51, %v534_v32 }
  0xb0   :  { %v294_v28 = vmin.f32 %v252_v21, 0.0  ;;  %707 = vpow2.f32 %v325_v20  ;;  %v298_v30 = vmin.f32 %v920_v22, 0.0  ;;  %vm278_vm6 = vcmp.gt.f32.partialorder %v252_v21, 0.0 }
  0xb1   :  { %v287_v10 = vmin.f32 %v923_v26, 0.0  ;;  %v291_v53 = vmin.f32 %v928_v37, 0.0  ;;  %vm282_vm7 = vcmp.gt.f32.partialorder %v920_v22, 0.0  ;;  %v365_v20 = vpack.c.bf16 %v930_v46, %v930_v46 }
  0xb2   :  { %v319_v24 = vmul.f32 1.442695, %v294_v28  ;;  %v327_v34 = vmul.f32 1.442695, %v298_v30  ;;  %vm271_vm8 = vcmp.gt.f32.partialorder %v923_v26, 0.0  ;;  %vm275_vm9 = vcmp.gt.f32.partialorder %v928_v37, 0.0 }
  0xb3   :  { %v702_v35 = vpop.eup %701  ;;  %v305_v36 = vmul.f32 1.442695, %v287_v10  ;;  %v313_v42 = vmul.f32 1.442695, %v291_v53  ;;  %v397_v25 = vunpack.c.l.bf16 %v365_v20  ;;  %vm471_vm0 = vcmask 1040384  }
  0xb4   :  { %709 = vpow2.f32 %v319_v24  ;;  %v704_v39 = vpop.eup %703  ;;  %v531_v40 = vadd.f32 -1.0, %v702_v35 }
  0xb5   :  { %711 = vpow2.f32 %v327_v34  ;;  %v254_v41 = vpop.f32.mrf.mxu2  ;;  %v706_v43 = vpop.eup %705  ;;  %v535_v44 = vadd.f32 -1.0, %v704_v39 }
  0xb6   :  { %v708_v45 = vpop.eup %707  ;;  %v350_v48 = vsel %vm270_vm2, %v232_v13, %v531_v40  ;;  %713 = vpow2.f32 %v305_v36  ;;  %v538_v54 = vadd.f32 -1.0, %v706_v43  ;;  %v941_v56 = vadd.f32 %v904_v33, %v254_v41  ;;  %v264_v57 = vpop.f32.mrf.mxu3 }
  0xb7   :  { %v589_v49 = vpack.c.bf16 %v350_v48, %v930_v46  ;;  %v935_v52 = vsel %vm274_vm3, %v242_v14, %v535_v44  ;;  %v542_v58 = vadd.f32 -1.0, %v708_v45  ;;  %v952_v50 = vadd.f32 %v904_v33, %v264_v57  ;;  %v236_v11 = vpop.f32.mrf.mxu0  ;;  %v246_v12 = vpop.f32.mrf.mxu1 }
  0xb8   :  { %v599_v55 = vpack.c.bf16 %v935_v52, %v932_v47  ;;  %v955_v51 = vsel %vm277_vm4, %v909_v5, %v538_v54  ;;  %v295_v62 = vmin.f32 %v941_v56, 0.0  ;;  %715 = vpow2.f32 %v313_v42 }
  0xb9   :  { %590 = vst [vmem:[%s1034_s3] sm:$0xff] %v589_v49   ;;  %v962_v0 = vsel %vm281_vm5, %v912_v6, %v542_v58  ;;  %v299_v6 = vmin.f32 %v952_v50, 0.0  ;;  %v237_v16 = vadd.f32 %v904_v33, %v236_v11  ;;  %v247_v17 = vadd.f32 %v904_v33, %v246_v12 }
  0xba   :  { %v710_v29 = vpop.eup %709  ;;  %634 = vst [vmem:[%s1034_s3 + $0x10] sm:$0xff] %v599_v55   ;;  %v321_v15 = vmul.f32 1.442695, %v295_v62  ;;  %v366_v3 = vpack.c.bf16 %v350_v48, %v350_v48  ;;  %v434_v41 = vmul.f32 %v397_v25, %v397_v25  ;;  %vm279_vm10 = vcmp.gt.f32.partialorder %v941_v56, 0.0 }
  0xbb   :  { %v712_v59 = vpop.eup %711  ;;  %v539_v60 = vadd.f32 -1.0, %v710_v29  ;;  %v288_v19 = vmin.f32 %v237_v16, 0.0  ;;  %v329_v7 = vmul.f32 1.442695, %v299_v6  ;;  %vm272_vm11 = vcmp.gt.f32.partialorder %v237_v16, 0.0 }
  0xbc   :  { %v543_v38 = vadd.f32 -1.0, %v712_v59  ;;  %v714_v63 = vpop.eup %713  ;;  %717 = vpow2.f32 %v321_v15  ;;  %v398_v28 = vunpack.c.l.bf16 %v366_v3  ;;  %vm276_vm12 = vcmp.gt.f32.partialorder %v247_v17, 0.0 }
  0xbd   :  { %v957_v61 = vsel %vm278_vm6, %v252_v21, %v539_v60  ;;  %v256_v13 = vpop.f32.mrf.mxu2  ;;  %v532_v14 = vadd.f32 -1.0, %v714_v63  ;;  %v307_v21 = vmul.f32 1.442695, %v288_v19  ;;  %vm283_vm14 = vcmp.gt.f32.partialorder %v952_v50, 0.0 }
  0xbe   :  { %v609_v1 = vpack.c.bf16 %v957_v61, %v955_v51  ;;  %v967_v2 = vsel %vm282_vm7, %v920_v22, %v543_v38  ;;  %v981_v18 = vadd.f32 %v904_v33, %v256_v13  ;;  %v266_v4 = vpop.f32.mrf.mxu3  ;;  %v292_v22 = vmin.f32 %v247_v17, 0.0  ;;  %v716_v9 = vpop.eup %715 }
  0xbf   :  { %v619_v5 = vpack.c.bf16 %v967_v2, %v962_v0  ;;  %v351_v8 = vsel %vm271_vm8, %v923_v26, %v532_v14  ;;  %v989_v27 = vadd.f32 %v904_v33, %v266_v4  ;;  %719 = vpow2.f32 %v307_v21 }
  0xc0   :  { %636 = vst [vmem:[%s1034_s3 + $0x20] sm:$0xff] %v609_v1   ;;  %v296_v23 = vmin.f32 %v981_v18, 0.0  ;;  %v315_v30 = vmul.f32 1.442695, %v292_v22  ;;  %v367_v10 = vpack.c.bf16 %v351_v8, %v351_v8  ;;  %721 = vpow2.f32 %v329_v7 }
  0xc1   :  { %638 = vst [vmem:[%s1034_s3 + $0x30] sm:$0xff] %v619_v5   ;;  %v300_v24 = vmin.f32 %v989_v27, 0.0  ;;  %v536_v32 = vadd.f32 -1.0, %v716_v9  ;;  %v369_v26 = vpack.c.bf16 %v932_v47, %v932_v47  ;;  %v435_v36 = vmul.f32 %v398_v28, %v398_v28 }
  0xc2   :  { %v323_v31 = vmul.f32 1.442695, %v296_v23  ;;  %723 = vpow2.f32 %v315_v30  ;;  %v718_v35 = vpop.eup %717  ;;  %v370_v33 = vpack.c.bf16 %v935_v52, %v935_v52  ;;  %v399_v39 = vunpack.c.l.bf16 %v367_v10 }
  0xc3   :  { %v331_v34 = vmul.f32 1.442695, %v300_v24  ;;  %v355_v43 = vsel %vm275_vm9, %v928_v37, %v536_v32  ;;  %v401_v45 = vunpack.c.l.bf16 %v369_v26  ;;  %v540_v46 = vadd.f32 -1.0, %v718_v35 }
  0xc4   :  { %725 = vpow2.f32 %v323_v31  ;;  %v413_v49 = vadd.f32 %v398_v28, %v397_v25  ;;  %v450_v53 = vadd.f32 %v435_v36, %v434_v41  ;;  %v402_v54 = vunpack.c.l.bf16 %v370_v33 }
  0xc5   :  { %727 = vpow2.f32 %v331_v34  ;;  %v720_v40 = vpop.eup %719  ;;  %v436_v55 = vmul.f32 %v399_v39, %v399_v39  ;;  %v371_v57 = vpack.c.bf16 %v355_v43, %v355_v43  ;;  %v359_v62 = vsel %vm279_vm10, %v941_v56, %v540_v46 }
  0xc6   :  { %v722_v44 = vpop.eup %721  ;;  %v533_v47 = vadd.f32 -1.0, %v720_v40  ;;  %v414_v42 = vadd.f32 %v413_v49, %v399_v39  ;;  %vm280_vm13 = vcmp.gt.f32.partialorder %v981_v18, 0.0  ;;  %vm284_vm15 = vcmp.gt.f32.partialorder %v989_v27, 0.0 }
  0xc7   :  { %v544_v1 = vadd.f32 -1.0, %v722_v44  ;;  %v451_v13 = vadd.f32 %v450_v53, %v436_v55  ;;  %v373_v3 = vpack.c.bf16 %v955_v51, %v955_v51  ;;  %v403_v19 = vunpack.c.l.bf16 %v371_v57 }
  0xc8   :  { %v724_v48 = vpop.eup %723  ;;  %v352_v29 = vsel %vm272_vm11, %v237_v16, %v533_v47  ;;  %v439_v22 = vmul.f32 %v402_v54, %v402_v54  ;;  %v378_v39 = vpack.c.bf16 %v967_v2, %v967_v2 }
  0xc9   :  { %v537_v58 = vadd.f32 -1.0, %v724_v48  ;;  %v368_v59 = vpack.c.bf16 %v352_v29, %v352_v29  ;;  %v594_v60 = vpack.c.bf16 %v352_v29, %v351_v8  ;;  %v363_v4 = vsel %vm283_vm14, %v952_v50, %v544_v1 }
  0xca   :  { %v726_v52 = vpop.eup %725  ;;  %v374_v8 = vpack.c.bf16 %v957_v61, %v957_v61  ;;  %v405_v51 = vunpack.c.l.bf16 %v373_v3  ;;  %v440_v30 = vmul.f32 %v403_v19, %v403_v19  ;;  %v377_v61 = vpack.c.bf16 %v962_v0, %v962_v0 }
  0xcb   :  { %v541_v37 = vadd.f32 -1.0, %v726_v52  ;;  %v728_v38 = vpop.eup %727  ;;  %v356_v63 = vsel %vm276_vm12, %v247_v17, %v537_v58  ;;  %633 = vst [vmem:[%s1034_s3 + $0x8] sm:$0xff] %v594_v60   ;;  %v400_v11 = vunpack.c.l.bf16 %v368_v59  ;;  %v438_v17 = vmul.f32 %v401_v45, %v401_v45 }
  0xcc   :  { %v604_v12 = vpack.c.bf16 %v356_v63, %v355_v43  ;;  %v545_v14 = vadd.f32 -1.0, %v728_v38  ;;  %v372_v56 = vpack.c.bf16 %v356_v63, %v356_v63  ;;  %v406_v50 = vunpack.c.l.bf16 %v374_v8 }
  0xcd   :  { %v360_v5 = vsel %vm280_vm13, %v981_v18, %v541_v37  ;;  %v415_v15 = vadd.f32 %v414_v42, %v400_v11  ;;  %v437_v16 = vmul.f32 %v400_v11, %v400_v11  ;;  %v442_v34 = vmul.f32 %v405_v51, %v405_v51 }
  0xce   :  { %v614_v6 = vpack.c.bf16 %v360_v5, %v359_v62  ;;  %635 = vst [vmem:[%s1034_s3 + $0x18] sm:$0xff] %v604_v12   ;;  %v364_v18 = vsel %vm284_vm15, %v989_v27, %v545_v14  ;;  %v404_v23 = vunpack.c.l.bf16 %v372_v56  ;;  %v375_v27 = vpack.c.bf16 %v359_v62, %v359_v62 }
  0xcf   :  { %v416_v20 = vadd.f32 %v415_v15, %v401_v45  ;;  %v452_v7 = vadd.f32 %v451_v13, %v437_v16  ;;  %v624_v21 = vpack.c.bf16 %v364_v18, %v363_v4  ;;  %v376_v26 = vpack.c.bf16 %v360_v5, %v360_v5 }
  0xd0   :  { %637 = vst [vmem:[%s1034_s3 + $0x28] sm:$0xff] %v614_v6   ;;  %v441_v25 = vmul.f32 %v404_v23, %v404_v23  ;;  %v407_v35 = vunpack.c.l.bf16 %v375_v27  ;;  %v443_v40 = vmul.f32 %v406_v50, %v406_v50  ;;  %v409_v45 = vunpack.c.l.bf16 %v377_v61 }
  0xd1   :  { %v453_v9 = vadd.f32 %v452_v7, %v438_v17  ;;  %v417_v28 = vadd.f32 %v416_v20, %v402_v54  ;;  %639 = vst [vmem:[%s1034_s3 + $0x38] sm:$0xff] %v624_v21   ;;  %v408_v43 = vunpack.c.l.bf16 %v376_v26  ;;  %v379_v47 = vpack.c.bf16 %v363_v4, %v363_v4 }
  0xd2   :  { %v444_v46 = vmul.f32 %v407_v35, %v407_v35  ;;  %v410_v53 = vunpack.c.l.bf16 %v378_v39  ;;  %v380_v55 = vpack.c.bf16 %v364_v18, %v364_v18  ;;  %v446_v57 = vmul.f32 %v409_v45, %v409_v45 }
  0xd3   :  { %v418_v10 = vadd.f32 %v417_v28, %v403_v19  ;;  %v454_v31 = vadd.f32 %v453_v9, %v439_v22  ;;  %v445_v52 = vmul.f32 %v408_v43, %v408_v43  ;;  %v411_v29 = vunpack.c.l.bf16 %v379_v47 }
  0xd4   :  { %v447_v60 = vmul.f32 %v410_v53, %v410_v53  ;;  %v412_v37 = vunpack.c.l.bf16 %v380_v55 }
  0xd5   :  { %v419_v24 = vadd.f32 %v418_v10, %v404_v23  ;;  %v455_v32 = vadd.f32 %v454_v31, %v440_v30  ;;  %v448_v42 = vmul.f32 %v411_v29, %v411_v29 }
  0xd6   :  { %v449_v11 = vmul.f32 %v412_v37, %v412_v37 }
  0xd7   :  { %v420_v36 = vadd.f32 %v419_v24, %v405_v51  ;;  %v456_v33 = vadd.f32 %v455_v32, %v441_v25 }
  0xd9   :  { %v457_v41 = vadd.f32 %v456_v33, %v442_v34  ;;  %v421_v44 = vadd.f32 %v420_v36, %v406_v50 }
  0xdb   :  { %v422_v48 = vadd.f32 %v421_v44, %v407_v35  ;;  %v458_v49 = vadd.f32 %v457_v41, %v443_v40 }
  0xdd   :  { %v423_v54 = vadd.f32 %v422_v48, %v408_v43  ;;  %v459_v0 = vadd.f32 %v458_v49, %v444_v46 }
  0xdf   :  { %v424_v58 = vadd.f32 %v423_v54, %v409_v45  ;;  %v460_v59 = vadd.f32 %v459_v0, %v445_v52 }
  0xe1   :  { %v461_v2 = vadd.f32 %v460_v59, %v446_v57  ;;  %v425_v38 = vadd.f32 %v424_v58, %v410_v53 }
  0xe3   :  { %v426_v62 = vadd.f32 %v425_v38, %v411_v29  ;;  %v462_v63 = vadd.f32 %v461_v2, %v447_v60 }
  0xe5   :  { %v427_v1 = vadd.f32 %v426_v62, %v412_v37  ;;  %v463_v12 = vadd.f32 %v462_v63, %v448_v42 }
  0xe7   :  { %v428_v5 = vrot.slane %v427_v1, 4  ;;  %v464_v13 = vadd.f32 %v463_v12, %v449_v11 }
  0xe9   :  { %v429_v6 = vadd.f32 %v428_v5, %v427_v1  ;;  %v465_v14 = vrot.slane %v464_v13, 4 }
  0xeb   :  { %v430_v15 = vrot.slane %v429_v6, 2  ;;  %v466_v16 = vadd.f32 %v465_v14, %v464_v13 }
  0xed   :  { %v431_v56 = vadd.f32 %v430_v15, %v429_v6  ;;  %v467_v17 = vrot.slane %v466_v16, 2 }
  0xef   :  { %v432_v3 = vrot.slane %v431_v56, 1  ;;  %v468_v18 = vadd.f32 %v467_v17, %v466_v16 }
  0xf1   :  { %v469_v19 = vrot.slane %v468_v18, 1  ;;  %v433_v4 = vadd.f32 %v432_v3, %v431_v56 }
  0xf3   :  { %v470_v20 = vadd.f32 %v469_v19, %v468_v18 }
  0xf5   :  { %v472_v7 = vsel %vm471_vm0, %v433_v4, %v470_v20 }
  0xf6   :  { %473 = vst [vmem:[%s1035_s4] sm:$0x3] %v472_v7 }

// kernel: mlp_model_forward.6
= control target key start
LH: loop header
LB: loop body
LE: loop exit
PB: predicated region body
PF: predicated region fallthrough
CT: control target
= control target key end

     0   :  { %v673_v0 = vmov 0   ;;  %v674_v17 = vmov 1   ;;  %v675_v18 = vmov 2   ;;  %s1020_s0 = inlined_call_operand.vmem [shape: f32[128,3], index: 0, kind: input, shape index: {}]   ;;  %s1021_s1 = inlined_call_operand.vmem [shape: f32[3,128], index: 1, kind: input, shape index: {}]   ;;  %s1022_s2 = inlined_call_operand.vmem [shape: f32[1,128], index: 2, kind: input, shape index: {}]   ;;  %s1023_s3 = inlined_call_operand.vmem [shape: bf16[128,128], index: 3, kind: output, shape index: {0}]   ;;  %s1024_s4 = inlined_call_operand.vmem [shape: f32[1,2,128], index: 4, kind: output, shape index: {1}]  }
   0x1   :  { %627 = vset.pattern.permute.xlu2 %v673_v0  ;;  %626 = vset.pattern.permute.xlu1 %v673_v0  ;;  %v20_v1 = vld [vmem:[%s1020_s0 + $0x20] sm:$0xff]  ;;  %v18_v2 = vld [vmem:[%s1020_s0 + $0x10] sm:$0xff]  ;;  %v21_v4 = vld [vmem:[%s1020_s0 + $0x28] sm:$0xff] }
   0x2   :  { %v16_v3 = vld [vmem:[%s1020_s0] sm:$0xff]  ;;  %625 = vset.pattern.permute.xlu0 %v673_v0  ;;  %55 = vperm.xlu2 %627, %v20_v1   ;;  %v19_v5 = vld [vmem:[%s1020_s0 + $0x18] sm:$0xff]  ;;  %v17_v6 = vld [vmem:[%s1020_s0 + $0x8] sm:$0xff] }
   0x3   :  { %45 = vperm.xlu1 %626, %v18_v2   ;;  %35 = vperm.xlu0 %625, %v16_v3   ;;  %v24_v7 = vld [vmem:[%s1020_s0 + $0x40] sm:$0xff]  ;;  %v23_v8 = vld [vmem:[%s1020_s0 + $0x38] sm:$0xff]  ;;  %v22_v9 = vld [vmem:[%s1020_s0 + $0x30] sm:$0xff] }
   0x4   :  { %v27_v10 = vld [vmem:[%s1020_s0 + $0x58] sm:$0xff]  ;;  %v26_v11 = vld [vmem:[%s1020_s0 + $0x50] sm:$0xff]  ;;  %v25_v12 = vld [vmem:[%s1020_s0 + $0x48] sm:$0xff] }
   0x5   :  { %v30_v13 = vld [vmem:[%s1020_s0 + $0x70] sm:$0xff]  ;;  %v29_v14 = vld [vmem:[%s1020_s0 + $0x68] sm:$0xff]  ;;  %v28_v15 = vld [vmem:[%s1020_s0 + $0x60] sm:$0xff] }
   0x6   :  { %v31_v16 = vld [vmem:[%s1020_s0 + $0x78] sm:$0xff]  ;;  %v780_v43 = vld [vmem:[%s1021_s1 + $0x1] ss:$0 sm:$0xff]  ;;  %v785_v44 = vld [vmem:[%s1021_s1] ss:$0 sm:$0xff] }
   0x7   :  { %v790_v45 = vld [vmem:[%s1021_s1 + $0x2] ss:$0 sm:$0xff]  ;;  %v800_v53 = vld [vmem:[%s1022_s2] ss:$0 sm:$0xff] }
   0xa   :  { %60 = vperm.xlu2 %627, %v21_v4  }
   0xb   :  { %50 = vperm.xlu1 %626, %v19_v5   ;;  %40 = vperm.xlu0 %625, %v17_v6  }
  0x12   :  { %75 = vperm.xlu2 %627, %v24_v7  }
  0x13   :  { %70 = vperm.xlu1 %626, %v23_v8   ;;  %65 = vperm.xlu0 %625, %v22_v9  }
  0x1a   :  { %90 = vperm.xlu2 %627, %v27_v10  }
  0x1b   :  { %85 = vperm.xlu1 %626, %v26_v11   ;;  %80 = vperm.xlu0 %625, %v25_v12  }
  0x22   :  { %105 = vperm.xlu2 %627, %v30_v13  }
  0x23   :  { %100 = vperm.xlu1 %626, %v29_v14   ;;  %95 = vperm.xlu0 %625, %v28_v15  }
  0x2a   :  { %629 = vset.pattern.permute.xlu2 %v674_v17 }
  0x2b   :  { %628 = vset.pattern.permute.xlu1 %v674_v17  ;;  %110 = vperm.xlu0 %625, %v31_v16  }
  0x2c   :  { %136 = vperm.xlu2 %629, %v17_v6   ;;  %132 = vperm.xlu1 %628, %v16_v3  }
  0x33   :  { %632 = vset.pattern.permute.xlu0 %v675_v18 }
  0x34   :  { %148 = vperm.xlu2 %629, %v20_v1   ;;  %144 = vperm.xlu1 %628, %v19_v5  }
  0x35   :  { %238 = vperm.xlu0 %632, %v18_v2  }
  0x3c   :  { %156 = vperm.xlu2 %629, %v22_v9   ;;  %152 = vperm.xlu1 %628, %v21_v4  }
  0x3d   :  { %258 = vperm.xlu0 %632, %v23_v8  }
  0x44   :  { %168 = vperm.xlu2 %629, %v25_v12   ;;  %164 = vperm.xlu1 %628, %v24_v7  }
  0x45   :  { %270 = vperm.xlu0 %632, %v26_v11  }
  0x4c   :  { %180 = vperm.xlu2 %629, %v28_v15   ;;  %176 = vperm.xlu1 %628, %v27_v10  }
  0x4d   :  { %633 = vset.pattern.permute.xlu0 %v674_v17 }
  0x4e   :  { %140 = vperm.xlu0 %633, %v18_v2  }
  0x54   :  { %631 = vset.pattern.permute.xlu2 %v675_v18  ;;  %630 = vset.pattern.permute.xlu1 %v675_v18 }
  0x55   :  { %234 = vperm.xlu2 %631, %v17_v6   ;;  %230 = vperm.xlu1 %630, %v16_v3  }
  0x56   :  { %160 = vperm.xlu0 %633, %v23_v8  }
  0x5c   :  { %v56_v19 = vpop.permute.xlu2 %55 }
  0x5d   :  { %246 = vperm.xlu2 %631, %v20_v1   ;;  %242 = vperm.xlu1 %630, %v19_v5   ;;  %v118_v60 = vmul.f32 %v785_v44, %v56_v19 }
  0x5e   :  { %172 = vperm.xlu0 %633, %v26_v11  }
  0x64   :  { %v749_v20 = vpop.permute.xlu2 %60 }
  0x65   :  { %254 = vperm.xlu2 %631, %v22_v9   ;;  %250 = vperm.xlu1 %630, %v21_v4  }
  0x66   :  { %184 = vperm.xlu0 %633, %v29_v14  }
  0x6c   :  { %v751_v21 = vpop.permute.xlu2 %75 }
  0x6d   :  { %266 = vperm.xlu2 %631, %v25_v12   ;;  %262 = vperm.xlu1 %630, %v24_v7  }
  0x6e   :  { %188 = vperm.xlu0 %633, %v30_v13  }
  0x74   :  { %v753_v22 = vpop.permute.xlu2 %90 }
  0x75   :  { %v46_v23 = vpop.permute.xlu1 %45  ;;  %278 = vperm.xlu2 %631, %v28_v15   ;;  %274 = vperm.xlu1 %630, %v27_v10   ;;  %v755_v24 = vpop.permute.xlu0 %35 }
  0x76   :  { %636 = vset.pattern.permute.xlu0 %v675_v18  ;;  %v116_v5 = vmul.f32 %v785_v44, %v46_v23 }
  0x7c   :  { %v757_v25 = vpop.permute.xlu2 %105 }
  0x7d   :  { %v759_v26 = vpop.permute.xlu1 %50  ;;  %634 = vset.pattern.permute.xlu2 %v674_v17  ;;  %282 = vperm.xlu1 %630, %v29_v14   ;;  %v41_v27 = vpop.permute.xlu0 %40 }
  0x7e   :  { %192 = vperm.xlu2 %634, %v31_v16   ;;  %v115_v46 = vmul.f32 %v785_v44, %v41_v27 }
  0x85   :  { %v761_v28 = vpop.permute.xlu1 %70  ;;  %286 = vperm.xlu1 %630, %v30_v13   ;;  %v66_v29 = vpop.permute.xlu0 %65 }
  0x86   :  { %635 = vset.pattern.permute.xlu2 %v675_v18  ;;  %v137_v30 = vpop.permute.xlu2 %136  ;;  %v120_v13 = vmul.f32 %v785_v44, %v66_v29 }
  0x87   :  { %290 = vperm.xlu2 %635, %v31_v16   ;;  %v197_v47 = vmul.f32 %v780_v43, %v137_v30  ;;  %v114_v16 = vmul.f32 %v785_v44, %v755_v24 }
  0x89   :  { %v213_v52 = vadd.f32 %v197_v47, %v115_v46 }
  0x8d   :  { %v763_v31 = vpop.permute.xlu1 %85  ;;  %v765_v32 = vpop.permute.xlu0 %80 }
  0x8e   :  { %v149_v33 = vpop.permute.xlu2 %148 }
  0x8f   :  { %v200_v56 = vmul.f32 %v780_v43, %v149_v33 }
  0x91   :  { %v216_v62 = vadd.f32 %v200_v56, %v118_v60 }
  0x95   :  { %v767_v34 = vpop.permute.xlu1 %100  ;;  %v769_v35 = vpop.permute.xlu0 %95 }
  0x96   :  { %v157_v36 = vpop.permute.xlu2 %156 }
  0x97   :  { %v202_v8 = vmul.f32 %v780_v43, %v157_v36 }
  0x99   :  { %v218_v18 = vadd.f32 %v202_v8, %v120_v13 }
  0x9d   :  { %v771_v39 = vpop.permute.xlu0 %110 }
  0x9e   :  { %v169_v37 = vpop.permute.xlu2 %168  ;;  %v133_v38 = vpop.permute.xlu1 %132 }
  0x9f   :  { %v196_v11 = vmul.f32 %v780_v43, %v133_v38  ;;  %v205_v30 = vmul.f32 %v780_v43, %v169_v37 }
  0xa1   :  { %v212_v33 = vadd.f32 %v196_v11, %v114_v16 }
  0xa6   :  { %v773_v40 = vpop.permute.xlu2 %180  ;;  %v775_v41 = vpop.permute.xlu1 %144 }
  0xa7   :  { %v239_v42 = vpop.permute.xlu0 %238 }
  0xa8   :  { %v296_v9 = vmul.f32 %v790_v45, %v239_v42  ;;  %v121_v42 = vmul.f32 %v785_v44, %v761_v28 }
  0xae   :  { %v794_v48 = vpop.permute.xlu1 %152 }
  0xaf   :  { %v235_v49 = vpop.permute.xlu2 %234  ;;  %v259_v50 = vpop.permute.xlu0 %258 }
  0xb0   :  { %v295_v51 = vmul.f32 %v790_v45, %v235_v49  ;;  %v123_v49 = vmul.f32 %v785_v44, %v765_v32 }
  0xb2   :  { %v311_v54 = vadd.f32 %v295_v51, %v213_v52  ;;  %v221_v28 = vadd.f32 %v205_v30, %v123_v49  ;;  %v119_v30 = vmul.f32 %v785_v44, %v749_v20 }
  0xb4   :  { %v331_v59 = vadd.f32 %v800_v53, %v311_v54  ;;  %v301_v54 = vmul.f32 %v790_v45, %v259_v50 }
  0xb6   :  { %v802_v55 = vpop.permute.xlu1 %164  ;;  %v347_v63 = vpack.c.bf16 %v331_v59, %v331_v59 }
  0xb7   :  { %v247_v57 = vpop.permute.xlu2 %246  ;;  %v805_v58 = vpop.permute.xlu0 %270 }
  0xb8   :  { %v298_v61 = vmul.f32 %v790_v45, %v247_v57  ;;  %v812_v3 = vunpack.c.l.bf16 %v347_v63 }
  0xba   :  { %v314_v0 = vadd.f32 %v298_v61, %v216_v62  ;;  %v411_v12 = vmin.f32 %v812_v3, 0.0  ;;  %v199_v61 = vmul.f32 %v780_v43, %v775_v41  ;;  %v126_v41 = vmul.f32 %v785_v44, %v769_v35 }
  0xbb   :  { %vm395_vm0 = vcmp.gt.f32.partialorder %v812_v3, 0.0 }
  0xbc   :  { %v816_v6 = vadd.f32 %v800_v53, %v314_v0  ;;  %v428_v36 = vmul.f32 1.442695, %v411_v12 }
  0xbe   :  { %v810_v1 = vpop.permute.xlu1 %176  ;;  %v350_v14 = vpack.c.bf16 %v816_v6, %v816_v6  ;;  %641 = vpow2.f32 %v428_v36  ;;  %v124_v36 = vmul.f32 %v785_v44, %v763_v31 }
  0xbf   :  { %v255_v2 = vpop.permute.xlu2 %254 }
  0xc0   :  { %v141_v4 = vpop.permute.xlu0 %140  ;;  %v300_v17 = vmul.f32 %v790_v45, %v255_v2  ;;  %v836_v46 = vunpack.c.l.bf16 %v350_v14 }
  0xc1   :  { %v198_v7 = vmul.f32 %v780_v43, %v141_v4 }
  0xc2   :  { %v316_v51 = vadd.f32 %v300_v17, %v218_v18  ;;  %v414_v62 = vmin.f32 %v836_v46, 0.0  ;;  %vm398_vm3 = vcmp.gt.f32.partialorder %v836_v46, 0.0 }
  0xc3   :  { %v214_v10 = vadd.f32 %v198_v7, %v116_v5  ;;  %v117_v5 = vmul.f32 %v785_v44, %v759_v26 }
  0xc4   :  { %v336_v0 = vadd.f32 %v800_v53, %v316_v51  ;;  %v434_v16 = vmul.f32 1.442695, %v414_v62 }
  0xc5   :  { %v312_v15 = vadd.f32 %v296_v9, %v214_v10  ;;  %v215_v13 = vadd.f32 %v199_v61, %v117_v5 }
  0xc6   :  { %v352_v17 = vpack.c.bf16 %v336_v0, %v336_v0 }
  0xc7   :  { %v830_v19 = vadd.f32 %v800_v53, %v312_v15  ;;  %v267_v23 = vpop.permute.xlu2 %266  ;;  %v231_v27 = vpop.permute.xlu1 %230 }
  0xc8   :  { %v294_v29 = vmul.f32 %v790_v45, %v231_v27  ;;  %v161_v38 = vpop.permute.xlu0 %160  ;;  %v303_v37 = vmul.f32 %v790_v45, %v267_v23  ;;  %v642_v15 = vpop.eup %641 }
  0xc9   :  { %v348_v24 = vpack.c.bf16 %v830_v19, %v830_v19  ;;  %v203_v47 = vmul.f32 %v780_v43, %v161_v38 }
  0xca   :  { %v310_v52 = vadd.f32 %v294_v29, %v212_v33  ;;  %v319_v2 = vadd.f32 %v303_v37, %v221_v28  ;;  %v122_v33 = vmul.f32 %v785_v44, %v751_v21  ;;  %v304_v21 = vmul.f32 %v790_v45, %v805_v58 }
  0xcb   :  { %v845_v56 = vunpack.c.l.bf16 %v348_v24  ;;  %v219_v57 = vadd.f32 %v203_v47, %v121_v42  ;;  %v201_v42 = vmul.f32 %v780_v43, %v794_v48  ;;  %v560_v24 = vadd.f32 -1.0, %v642_v15 }
  0xcc   :  { %v330_v60 = vadd.f32 %v800_v53, %v310_v52  ;;  %v867_v35 = vadd.f32 %v800_v53, %v319_v2  ;;  %v888_v37 = vunpack.c.l.bf16 %v352_v17  ;;  %v892_v48 = vmul.f32 %v785_v44, %v753_v22 }
  0xcd   :  { %v412_v32 = vmin.f32 %v845_v56, 0.0  ;;  %v317_v63 = vadd.f32 %v301_v54, %v219_v57  ;;  %v204_v54 = vmul.f32 %v780_v43, %v802_v55  ;;  %vm396_vm1 = vcmp.gt.f32.partialorder %v845_v56, 0.0 }
  0xce   :  { %v346_v4 = vpack.c.bf16 %v330_v60, %v330_v60  ;;  %v578_v50 = vpack.c.bf16 %v331_v59, %v330_v60  ;;  %v208_v59 = vmul.f32 %v780_v43, %v773_v40  ;;  %v355_v49 = vpack.c.bf16 %v867_v35, %v867_v35 }
  0xcf   :  { %v430_v7 = vmul.f32 1.442695, %v412_v32  ;;  %v337_v8 = vadd.f32 %v800_v53, %v317_v63  ;;  %v243_v9 = vpop.permute.xlu1 %242  ;;  %v279_v11 = vpop.permute.xlu2 %278  ;;  %v217_v32 = vadd.f32 %v201_v42, %v119_v30  ;;  %v475_v63 = vsel %vm395_vm0, %v812_v3, %v560_v24 }
  0xd0   :  { %579 = vst [vmem:[%s1023_s3] sm:$0xff] %v578_v50   ;;  %v861_v10 = vunpack.c.l.bf16 %v346_v4  ;;  %v173_v12 = vpop.permute.xlu0 %172  ;;  %v297_v14 = vmul.f32 %v790_v45, %v243_v9  ;;  %v306_v23 = vmul.f32 %v790_v45, %v279_v11  ;;  %v224_v38 = vadd.f32 %v208_v59, %v126_v41 }
  0xd1   :  { %v593_v26 = vpack.c.bf16 %v337_v8, %v336_v0  ;;  %643 = vpow2.f32 %v430_v7  ;;  %v206_v27 = vmul.f32 %v780_v43, %v173_v12  ;;  %v353_v47 = vpack.c.bf16 %v337_v8, %v337_v8 }
  0xd2   :  { %v410_v18 = vmin.f32 %v861_v10, 0.0  ;;  %v313_v40 = vadd.f32 %v297_v14, %v215_v13  ;;  %645 = vpow2.f32 %v434_v16  ;;  %v322_v31 = vadd.f32 %v306_v23, %v224_v38 }
  0xd3   :  { %617 = vst [vmem:[%s1023_s3 + $0x18] sm:$0xff] %v593_v26   ;;  %v222_v20 = vadd.f32 %v206_v27, %v124_v36  ;;  %v898_v61 = vunpack.c.l.bf16 %v353_v47  ;;  %v902_v0 = vunpack.c.l.bf16 %v355_v49  ;;  %v416_v2 = vmin.f32 %v888_v37, 0.0 }
  0xd4   :  { %v426_v29 = vmul.f32 1.442695, %v410_v18  ;;  %v333_v51 = vadd.f32 %v800_v53, %v313_v40  ;;  %v915_v4 = vadd.f32 %v800_v53, %v322_v31  ;;  %v220_v5 = vadd.f32 %v204_v54, %v122_v33 }
  0xd5   :  { %v320_v58 = vadd.f32 %v304_v21, %v222_v20  ;;  %v512_v11 = vmul.f32 %v475_v63, %v475_v63  ;;  %v417_v12 = vmin.f32 %v898_v61, 0.0  ;;  %v419_v13 = vmin.f32 %v902_v0, 0.0 }
  0xd6   :  { %647 = vpow2.f32 %v426_v29  ;;  %v349_v57 = vpack.c.bf16 %v333_v51, %v333_v51  ;;  %v583_v28 = vpack.c.bf16 %v333_v51, %v830_v19  ;;  %v911_v19 = vmul.f32 %v785_v44, %v771_v39 }
  0xd7   :  { %v251_v52 = vpop.permute.xlu1 %250  ;;  %v644_v60 = vpop.eup %643  ;;  %v918_v3 = vadd.f32 %v800_v53, %v320_v58  ;;  %v207_v39 = vmul.f32 %v780_v43, %v810_v1  ;;  %v438_v16 = vmul.f32 1.442695, %v416_v2  ;;  %vm394_vm2 = vcmp.gt.f32.partialorder %v861_v10, 0.0 }
  0xd8   :  { %v299_v62 = vmul.f32 %v790_v45, %v251_v52  ;;  %615 = vst [vmem:[%s1023_s3 + $0x8] sm:$0xff] %v583_v28   ;;  %v907_v22 = vunpack.c.l.bf16 %v349_v57  ;;  %v193_v55 = vpop.permute.xlu2 %192  ;;  %v646_v50 = vpop.eup %645  ;;  %v561_v7 = vadd.f32 -1.0, %v644_v60  ;;  %v358_v17 = vpack.c.bf16 %v915_v4, %v915_v4 }
  0xd9   :  { %v356_v59 = vpack.c.bf16 %v918_v3, %v918_v3  ;;  %v563_v18 = vadd.f32 -1.0, %v646_v50  ;;  %v440_v33 = vmul.f32 1.442695, %v417_v12  ;;  %v444_v29 = vmul.f32 1.442695, %v419_v13 }
  0xda   :  { %v413_v8 = vmin.f32 %v907_v22, 0.0  ;;  %v315_v9 = vadd.f32 %v299_v62, %v217_v32  ;;  %v476_v23 = vsel %vm396_vm1, %v845_v56, %v561_v7  ;;  %v938_v51 = vunpack.c.l.bf16 %v358_v17 }
  0xdb   :  { %v934_v36 = vunpack.c.l.bf16 %v356_v59  ;;  %v513_v47 = vmul.f32 %v476_v23, %v476_v23  ;;  %v211_v52 = vmul.f32 %v780_v43, %v193_v55  ;;  %v478_v57 = vsel %vm398_vm3, %v836_v46, %v563_v18  ;;  %v185_v55 = vpop.permute.xlu0 %184 }
  0xdc   :  { %v648_v41 = vpop.eup %647  ;;  %v432_v14 = vmul.f32 1.442695, %v413_v8  ;;  %v335_v15 = vadd.f32 %v800_v53, %v315_v9  ;;  %v223_v28 = vadd.f32 %v207_v39, %v892_v48  ;;  %v422_v62 = vmin.f32 %v938_v51, 0.0 }
  0xdd   :  { %v559_v26 = vadd.f32 -1.0, %v648_v41  ;;  %v420_v31 = vmin.f32 %v934_v36, 0.0  ;;  %vm397_vm4 = vcmp.gt.f32.partialorder %v907_v22, 0.0  ;;  %v227_v8 = vadd.f32 %v211_v52, %v911_v19 }
  0xde   :  { %649 = vpow2.f32 %v432_v14  ;;  %v351_v38 = vpack.c.bf16 %v335_v15, %v335_v15  ;;  %v588_v42 = vpack.c.bf16 %v335_v15, %v816_v6  ;;  %v450_v14 = vmul.f32 1.442695, %v422_v62 }
  0xdf   :  { %v263_v1 = vpop.permute.xlu1 %262  ;;  %v474_v40 = vsel %vm394_vm2, %v861_v10, %v559_v26  ;;  %651 = vpow2.f32 %v438_v16  ;;  %v446_v7 = vmul.f32 1.442695, %v420_v31  ;;  %v515_v26 = vmul.f32 %v478_v57, %v478_v57 }
  0xe0   :  { %v490_v27 = vadd.f32 %v475_v63, %v474_v40  ;;  %v511_v30 = vmul.f32 %v474_v40, %v474_v40  ;;  %v302_v24 = vmul.f32 %v790_v45, %v263_v1  ;;  %616 = vst [vmem:[%s1023_s3 + $0x10] sm:$0xff] %v588_v42   ;;  %v944_v56 = vunpack.c.l.bf16 %v351_v38 }
  0xe1   :  { %v291_v21 = vpop.permute.xlu2 %290  ;;  %653 = vpow2.f32 %v440_v33  ;;  %v127_v17 = vmul.f32 %v785_v44, %v767_v34  ;;  %vm400_vm5 = vcmp.gt.f32.partialorder %v888_v37, 0.0  ;;  %vm401_vm6 = vcmp.gt.f32.partialorder %v898_v61, 0.0 }
  0xe2   :  { %v527_v49 = vadd.f32 %v512_v11, %v511_v30  ;;  %v491_v20 = vadd.f32 %v490_v27, %v476_v23  ;;  %v318_v10 = vadd.f32 %v302_v24, %v220_v5  ;;  %v415_v60 = vmin.f32 %v944_v56, 0.0 }
  0xe3   :  { %655 = vpow2.f32 %v444_v29  ;;  %v309_v63 = vmul.f32 %v790_v45, %v291_v21  ;;  %vm399_vm7 = vcmp.gt.f32.partialorder %v944_v56, 0.0  ;;  %vm403_vm8 = vcmp.gt.f32.partialorder %v902_v0, 0.0 }
  0xe4   :  { %v528_v6 = vadd.f32 %v527_v49, %v513_v47  ;;  %v650_v54 = vpop.eup %649  ;;  %v338_v58 = vadd.f32 %v800_v53, %v318_v10  ;;  %v436_v50 = vmul.f32 1.442695, %v415_v60  ;;  %vm404_vm9 = vcmp.gt.f32.partialorder %v934_v36, 0.0 }
  0xe5   :  { %v562_v32 = vadd.f32 -1.0, %v650_v54  ;;  %v652_v41 = vpop.eup %651  ;;  %v325_v13 = vadd.f32 %v309_v63, %v227_v8  ;;  %vm406_vm11 = vcmp.gt.f32.partialorder %v938_v51, 0.0  ;;  %vm548_vm0 = vcmask 1040384  }
  0xe6   :  { %v354_v5 = vpack.c.bf16 %v338_v58, %v338_v58  ;;  %v598_v46 = vpack.c.bf16 %v867_v35, %v338_v58  ;;  %657 = vpow2.f32 %v436_v50  ;;  %v209_v35 = vmul.f32 %v780_v43, %v185_v55 }
  0xe7   :  { %v275_v2 = vpop.permute.xlu1 %274  ;;  %v477_v48 = vsel %vm397_vm4, %v907_v22, %v562_v32  ;;  %v654_v59 = vpop.eup %653  ;;  %v565_v1 = vadd.f32 -1.0, %v652_v41  ;;  %659 = vpow2.f32 %v446_v7  ;;  %v972_v29 = vadd.f32 %v800_v53, %v325_v13 }
  0xe8   :  { %v305_v9 = vmul.f32 %v790_v45, %v275_v2  ;;  %v492_v11 = vadd.f32 %v491_v20, %v477_v48  ;;  %v514_v39 = vmul.f32 %v477_v48, %v477_v48  ;;  %618 = vst [vmem:[%s1023_s3 + $0x20] sm:$0xff] %v598_v46   ;;  %v962_v12 = vunpack.c.l.bf16 %v354_v5 }
  0xe9   :  { %v656_v16 = vpop.eup %655  ;;  %v566_v40 = vadd.f32 -1.0, %v654_v59  ;;  %v225_v30 = vadd.f32 %v209_v35, %v127_v17  ;;  %661 = vpow2.f32 %v450_v14  ;;  %v480_v49 = vsel %vm400_vm5, %v888_v37, %v565_v1  ;;  %v189_v37 = vpop.permute.xlu0 %188 }
  0xea   :  { %v321_v22 = vadd.f32 %v305_v9, %v223_v28  ;;  %v529_v19 = vadd.f32 %v528_v6, %v514_v39  ;;  %v493_v15 = vadd.f32 %v492_v11, %v478_v57  ;;  %v418_v18 = vmin.f32 %v962_v12, 0.0 }
  0xeb   :  { %v568_v20 = vadd.f32 -1.0, %v656_v16  ;;  %v481_v21 = vsel %vm401_vm6, %v898_v61, %v566_v40  ;;  %v361_v54 = vpack.c.bf16 %v972_v29, %v972_v29  ;;  %v517_v58 = vmul.f32 %v480_v49, %v480_v49 }
  0xec   :  { %v341_v23 = vadd.f32 %v800_v53, %v321_v22  ;;  %v530_v27 = vadd.f32 %v529_v19, %v515_v26  ;;  %v442_v33 = vmul.f32 1.442695, %v418_v18  ;;  %v658_v42 = vpop.eup %657  ;;  %v518_v32 = vmul.f32 %v481_v21, %v481_v21 }
  0xed   :  { %v564_v10 = vadd.f32 -1.0, %v658_v42  ;;  %v660_v57 = vpop.eup %659  ;;  %v483_v62 = vsel %vm403_vm8, %v902_v0, %v568_v20  ;;  %v210_v2 = vmul.f32 %v780_v43, %v189_v37  ;;  %v994_v46 = vunpack.c.l.bf16 %v361_v54 }
  0xee   :  { %v357_v34 = vpack.c.bf16 %v341_v23, %v341_v23  ;;  %v603_v24 = vpack.c.bf16 %v341_v23, %v918_v3  ;;  %663 = vpow2.f32 %v442_v33  ;;  %v128_v3 = vmul.f32 %v785_v44, %v757_v25 }
  0xef   :  { %v283_v38 = vpop.permute.xlu1 %282  ;;  %v479_v52 = vsel %vm399_vm7, %v944_v56, %v564_v10  ;;  %v662_v25 = vpop.eup %661  ;;  %v569_v5 = vadd.f32 -1.0, %v660_v57  ;;  %vm402_vm10 = vcmp.gt.f32.partialorder %v962_v12, 0.0  ;;  %v425_v19 = vmin.f32 %v994_v46, 0.0 }
  0xf0   :  { %v307_v47 = vmul.f32 %v790_v45, %v283_v38  ;;  %619 = vst [vmem:[%s1023_s3 + $0x28] sm:$0xff] %v603_v24   ;;  %v982_v6 = vunpack.c.l.bf16 %v357_v34  ;;  %v494_v61 = vadd.f32 %v493_v15, %v479_v52  ;;  %v516_v28 = vmul.f32 %v479_v52, %v479_v52 }
  0xf1   :  { %v571_v39 = vadd.f32 -1.0, %v662_v25  ;;  %v226_v35 = vadd.f32 %v210_v2, %v128_v3  ;;  %v484_v13 = vsel %vm404_vm9, %v934_v36, %v569_v5  ;;  %v520_v16 = vmul.f32 %v483_v62, %v483_v62 }
  0xf2   :  { %v323_v31 = vadd.f32 %v307_v47, %v225_v30  ;;  %v421_v60 = vmin.f32 %v982_v6, 0.0  ;;  %v495_v44 = vadd.f32 %v494_v61, %v480_v49  ;;  %v531_v56 = vadd.f32 %v530_v27, %v516_v28 }
  0xf3   :  { %v486_v23 = vsel %vm406_vm11, %v938_v51, %v571_v39  ;;  %v456_v33 = vmul.f32 1.442695, %v425_v19  ;;  %vm405_vm12 = vcmp.gt.f32.partialorder %v982_v6, 0.0  ;;  %vm409_vm14 = vcmp.gt.f32.partialorder %v994_v46, 0.0 }
  0xf4   :  { %v343_v63 = vadd.f32 %v800_v53, %v323_v31  ;;  %v448_v50 = vmul.f32 1.442695, %v421_v60  ;;  %v664_v55 = vpop.eup %663  ;;  %v532_v9 = vadd.f32 %v531_v56, %v517_v58  ;;  %v496_v0 = vadd.f32 %v495_v44, %v481_v21 }
  0xf5   :  { %v567_v41 = vadd.f32 -1.0, %v664_v55  ;;  %v523_v51 = vmul.f32 %v486_v23, %v486_v23 }
  0xf6   :  { %v359_v48 = vpack.c.bf16 %v343_v63, %v343_v63  ;;  %v608_v7 = vpack.c.bf16 %v343_v63, %v915_v4  ;;  %665 = vpow2.f32 %v448_v50  ;;  %v533_v4 = vadd.f32 %v532_v9, %v518_v32 }
  0xf7   :  { %v287_v8 = vpop.permute.xlu1 %286  ;;  %v482_v59 = vsel %vm402_vm10, %v962_v12, %v567_v41  ;;  %v521_v12 = vmul.f32 %v484_v13, %v484_v13 }
  0xf8   :  { %620 = vst [vmem:[%s1023_s3 + $0x30] sm:$0xff] %v608_v7   ;;  %v391_v43 = vunpack.c.l.bf16 %v359_v48  ;;  %v308_v11 = vmul.f32 %v790_v45, %v287_v8  ;;  %v497_v22 = vadd.f32 %v496_v0, %v482_v59  ;;  %v519_v26 = vmul.f32 %v482_v59, %v482_v59 }
  0xfa   :  { %v423_v14 = vmin.f32 %v391_v43, 0.0  ;;  %v324_v15 = vadd.f32 %v308_v11, %v226_v35  ;;  %v498_v17 = vadd.f32 %v497_v22, %v483_v62  ;;  %v534_v1 = vadd.f32 %v533_v4, %v519_v26 }
  0xfb   :  { %vm407_vm13 = vcmp.gt.f32.partialorder %v391_v43, 0.0 }
  0xfc   :  { %v452_v18 = vmul.f32 1.442695, %v423_v14  ;;  %v666_v45 = vpop.eup %665  ;;  %v344_v40 = vadd.f32 %v800_v53, %v324_v15  ;;  %v535_v27 = vadd.f32 %v534_v1, %v520_v16  ;;  %v499_v30 = vadd.f32 %v498_v17, %v484_v13 }
  0xfd   :  { %v570_v36 = vadd.f32 -1.0, %v666_v45 }
  0xfe   :  { %667 = vpow2.f32 %v452_v18  ;;  %v360_v38 = vpack.c.bf16 %v344_v40, %v344_v40  ;;  %v613_v42 = vpack.c.bf16 %v972_v29, %v344_v40  ;;  %v536_v24 = vadd.f32 %v535_v27, %v521_v12 }
  0xff   :  { %v485_v34 = vsel %vm405_vm12, %v982_v6, %v570_v36  ;;  %669 = vpow2.f32 %v456_v33 }
 0x100   :  { %v500_v47 = vadd.f32 %v499_v30, %v485_v34  ;;  %v522_v49 = vmul.f32 %v485_v34, %v485_v34  ;;  %621 = vst [vmem:[%s1023_s3 + $0x38] sm:$0xff] %v613_v42   ;;  %v392_v53 = vunpack.c.l.bf16 %v360_v38 }
 0x102   :  { %v537_v20 = vadd.f32 %v536_v24, %v522_v49  ;;  %v501_v10 = vadd.f32 %v500_v47, %v486_v23  ;;  %v424_v21 = vmin.f32 %v392_v53, 0.0  ;;  %vm408_vm15 = vcmp.gt.f32.partialorder %v392_v53, 0.0 }
 0x104   :  { %v668_v31 = vpop.eup %667  ;;  %v538_v52 = vadd.f32 %v537_v20, %v523_v51  ;;  %v454_v37 = vmul.f32 1.442695, %v424_v21 }
 0x105   :  { %v572_v3 = vadd.f32 -1.0, %v668_v31  ;;  %v670_v57 = vpop.eup %669 }
 0x106   :  { %671 = vpow2.f32 %v454_v37  ;;  %v574_v28 = vadd.f32 -1.0, %v670_v57 }
 0x107   :  { %v487_v29 = vsel %vm407_vm13, %v391_v43, %v572_v3 }
 0x108   :  { %v502_v6 = vadd.f32 %v501_v10, %v487_v29  ;;  %v524_v54 = vmul.f32 %v487_v29, %v487_v29  ;;  %v489_v62 = vsel %vm409_vm14, %v994_v46, %v574_v28 }
 0x109   :  { %v526_v44 = vmul.f32 %v489_v62, %v489_v62 }
 0x10a   :  { %v539_v61 = vadd.f32 %v538_v52, %v524_v54 }
 0x10c   :  { %v672_v60 = vpop.eup %671 }
 0x10d   :  { %v573_v58 = vadd.f32 -1.0, %v672_v60 }
 0x10f   :  { %v488_v32 = vsel %vm408_vm15, %v392_v53, %v573_v58 }
 0x110   :  { %v503_v63 = vadd.f32 %v502_v6, %v488_v32  ;;  %v525_v25 = vmul.f32 %v488_v32, %v488_v32 }
 0x112   :  { %v504_v56 = vadd.f32 %v503_v63, %v489_v62  ;;  %v540_v2 = vadd.f32 %v539_v61, %v525_v25 }
 0x114   :  { %v505_v50 = vrot.slane %v504_v56, 4  ;;  %v541_v55 = vadd.f32 %v540_v2, %v526_v44 }
 0x116   :  { %v506_v5 = vadd.f32 %v505_v50, %v504_v56  ;;  %v542_v48 = vrot.slane %v541_v55, 4 }
 0x118   :  { %v507_v7 = vrot.slane %v506_v5, 2  ;;  %v543_v8 = vadd.f32 %v542_v48, %v541_v55 }
 0x11a   :  { %v508_v9 = vadd.f32 %v507_v7, %v506_v5  ;;  %v544_v41 = vrot.slane %v543_v8, 2 }
 0x11c   :  { %v509_v0 = vrot.slane %v508_v9, 1  ;;  %v545_v43 = vadd.f32 %v544_v41, %v543_v8 }
 0x11e   :  { %v546_v11 = vrot.slane %v545_v43, 1  ;;  %v510_v39 = vadd.f32 %v509_v0, %v508_v9 }
 0x120   :  { %v547_v46 = vadd.f32 %v546_v11, %v545_v43 }
 0x122   :  { %v549_v59 = vsel %vm548_vm0, %v510_v39, %v547_v46 }
 0x123   :  { %550 = vst [vmem:[%s1024_s4] sm:$0x3] %v549_v59 }

// kernel: mlp_model_forward.8
= control target key start
LH: loop header
LB: loop body
LE: loop exit
PB: predicated region body
PF: predicated region fallthrough
CT: control target
= control target key end

     0   :  { %s963_s2 = inlined_call_operand.vmem [shape: bf16[128,128], index: 2, kind: input, shape index: {}]   ;;  %s964_s3 = inlined_call_operand.vmem [shape: f32[1,128], index: 3, kind: input, shape index: {}]   ;;  %s965_s0 = inlined_call_operand.vmem [shape: bf16[128,128], index: 0, kind: input, shape index: {}]   ;;  %s966_s1 = inlined_call_operand.vmem [shape: bf16[128,128], index: 1, kind: input, shape index: {}]   ;;  %s967_s4 = inlined_call_operand.vmem [shape: bf16[128,128], index: 4, kind: output, shape index: {0}]   ;;  %s968_s5 = inlined_call_operand.vmem [shape: f32[1,2,128], index: 5, kind: output, shape index: {1}]  }
   0x1   :  { %v556_v0 = vld [vmem:[%s963_s2 + $0x38] sm:$0xff]  ;;  %v555_v1 = vld [vmem:[%s963_s2 + $0x30] sm:$0xff]  ;;  %v554_v2 = vld [vmem:[%s963_s2 + $0x28] sm:$0xff] }
   0x2   :  { %151 = vmatpush.bf16.msra.mxu0 %v556_v0  ;;  %643 = vmatpush.bf16.msra.mxu1 %v556_v0  ;;  %v553_v3 = vld [vmem:[%s963_s2 + $0x20] sm:$0xff]  ;;  %v552_v4 = vld [vmem:[%s963_s2 + $0x18] sm:$0xff]  ;;  %v551_v5 = vld [vmem:[%s963_s2 + $0x10] sm:$0xff] }
   0x3   :  { %644 = vmatpush.bf16.msra.mxu2 %v556_v0  ;;  %645 = vmatpush.bf16.msra.mxu3 %v556_v0  ;;  %v550_v6 = vld [vmem:[%s963_s2 + $0x8] sm:$0xff]  ;;  %v549_v7 = vld [vmem:[%s963_s2] sm:$0xff]  ;;  %v543_v9 = vld [vmem:[%s965_s0 + $0x10] sm:$0xff] }
   0x4   :  { %v541_v8 = vld [vmem:[%s965_s0] sm:$0xff]  ;;  %v547_v11 = vld [vmem:[%s965_s0 + $0x30] sm:$0xff]  ;;  %v542_v12 = vld [vmem:[%s965_s0 + $0x8] sm:$0xff] }
   0x5   :  { %v545_v10 = vld [vmem:[%s965_s0 + $0x20] sm:$0xff]  ;;  %v544_v13 = vld [vmem:[%s965_s0 + $0x18] sm:$0xff]  ;;  %v546_v14 = vld [vmem:[%s965_s0 + $0x28] sm:$0xff] }
   0x6   :  { %152 = vmatpush.bf16.msra.mxu0 %v555_v1  ;;  %646 = vmatpush.bf16.msra.mxu1 %v555_v1  ;;  %v548_v15 = vld [vmem:[%s965_s0 + $0x38] sm:$0xff]  ;;  %v781_v18 = vld [vmem:[%s964_s3] ss:$0 sm:$0xff]  ;;  %v630_v20 = vld [vmem:[%s966_s1 + $0x10] sm:$0xff]  }
   0x7   :  { %647 = vmatpush.bf16.msra.mxu2 %v555_v1  ;;  %648 = vmatpush.bf16.msra.mxu3 %v555_v1  ;;  %v558_v19 = vld [vmem:[%s966_s1] sm:$0xff]   ;;  %v568_v28 = vunpack.c.h.bf16 %v630_v20  ;;  %v567_v30 = vunpack.c.l.bf16 %v630_v20  ;;  %v634_v38 = vld [vmem:[%s966_s1 + $0x30] sm:$0xff]   ;;  %v809_v53 = vld [vmem:[%s966_s1 + $0x8] sm:$0xff]  }
   0x8   :  { %v559_v22 = vunpack.c.l.bf16 %v558_v19  ;;  %v560_v26 = vunpack.c.h.bf16 %v558_v19  ;;  %v632_v34 = vld [vmem:[%s966_s1 + $0x20] sm:$0xff]   ;;  %v583_v46 = vunpack.c.l.bf16 %v634_v38  ;;  %v584_v48 = vunpack.c.h.bf16 %v634_v38  ;;  %v819_v57 = vld [vmem:[%s966_s1 + $0x18] sm:$0xff]  }
   0x9   :  { %v575_v40 = vunpack.c.l.bf16 %v632_v34  ;;  %v576_v47 = vunpack.c.h.bf16 %v632_v34  ;;  %v563_v61 = vunpack.c.l.bf16 %v809_v53 }
   0xa   :  { %153 = vmatpush.bf16.msra.mxu0 %v554_v2  ;;  %649 = vmatpush.bf16.msra.mxu1 %v554_v2 }
   0xb   :  { %650 = vmatpush.bf16.msra.mxu2 %v554_v2  ;;  %651 = vmatpush.bf16.msra.mxu3 %v554_v2 }
   0xe   :  { %154 = vmatpush.bf16.msra.mxu0 %v553_v3  ;;  %652 = vmatpush.bf16.msra.mxu1 %v553_v3 }
   0xf   :  { %653 = vmatpush.bf16.msra.mxu2 %v553_v3  ;;  %654 = vmatpush.bf16.msra.mxu3 %v553_v3 }
  0x12   :  { %155 = vmatpush.bf16.msra.mxu0 %v552_v4  ;;  %655 = vmatpush.bf16.msra.mxu1 %v552_v4 }
  0x13   :  { %656 = vmatpush.bf16.msra.mxu2 %v552_v4  ;;  %657 = vmatpush.bf16.msra.mxu3 %v552_v4  ;;  %v571_v4 = vunpack.c.l.bf16 %v819_v57 }
  0x16   :  { %156 = vmatpush.bf16.msra.mxu0 %v551_v5  ;;  %658 = vmatpush.bf16.msra.mxu1 %v551_v5 }
  0x17   :  { %659 = vmatpush.bf16.msra.mxu2 %v551_v5  ;;  %660 = vmatpush.bf16.msra.mxu3 %v551_v5 }
  0x1a   :  { %157 = vmatpush.bf16.msra.mxu0 %v550_v6  ;;  %661 = vmatpush.bf16.msra.mxu1 %v550_v6 }
  0x1b   :  { %662 = vmatpush.bf16.msra.mxu2 %v550_v6  ;;  %663 = vmatpush.bf16.msra.mxu3 %v550_v6 }
  0x1e   :  { %158 = vmatpush.bf16.msra.mxu0 %v549_v7  ;;  %664 = vmatpush.bf16.msra.mxu1 %v549_v7 }
  0x1f   :  { %665 = vmatpush.bf16.msra.mxu2 %v549_v7  ;;  %666 = vmatpush.bf16.msra.mxu3 %v549_v7 }
  0x21   :  { %159 = vmatmul.bf16.vlgmr.msra.gmra.mxu0 %v541_v8  ;;  %169 = vmatmul.bf16.vlgmr.msra.gmra.mxu1 %v543_v9 }
  0x22   :  { %179 = vmatmul.bf16.vlgmr.msra.gmra.mxu2 %v545_v10  ;;  %189 = vmatmul.bf16.vlgmr.msra.gmra.mxu3 %v547_v11 }
  0x31   :  { %164 = vmatmul.bf16.gmra.mxu0 %v542_v12  ;;  %174 = vmatmul.bf16.gmra.mxu1 %v544_v13 }
  0x32   :  { %184 = vmatmul.bf16.gmra.mxu2 %v546_v14  ;;  %194 = vmatmul.bf16.gmra.mxu3 %v548_v15 }
  0x9e   :  { %v160_v16 = vpop.f32.mrf.mxu0  ;;  %v170_v17 = vpop.f32.mrf.mxu1 }
  0x9f   :  { %v161_v21 = vadd.f32 %v781_v18, %v160_v16  ;;  %v171_v29 = vadd.f32 %v781_v18, %v170_v17  ;;  %v633_v16 = vld [vmem:[%s966_s1 + $0x28] sm:$0xff]  }
  0xa1   :  { %v232_v33 = vadd.f32 %v559_v22, %v161_v21  ;;  %v236_v37 = vadd.f32 %v567_v30, %v171_v29  ;;  %v862_v29 = vld [vmem:[%s966_s1 + $0x38] sm:$0xff]  }
  0xa3   :  { %v248_v39 = vpack.c.bf16 %v232_v33, %v232_v33  ;;  %v252_v58 = vpack.c.bf16 %v236_v37, %v236_v37 }
  0xa5   :  { %v180_v23 = vpop.f32.mrf.mxu2  ;;  %v190_v24 = vpop.f32.mrf.mxu3  ;;  %v814_v55 = vunpack.c.l.bf16 %v248_v39  ;;  %v837_v8 = vunpack.c.l.bf16 %v252_v58 }
  0xa6   :  { %v162_v25 = vpop.f32.mrf.mxu0  ;;  %v172_v27 = vpop.f32.mrf.mxu1  ;;  %v181_v45 = vadd.f32 %v781_v18, %v180_v23  ;;  %v191_v49 = vadd.f32 %v781_v18, %v190_v24 }
  0xa7   :  { %v163_v31 = vadd.f32 %v781_v18, %v162_v25  ;;  %v173_v32 = vadd.f32 %v781_v18, %v172_v27  ;;  %v312_v5 = vmin.f32 %v814_v55, 0.0  ;;  %v316_v17 = vmin.f32 %v837_v8, 0.0 }
  0xa8   :  { %v240_v59 = vadd.f32 %v575_v40, %v181_v45  ;;  %v244_v62 = vadd.f32 %v583_v46, %v191_v49  ;;  %v579_v27 = vunpack.c.l.bf16 %v633_v16  ;;  %vm296_vm0 = vcmp.gt.f32.partialorder %v814_v55, 0.0 }
  0xa9   :  { %v233_v35 = vadd.f32 %v560_v26, %v163_v31  ;;  %v237_v36 = vadd.f32 %v568_v28, %v173_v32  ;;  %v328_v14 = vmul.f32 1.442695, %v312_v5  ;;  %v564_v31 = vunpack.c.h.bf16 %v809_v53 }
  0xaa   :  { %v256_v12 = vpack.c.bf16 %v240_v59, %v240_v59  ;;  %v260_v24 = vpack.c.bf16 %v244_v62, %v244_v62  ;;  %v336_v32 = vmul.f32 1.442695, %v316_v17  ;;  %vm300_vm3 = vcmp.gt.f32.partialorder %v837_v8, 0.0 }
  0xab   :  { %v592_v41 = vpack.c.bf16 %v233_v35, %v232_v33  ;;  %v602_v42 = vpack.c.bf16 %v237_v36, %v236_v37  ;;  %v249_v50 = vpack.c.bf16 %v233_v35, %v233_v35  ;;  %v253_v10 = vpack.c.bf16 %v237_v36, %v237_v36 }
  0xac   :  { %v853_v23 = vunpack.c.l.bf16 %v256_v12  ;;  %668 = vpow2.f32 %v328_v14  ;;  %v572_v35 = vunpack.c.h.bf16 %v819_v57  ;;  %v868_v37 = vunpack.c.l.bf16 %v260_v24 }
  0xad   :  { %v182_v43 = vpop.f32.mrf.mxu2  ;;  %v192_v44 = vpop.f32.mrf.mxu3  ;;  %593 = vst [vmem:[%s967_s4] sm:$0xff] %v592_v41   ;;  %v824_v63 = vunpack.c.l.bf16 %v249_v50  ;;  %v849_v20 = vunpack.c.l.bf16 %v253_v10 }
  0xae   :  { %v183_v51 = vadd.f32 %v781_v18, %v182_v43  ;;  %v193_v52 = vadd.f32 %v781_v18, %v192_v44  ;;  %637 = vst [vmem:[%s967_s4 + $0x10] sm:$0xff] %v602_v42   ;;  %v165_v54 = vpop.f32.mrf.mxu0  ;;  %v175_v56 = vpop.f32.mrf.mxu1  ;;  %v320_v36 = vmin.f32 %v853_v23, 0.0  ;;  %v587_v42 = vunpack.c.l.bf16 %v862_v29 }
  0xaf   :  { %v166_v1 = vadd.f32 %v781_v18, %v165_v54  ;;  %v176_v3 = vadd.f32 %v781_v18, %v175_v56  ;;  %v313_v9 = vmin.f32 %v824_v63, 0.0  ;;  %v317_v33 = vmin.f32 %v849_v20, 0.0 }
  0xb0   :  { %v821_v60 = vadd.f32 %v576_v47, %v183_v51  ;;  %v826_v0 = vadd.f32 %v584_v48, %v193_v52  ;;  %v580_v44 = vunpack.c.h.bf16 %v633_v16  ;;  %v588_v47 = vunpack.c.h.bf16 %v862_v29 }
  0xb1   :  { %v234_v11 = vadd.f32 %v563_v61, %v166_v1  ;;  %v843_v13 = vadd.f32 %v571_v4, %v176_v3  ;;  %v330_v19 = vmul.f32 1.442695, %v313_v9  ;;  %v338_v49 = vmul.f32 1.442695, %v317_v33 }
  0xb2   :  { %v612_v2 = vpack.c.bf16 %v821_v60, %v240_v59  ;;  %v622_v6 = vpack.c.bf16 %v826_v0, %v244_v62  ;;  %v257_v45 = vpack.c.bf16 %v821_v60, %v821_v60  ;;  %v669_v48 = vpop.eup %668  ;;  %v344_v52 = vmul.f32 1.442695, %v320_v36 }
  0xb3   :  { %v250_v15 = vpack.c.bf16 %v234_v11, %v234_v11  ;;  %v254_v25 = vpack.c.bf16 %v843_v13, %v843_v13  ;;  %670 = vpow2.f32 %v330_v19  ;;  %v324_v53 = vmin.f32 %v868_v37, 0.0 }
  0xb4   :  { %639 = vst [vmem:[%s967_s4 + $0x20] sm:$0xff] %v612_v2   ;;  %v525_v1 = vadd.f32 -1.0, %v669_v48  ;;  %v883_v2 = vunpack.c.l.bf16 %v257_v45  ;;  %v261_v3 = vpack.c.bf16 %v826_v0, %v826_v0  ;;  %vm297_vm1 = vcmp.gt.f32.partialorder %v824_v63, 0.0 }
  0xb5   :  { %v185_v7 = vpop.f32.mrf.mxu2  ;;  %641 = vst [vmem:[%s967_s4 + $0x30] sm:$0xff] %v622_v6   ;;  %v851_v21 = vunpack.c.l.bf16 %v250_v15  ;;  %v195_v22 = vpop.f32.mrf.mxu3  ;;  %v870_v39 = vunpack.c.l.bf16 %v254_v25  ;;  %vm301_vm4 = vcmp.gt.f32.partialorder %v849_v20, 0.0  ;;  %vm304_vm8 = vcmp.gt.f32.partialorder %v853_v23, 0.0 }
  0xb6   :  { %v186_v26 = vadd.f32 %v781_v18, %v185_v7  ;;  %v167_v30 = vpop.f32.mrf.mxu0  ;;  %v177_v34 = vpop.f32.mrf.mxu1  ;;  %v196_v59 = vadd.f32 %v781_v18, %v195_v22  ;;  %v908_v29 = vunpack.c.l.bf16 %v261_v3  ;;  %vm305_vm9 = vcmp.gt.f32.partialorder %v883_v2, 0.0 }
  0xb7   :  { %v314_v28 = vmin.f32 %v851_v21, 0.0  ;;  %v168_v43 = vadd.f32 %v781_v18, %v167_v30  ;;  %v178_v46 = vadd.f32 %v781_v18, %v177_v34  ;;  %v318_v54 = vmin.f32 %v870_v39, 0.0 }
  0xb8   :  { %v242_v41 = vadd.f32 %v579_v27, %v186_v26  ;;  %v246_v16 = vadd.f32 %v587_v42, %v196_v59  ;;  %vm298_vm2 = vcmp.gt.f32.partialorder %v851_v21, 0.0  ;;  %v376_v34 = vsel %vm296_vm0, %v814_v55, %v525_v1 }
  0xb9   :  { %v332_v38 = vmul.f32 1.442695, %v314_v28  ;;  %v235_v50 = vadd.f32 %v564_v31, %v168_v43  ;;  %v239_v56 = vadd.f32 %v572_v35, %v178_v46  ;;  %v671_v57 = vpop.eup %670  ;;  %v325_v43 = vmin.f32 %v908_v29, 0.0 }
  0xba   :  { %v258_v58 = vpack.c.bf16 %v242_v41, %v242_v41  ;;  %v526_v10 = vadd.f32 -1.0, %v671_v57  ;;  %vm302_vm6 = vcmp.gt.f32.partialorder %v870_v39, 0.0  ;;  %vm308_vm11 = vcmp.gt.f32.partialorder %v868_v37, 0.0 }
  0xbb   :  { %672 = vpow2.f32 %v332_v38  ;;  %v251_v60 = vpack.c.bf16 %v235_v50, %v235_v50  ;;  %v597_v61 = vpack.c.bf16 %v235_v50, %v234_v11  ;;  %v255_v4 = vpack.c.bf16 %v239_v56, %v239_v56 }
  0xbc   :  { %674 = vpow2.f32 %v336_v32  ;;  %v607_v6 = vpack.c.bf16 %v239_v56, %v843_v13  ;;  %v340_v11 = vmul.f32 1.442695, %v318_v54  ;;  %v896_v0 = vunpack.c.l.bf16 %v258_v58 }
  0xbd   :  { %v187_v40 = vpop.f32.mrf.mxu2  ;;  %v197_v62 = vpop.f32.mrf.mxu3  ;;  %676 = vpow2.f32 %v338_v49  ;;  %636 = vst [vmem:[%s967_s4 + $0x8] sm:$0xff] %v597_v61   ;;  %v890_v5 = vunpack.c.l.bf16 %v251_v60  ;;  %v893_v12 = vunpack.c.l.bf16 %v255_v4  ;;  %v321_v13 = vmin.f32 %v883_v2, 0.0 }
  0xbe   :  { %v188_v51 = vadd.f32 %v781_v18, %v187_v40  ;;  %v198_v14 = vadd.f32 %v781_v18, %v197_v62  ;;  %638 = vst [vmem:[%s967_s4 + $0x18] sm:$0xff] %v607_v6   ;;  %v377_v28 = vsel %vm297_vm1, %v824_v63, %v526_v10  ;;  %678 = vpow2.f32 %v340_v11 }
  0xbf   :  { %v315_v17 = vmin.f32 %v890_v5, 0.0  ;;  %v319_v24 = vmin.f32 %v893_v12, 0.0  ;;  %v322_v31 = vmin.f32 %v896_v0, 0.0  ;;  %v262_v32 = vpack.c.bf16 %v246_v16, %v246_v16 }
  0xc0   :  { %v243_v7 = vadd.f32 %v580_v44, %v188_v51  ;;  %v247_v27 = vadd.f32 %v588_v47, %v198_v14  ;;  %v346_v63 = vmul.f32 1.442695, %v321_v13  ;;  %v414_v42 = vmul.f32 %v377_v28, %v377_v28 }
  0xc1   :  { %v673_v9 = vpop.eup %672  ;;  %v334_v18 = vmul.f32 1.442695, %v315_v17  ;;  %v342_v33 = vmul.f32 1.442695, %v319_v24  ;;  %v352_v44 = vmul.f32 1.442695, %v324_v53  ;;  %v922_v46 = vunpack.c.l.bf16 %v262_v32 }
  0xc2   :  { %v675_v15 = vpop.eup %674  ;;  %v259_v19 = vpack.c.bf16 %v243_v7, %v243_v7  ;;  %v527_v22 = vadd.f32 -1.0, %v673_v9  ;;  %v617_v25 = vpack.c.bf16 %v243_v7, %v242_v41  ;;  %v263_v38 = vpack.c.bf16 %v247_v27, %v247_v27 }
  0xc3   :  { %v677_v30 = vpop.eup %676  ;;  %680 = vpow2.f32 %v334_v18  ;;  %v627_v40 = vpack.c.bf16 %v247_v27, %v246_v16  ;;  %v529_v41 = vadd.f32 -1.0, %v675_v15  ;;  %v348_v45 = vmul.f32 1.442695, %v322_v31 }
  0xc4   :  { %v905_v26 = vunpack.c.l.bf16 %v259_v19  ;;  %640 = vst [vmem:[%s967_s4 + $0x28] sm:$0xff] %v617_v25   ;;  %v378_v35 = vsel %vm298_vm2, %v851_v21, %v527_v22  ;;  %682 = vpow2.f32 %v342_v33  ;;  %v679_v55 = vpop.eup %678  ;;  %v413_v21 = vmul.f32 %v376_v34, %v376_v34 }
  0xc5   :  { %684 = vpow2.f32 %v344_v52  ;;  %642 = vst [vmem:[%s967_s4 + $0x38] sm:$0xff] %v627_v40   ;;  %v530_v47 = vadd.f32 -1.0, %v677_v30  ;;  %v415_v48 = vmul.f32 %v378_v35, %v378_v35  ;;  %v392_v50 = vadd.f32 %v377_v28, %v376_v34 }
  0xc6   :  { %v323_v36 = vmin.f32 %v905_v26, 0.0  ;;  %686 = vpow2.f32 %v346_v63  ;;  %v928_v54 = vunpack.c.l.bf16 %v263_v38  ;;  %v380_v52 = vsel %vm300_vm3, %v837_v8, %v529_v41 }
  0xc7   :  { %v429_v53 = vadd.f32 %v414_v42, %v413_v21  ;;  %v354_v56 = vmul.f32 1.442695, %v325_v43  ;;  %v393_v59 = vadd.f32 %v392_v50, %v378_v35  ;;  %688 = vpow2.f32 %v348_v45 }
  0xc8   :  { %v350_v51 = vmul.f32 1.442695, %v323_v36  ;;  %v326_v60 = vmin.f32 %v922_v46, 0.0  ;;  %vm299_vm5 = vcmp.gt.f32.partialorder %v890_v5, 0.0  ;;  %v381_v61 = vsel %vm301_vm4, %v849_v20, %v530_v47 }
  0xc9   :  { %v681_v49 = vpop.eup %680  ;;  %v430_v62 = vadd.f32 %v429_v53, %v415_v48  ;;  %v531_v1 = vadd.f32 -1.0, %v679_v55  ;;  %v327_v7 = vmin.f32 %v928_v54, 0.0  ;;  %v417_v9 = vmul.f32 %v380_v52, %v380_v52 }
  0xca   :  { %v528_v57 = vadd.f32 -1.0, %v681_v49  ;;  %v683_v58 = vpop.eup %682  ;;  %690 = vpow2.f32 %v350_v51  ;;  %v356_v14 = vmul.f32 1.442695, %v326_v60  ;;  %v418_v17 = vmul.f32 %v381_v61, %v381_v61 }
  0xcb   :  { %v685_v4 = vpop.eup %684  ;;  %692 = vpow2.f32 %v352_v44  ;;  %v532_v10 = vadd.f32 -1.0, %v683_v58  ;;  %vm303_vm7 = vcmp.gt.f32.partialorder %v893_v12, 0.0  ;;  %v358_v24 = vmul.f32 1.442695, %v327_v7 }
  0xcc   :  { %v379_v3 = vsel %vm299_vm5, %v890_v5, %v528_v57  ;;  %v687_v11 = vpop.eup %686  ;;  %v533_v20 = vadd.f32 -1.0, %v685_v4  ;;  %694 = vpow2.f32 %v354_v56  ;;  %v382_v5 = vsel %vm302_vm6, %v870_v39, %v531_v1 }
  0xcd   :  { %v394_v8 = vadd.f32 %v393_v59, %v379_v3  ;;  %v416_v6 = vmul.f32 %v379_v3, %v379_v3  ;;  %v689_v19 = vpop.eup %688  ;;  %v534_v25 = vadd.f32 -1.0, %v687_v11  ;;  %v383_v18 = vsel %vm303_vm7, %v893_v12, %v532_v10 }
  0xce   :  { %v419_v28 = vmul.f32 %v382_v5, %v382_v5  ;;  %696 = vpow2.f32 %v356_v14  ;;  %v384_v33 = vsel %vm304_vm8, %v853_v23, %v533_v20  ;;  %v535_v39 = vadd.f32 -1.0, %v689_v19 }
  0xcf   :  { %v395_v15 = vadd.f32 %v394_v8, %v380_v52  ;;  %v431_v16 = vadd.f32 %v430_v62, %v416_v6  ;;  %v420_v63 = vmul.f32 %v383_v18, %v383_v18  ;;  %698 = vpow2.f32 %v358_v24 }
  0xd0   :  { %v691_v27 = vpop.eup %690  ;;  %v385_v38 = vsel %vm305_vm9, %v883_v2, %v534_v25  ;;  %v421_v12 = vmul.f32 %v384_v33, %v384_v33  ;;  %vm306_vm10 = vcmp.gt.f32.partialorder %v896_v0, 0.0  ;;  %vm307_vm12 = vcmp.gt.f32.partialorder %v905_v26, 0.0 }
  0xd1   :  { %v432_v13 = vadd.f32 %v431_v16, %v417_v9  ;;  %v396_v22 = vadd.f32 %v395_v15, %v381_v61  ;;  %v693_v32 = vpop.eup %692  ;;  %v536_v40 = vadd.f32 -1.0, %v691_v27  ;;  %v386_v23 = vsel %vm306_vm10, %v896_v0, %v535_v39 }
  0xd2   :  { %v695_v36 = vpop.eup %694  ;;  %v537_v43 = vadd.f32 -1.0, %v693_v32  ;;  %v422_v45 = vmul.f32 %v385_v38, %v385_v38  ;;  %v423_v49 = vmul.f32 %v386_v23, %v386_v23  ;;  %vm309_vm13 = vcmp.gt.f32.partialorder %v908_v29, 0.0 }
  0xd3   :  { %v397_v30 = vadd.f32 %v396_v22, %v382_v5  ;;  %v433_v31 = vadd.f32 %v432_v13, %v418_v17  ;;  %v538_v47 = vadd.f32 -1.0, %v695_v36  ;;  %v387_v2 = vsel %vm307_vm12, %v905_v26, %v536_v40 }
  0xd4   :  { %v697_v44 = vpop.eup %696  ;;  %v388_v52 = vsel %vm308_vm11, %v868_v37, %v537_v43  ;;  %vm310_vm14 = vcmp.gt.f32.partialorder %v922_v46, 0.0  ;;  %v424_v56 = vmul.f32 %v387_v2, %v387_v2  ;;  %vm311_vm15 = vcmp.gt.f32.partialorder %v928_v54, 0.0 }
  0xd5   :  { %v398_v34 = vadd.f32 %v397_v30, %v383_v18  ;;  %v434_v35 = vadd.f32 %v433_v31, %v419_v28  ;;  %v699_v48 = vpop.eup %698  ;;  %v539_v53 = vadd.f32 -1.0, %v697_v44  ;;  %v389_v58 = vsel %vm309_vm13, %v908_v29, %v538_v47 }
  0xd6   :  { %v540_v59 = vadd.f32 -1.0, %v699_v48  ;;  %v425_v60 = vmul.f32 %v388_v52, %v388_v52  ;;  %v426_v1 = vmul.f32 %v389_v58, %v389_v58  ;;  %vm450_vm0 = vcmask 1040384  }
  0xd7   :  { %v399_v41 = vadd.f32 %v398_v34, %v384_v33  ;;  %v435_v42 = vadd.f32 %v434_v35, %v420_v63  ;;  %v390_v62 = vsel %vm310_vm14, %v922_v46, %v539_v53 }
  0xd8   :  { %v391_v4 = vsel %vm311_vm15, %v928_v54, %v540_v59  ;;  %v427_v8 = vmul.f32 %v390_v62, %v390_v62 }
  0xd9   :  { %v436_v55 = vadd.f32 %v435_v42, %v421_v12  ;;  %v400_v21 = vadd.f32 %v399_v41, %v385_v38  ;;  %v428_v10 = vmul.f32 %v391_v4, %v391_v4 }
  0xdb   :  { %v401_v50 = vadd.f32 %v400_v21, %v386_v23  ;;  %v437_v51 = vadd.f32 %v436_v55, %v422_v45 }
  0xdd   :  { %v402_v0 = vadd.f32 %v401_v50, %v387_v2  ;;  %v438_v57 = vadd.f32 %v437_v51, %v423_v49 }
  0xdf   :  { %v403_v61 = vadd.f32 %v402_v0, %v388_v52  ;;  %v439_v26 = vadd.f32 %v438_v57, %v424_v56 }
  0xe1   :  { %v440_v3 = vadd.f32 %v439_v26, %v425_v60  ;;  %v404_v37 = vadd.f32 %v403_v61, %v389_v58 }
  0xe3   :  { %v405_v6 = vadd.f32 %v404_v37, %v390_v62  ;;  %v441_v7 = vadd.f32 %v440_v3, %v426_v1 }
  0xe5   :  { %v406_v9 = vadd.f32 %v405_v6, %v391_v4  ;;  %v442_v11 = vadd.f32 %v441_v7, %v427_v8 }
  0xe7   :  { %v407_v29 = vrot.slane %v406_v9, 4  ;;  %v443_v14 = vadd.f32 %v442_v11, %v428_v10 }
  0xe9   :  { %v408_v15 = vadd.f32 %v407_v29, %v406_v9  ;;  %v444_v16 = vrot.slane %v443_v14, 4 }
  0xeb   :  { %v409_v20 = vrot.slane %v408_v15, 2  ;;  %v445_v17 = vadd.f32 %v444_v16, %v443_v14 }
  0xed   :  { %v410_v46 = vadd.f32 %v409_v20, %v408_v15  ;;  %v446_v5 = vrot.slane %v445_v17, 2 }
  0xef   :  { %v411_v19 = vrot.slane %v410_v46, 1  ;;  %v447_v13 = vadd.f32 %v446_v5, %v445_v17 }
  0xf1   :  { %v448_v22 = vrot.slane %v447_v13, 1  ;;  %v412_v24 = vadd.f32 %v411_v19, %v410_v46 }
  0xf3   :  { %v449_v54 = vadd.f32 %v448_v22, %v447_v13 }
  0xf5   :  { %v451_v25 = vsel %vm450_vm0, %v412_v24, %v449_v54 }
  0xf6   :  { %452 = vst [vmem:[%s968_s5] sm:$0x3] %v451_v25 }

// kernel: mlp_model_forward.10
= control target key start
LH: loop header
LB: loop body
LE: loop exit
PB: predicated region body
PF: predicated region fallthrough
CT: control target
= control target key end

     0   :  { %vm354_vm0 = vcmask 1040384   ;;  %s736_s2 = inlined_call_operand.vmem [shape: bf16[128,128], index: 2, kind: input, shape index: {}]   ;;  %s737_s3 = inlined_call_operand.vmem [shape: f32[1,128], index: 3, kind: input, shape index: {}]   ;;  %s738_s0 = inlined_call_operand.vmem [shape: bf16[128,128], index: 0, kind: input, shape index: {}]   ;;  %s739_s1 = inlined_call_operand.vmem [shape: bf16[128,128], index: 1, kind: input, shape index: {}]   ;;  %s740_s4 = inlined_call_operand.vmem [shape: bf16[128,128], index: 4, kind: output, shape index: {0}]   ;;  %s741_s5 = inlined_call_operand.vmem [shape: f32[1,2,128], index: 5, kind: output, shape index: {1}]  }
   0x1   :  { %v444_v0 = vld [vmem:[%s736_s2 + $0x38] sm:$0xff]  ;;  %v443_v1 = vld [vmem:[%s736_s2 + $0x30] sm:$0xff]  ;;  %v442_v2 = vld [vmem:[%s736_s2 + $0x28] sm:$0xff] }
   0x2   :  { %151 = vmatpush.bf16.msra.mxu0 %v444_v0  ;;  %531 = vmatpush.bf16.msra.mxu1 %v444_v0  ;;  %v441_v3 = vld [vmem:[%s736_s2 + $0x20] sm:$0xff]  ;;  %v440_v4 = vld [vmem:[%s736_s2 + $0x18] sm:$0xff]  ;;  %v439_v5 = vld [vmem:[%s736_s2 + $0x10] sm:$0xff] }
   0x3   :  { %532 = vmatpush.bf16.msra.mxu2 %v444_v0  ;;  %533 = vmatpush.bf16.msra.mxu3 %v444_v0  ;;  %v438_v6 = vld [vmem:[%s736_s2 + $0x8] sm:$0xff]  ;;  %v437_v7 = vld [vmem:[%s736_s2] sm:$0xff]  ;;  %v431_v9 = vld [vmem:[%s738_s0 + $0x10] sm:$0xff] }
   0x4   :  { %v429_v8 = vld [vmem:[%s738_s0] sm:$0xff]  ;;  %v435_v11 = vld [vmem:[%s738_s0 + $0x30] sm:$0xff]  ;;  %v430_v12 = vld [vmem:[%s738_s0 + $0x8] sm:$0xff] }
   0x5   :  { %v433_v10 = vld [vmem:[%s738_s0 + $0x20] sm:$0xff]  ;;  %v432_v13 = vld [vmem:[%s738_s0 + $0x18] sm:$0xff]  ;;  %v434_v14 = vld [vmem:[%s738_s0 + $0x28] sm:$0xff] }
   0x6   :  { %152 = vmatpush.bf16.msra.mxu0 %v443_v1  ;;  %534 = vmatpush.bf16.msra.mxu1 %v443_v1  ;;  %v436_v15 = vld [vmem:[%s738_s0 + $0x38] sm:$0xff]  ;;  %v518_v18 = vld [vmem:[%s739_s1 + $0x10] sm:$0xff]   ;;  %v640_v19 = vld [vmem:[%s737_s3] ss:$0 sm:$0xff] }
   0x7   :  { %535 = vmatpush.bf16.msra.mxu2 %v443_v1  ;;  %536 = vmatpush.bf16.msra.mxu3 %v443_v1  ;;  %v446_v20 = vld [vmem:[%s739_s1] sm:$0xff]   ;;  %v455_v22 = vunpack.c.l.bf16 %v518_v18  ;;  %v456_v26 = vunpack.c.h.bf16 %v518_v18  ;;  %v522_v35 = vld [vmem:[%s739_s1 + $0x30] sm:$0xff]   ;;  %v517_v41 = vld [vmem:[%s739_s1 + $0x8] sm:$0xff]  }
   0x8   :  { %v447_v24 = vunpack.c.l.bf16 %v446_v20  ;;  %v448_v25 = vunpack.c.h.bf16 %v446_v20  ;;  %v520_v34 = vld [vmem:[%s739_s1 + $0x20] sm:$0xff]   ;;  %v471_v45 = vunpack.c.l.bf16 %v522_v35  ;;  %v472_v47 = vunpack.c.h.bf16 %v522_v35  ;;  %v519_v58 = vld [vmem:[%s739_s1 + $0x18] sm:$0xff]  }
   0x9   :  { %v463_v40 = vunpack.c.l.bf16 %v520_v34  ;;  %v464_v46 = vunpack.c.h.bf16 %v520_v34  ;;  %v451_v48 = vunpack.c.l.bf16 %v517_v41  ;;  %v523_v18 = vld [vmem:[%s739_s1 + $0x38] sm:$0xff]  }
   0xa   :  { %153 = vmatpush.bf16.msra.mxu0 %v442_v2  ;;  %537 = vmatpush.bf16.msra.mxu1 %v442_v2 }
   0xb   :  { %538 = vmatpush.bf16.msra.mxu2 %v442_v2  ;;  %539 = vmatpush.bf16.msra.mxu3 %v442_v2 }
   0xe   :  { %154 = vmatpush.bf16.msra.mxu0 %v441_v3  ;;  %540 = vmatpush.bf16.msra.mxu1 %v441_v3 }
   0xf   :  { %541 = vmatpush.bf16.msra.mxu2 %v441_v3  ;;  %542 = vmatpush.bf16.msra.mxu3 %v441_v3  ;;  %v459_v3 = vunpack.c.l.bf16 %v519_v58 }
  0x12   :  { %155 = vmatpush.bf16.msra.mxu0 %v440_v4  ;;  %543 = vmatpush.bf16.msra.mxu1 %v440_v4 }
  0x13   :  { %544 = vmatpush.bf16.msra.mxu2 %v440_v4  ;;  %545 = vmatpush.bf16.msra.mxu3 %v440_v4 }
  0x16   :  { %156 = vmatpush.bf16.msra.mxu0 %v439_v5  ;;  %546 = vmatpush.bf16.msra.mxu1 %v439_v5 }
  0x17   :  { %547 = vmatpush.bf16.msra.mxu2 %v439_v5  ;;  %548 = vmatpush.bf16.msra.mxu3 %v439_v5 }
  0x1a   :  { %157 = vmatpush.bf16.msra.mxu0 %v438_v6  ;;  %549 = vmatpush.bf16.msra.mxu1 %v438_v6 }
  0x1b   :  { %550 = vmatpush.bf16.msra.mxu2 %v438_v6  ;;  %551 = vmatpush.bf16.msra.mxu3 %v438_v6 }
  0x1e   :  { %158 = vmatpush.bf16.msra.mxu0 %v437_v7  ;;  %552 = vmatpush.bf16.msra.mxu1 %v437_v7 }
  0x1f   :  { %553 = vmatpush.bf16.msra.mxu2 %v437_v7  ;;  %554 = vmatpush.bf16.msra.mxu3 %v437_v7  ;;  %v452_v7 = vunpack.c.h.bf16 %v517_v41 }
  0x21   :  { %159 = vmatmul.bf16.vlgmr.msra.gmra.mxu0 %v429_v8  ;;  %169 = vmatmul.bf16.vlgmr.msra.gmra.mxu1 %v431_v9  ;;  %v460_v8 = vunpack.c.h.bf16 %v519_v58 }
  0x22   :  { %179 = vmatmul.bf16.vlgmr.msra.gmra.mxu2 %v433_v10  ;;  %189 = vmatmul.bf16.vlgmr.msra.gmra.mxu3 %v435_v11  ;;  %v521_v10 = vld [vmem:[%s739_s1 + $0x28] sm:$0xff]  }
  0x31   :  { %164 = vmatmul.bf16.gmra.mxu0 %v430_v12  ;;  %174 = vmatmul.bf16.gmra.mxu1 %v432_v13 }
  0x32   :  { %184 = vmatmul.bf16.gmra.mxu2 %v434_v14  ;;  %194 = vmatmul.bf16.gmra.mxu3 %v436_v15 }
  0x9e   :  { %v160_v16 = vpop.f32.mrf.mxu0  ;;  %v170_v17 = vpop.f32.mrf.mxu1 }
  0x9f   :  { %v171_v21 = vadd.f32 %v640_v19, %v170_v17  ;;  %v161_v23 = vadd.f32 %v640_v19, %v160_v16 }
  0xa1   :  { %v647_v31 = vadd.f32 %v455_v22, %v171_v21  ;;  %v232_v36 = vadd.f32 %v447_v24, %v161_v23  ;;  %v467_v22 = vunpack.c.l.bf16 %v521_v10 }
  0xa3   :  { %v248_v61 = vpack.c.bf16 %v232_v36, %v232_v36  ;;  %v252_v20 = vpack.c.bf16 %v647_v31, %v647_v31 }
  0xa5   :  { %v180_v27 = vpop.f32.mrf.mxu2  ;;  %v190_v28 = vpop.f32.mrf.mxu3  ;;  %v280_v5 = vunpack.c.l.bf16 %v248_v61 }
  0xa6   :  { %v162_v29 = vpop.f32.mrf.mxu0  ;;  %v172_v30 = vpop.f32.mrf.mxu1  ;;  %v181_v39 = vadd.f32 %v640_v19, %v180_v27  ;;  %v191_v44 = vadd.f32 %v640_v19, %v190_v28 }
  0xa7   :  { %v163_v32 = vadd.f32 %v640_v19, %v162_v29  ;;  %v173_v33 = vadd.f32 %v640_v19, %v172_v30  ;;  %v317_v23 = vmul.f32 %v280_v5, %v280_v5  ;;  %v475_v30 = vunpack.c.l.bf16 %v523_v18 }
  0xa8   :  { %v672_v51 = vadd.f32 %v463_v40, %v181_v39  ;;  %v677_v57 = vadd.f32 %v471_v45, %v191_v44  ;;  %v476_v39 = vunpack.c.h.bf16 %v523_v18 }
  0xa9   :  { %v233_v37 = vadd.f32 %v448_v25, %v163_v32  ;;  %v657_v38 = vadd.f32 %v456_v26, %v173_v33 }
  0xab   :  { %v480_v42 = vpack.c.bf16 %v233_v37, %v232_v36  ;;  %v490_v43 = vpack.c.bf16 %v657_v38, %v647_v31  ;;  %v249_v62 = vpack.c.bf16 %v233_v37, %v233_v37  ;;  %v253_v21 = vpack.c.bf16 %v657_v38, %v657_v38 }
  0xac   :  { %v284_v36 = vunpack.c.l.bf16 %v252_v20  ;;  %v468_v37 = vunpack.c.h.bf16 %v521_v10 }
  0xad   :  { %481 = vst [vmem:[%s740_s4] sm:$0xff] %v480_v42   ;;  %v182_v49 = vpop.f32.mrf.mxu2  ;;  %v192_v50 = vpop.f32.mrf.mxu3  ;;  %v281_v6 = vunpack.c.l.bf16 %v249_v62  ;;  %v285_v31 = vunpack.c.l.bf16 %v253_v21 }
  0xae   :  { %525 = vst [vmem:[%s740_s4 + $0x10] sm:$0xff] %v490_v43   ;;  %v165_v52 = vpop.f32.mrf.mxu0  ;;  %v175_v53 = vpop.f32.mrf.mxu1  ;;  %v183_v54 = vadd.f32 %v640_v19, %v182_v49  ;;  %v193_v55 = vadd.f32 %v640_v19, %v192_v50  ;;  %v321_v58 = vmul.f32 %v284_v36, %v284_v36 }
  0xaf   :  { %v166_v56 = vadd.f32 %v640_v19, %v165_v52  ;;  %v176_v2 = vadd.f32 %v640_v19, %v175_v53  ;;  %v318_v24 = vmul.f32 %v281_v6, %v281_v6  ;;  %v296_v27 = vadd.f32 %v281_v6, %v280_v5 }
  0xb0   :  { %v682_v59 = vadd.f32 %v464_v46, %v183_v54  ;;  %v684_v60 = vadd.f32 %v472_v47, %v193_v55  ;;  %v256_v54 = vpack.c.bf16 %v672_v51, %v672_v51 }
  0xb1   :  { %v234_v63 = vadd.f32 %v451_v48, %v166_v56  ;;  %v238_v15 = vadd.f32 %v459_v3, %v176_v2  ;;  %v333_v38 = vadd.f32 %v318_v24, %v317_v23  ;;  %v322_v3 = vmul.f32 %v285_v31, %v285_v31 }
  0xb2   :  { %v500_v0 = vpack.c.bf16 %v682_v59, %v672_v51  ;;  %v510_v4 = vpack.c.bf16 %v684_v60, %v677_v57  ;;  %v288_v6 = vunpack.c.l.bf16 %v256_v54  ;;  %v261_v20 = vpack.c.bf16 %v684_v60, %v684_v60 }
  0xb3   :  { %v250_v1 = vpack.c.bf16 %v234_v63, %v234_v63  ;;  %v254_v41 = vpack.c.bf16 %v238_v15, %v238_v15 }
  0xb4   :  { %527 = vst [vmem:[%s740_s4 + $0x20] sm:$0xff] %v500_v0   ;;  %v257_v0 = vpack.c.bf16 %v682_v59, %v682_v59 }
  0xb5   :  { %v185_v9 = vpop.f32.mrf.mxu2  ;;  %529 = vst [vmem:[%s740_s4 + $0x30] sm:$0xff] %v510_v4   ;;  %v195_v11 = vpop.f32.mrf.mxu3  ;;  %v282_v14 = vunpack.c.l.bf16 %v250_v1  ;;  %v286_v61 = vunpack.c.l.bf16 %v254_v41 }
  0xb6   :  { %v167_v12 = vpop.f32.mrf.mxu0  ;;  %v177_v13 = vpop.f32.mrf.mxu1  ;;  %v186_v28 = vadd.f32 %v640_v19, %v185_v9  ;;  %v196_v29 = vadd.f32 %v640_v19, %v195_v11  ;;  %v289_v59 = vunpack.c.l.bf16 %v257_v0 }
  0xb7   :  { %v168_v16 = vadd.f32 %v640_v19, %v167_v12  ;;  %v178_v17 = vadd.f32 %v640_v19, %v177_v13  ;;  %v319_v32 = vmul.f32 %v282_v14, %v282_v14  ;;  %v297_v40 = vadd.f32 %v296_v27, %v282_v14 }
  0xb8   :  { %v242_v45 = vadd.f32 %v467_v22, %v186_v28  ;;  %v246_v47 = vadd.f32 %v475_v30, %v196_v29  ;;  %v323_v51 = vmul.f32 %v286_v61, %v286_v61  ;;  %v260_v14 = vpack.c.bf16 %v677_v57, %v677_v57 }
  0xb9   :  { %v235_v25 = vadd.f32 %v452_v7, %v168_v16  ;;  %v239_v26 = vadd.f32 %v460_v8, %v178_v17  ;;  %v334_v49 = vadd.f32 %v333_v38, %v319_v32  ;;  %v326_v21 = vmul.f32 %v289_v59, %v289_v59 }
  0xba   :  { %v258_v9 = vpack.c.bf16 %v242_v45, %v242_v45  ;;  %v262_v29 = vpack.c.bf16 %v246_v47, %v246_v47  ;;  %v293_v30 = vunpack.c.l.bf16 %v261_v20 }
  0xbb   :  { %v251_v33 = vpack.c.bf16 %v235_v25, %v235_v25  ;;  %v485_v34 = vpack.c.bf16 %v235_v25, %v234_v63  ;;  %v495_v35 = vpack.c.bf16 %v239_v26, %v238_v15  ;;  %v255_v53 = vpack.c.bf16 %v239_v26, %v239_v26 }
  0xbc   :  { %v325_v15 = vmul.f32 %v288_v6, %v288_v6  ;;  %v290_v18 = vunpack.c.l.bf16 %v258_v9  ;;  %v292_v25 = vunpack.c.l.bf16 %v260_v14 }
  0xbd   :  { %524 = vst [vmem:[%s740_s4 + $0x8] sm:$0xff] %v485_v34   ;;  %v283_v42 = vunpack.c.l.bf16 %v251_v33  ;;  %v187_v43 = vpop.f32.mrf.mxu2  ;;  %v197_v44 = vpop.f32.mrf.mxu3  ;;  %v287_v4 = vunpack.c.l.bf16 %v255_v53 }
  0xbe   :  { %526 = vst [vmem:[%s740_s4 + $0x18] sm:$0xff] %v495_v35   ;;  %v188_v46 = vadd.f32 %v640_v19, %v187_v43  ;;  %v198_v48 = vadd.f32 %v640_v19, %v197_v44  ;;  %v327_v27 = vmul.f32 %v290_v18, %v290_v18  ;;  %v329_v35 = vmul.f32 %v292_v25, %v292_v25 }
  0xbf   :  { %v298_v50 = vadd.f32 %v297_v40, %v283_v42  ;;  %v320_v52 = vmul.f32 %v283_v42, %v283_v42  ;;  %v324_v11 = vmul.f32 %v287_v4, %v287_v4 }
  0xc0   :  { %v243_v55 = vadd.f32 %v468_v37, %v188_v46  ;;  %v247_v56 = vadd.f32 %v476_v39, %v198_v48  ;;  %v294_v37 = vunpack.c.l.bf16 %v262_v29  ;;  %v330_v39 = vmul.f32 %v293_v30, %v293_v30 }
  0xc1   :  { %v299_v62 = vadd.f32 %v298_v50, %v284_v36  ;;  %v335_v63 = vadd.f32 %v334_v49, %v320_v52 }
  0xc2   :  { %v505_v1 = vpack.c.bf16 %v243_v55, %v242_v45  ;;  %v515_v2 = vpack.c.bf16 %v247_v56, %v246_v47  ;;  %v259_v13 = vpack.c.bf16 %v243_v55, %v243_v55  ;;  %v263_v34 = vpack.c.bf16 %v247_v56, %v247_v56 }
  0xc3   :  { %v336_v19 = vadd.f32 %v335_v63, %v321_v58  ;;  %v300_v5 = vadd.f32 %v299_v62, %v285_v31  ;;  %v331_v42 = vmul.f32 %v294_v37, %v294_v37 }
  0xc4   :  { %528 = vst [vmem:[%s740_s4 + $0x28] sm:$0xff] %v505_v1   ;;  %v291_v24 = vunpack.c.l.bf16 %v259_v13  ;;  %v295_v40 = vunpack.c.l.bf16 %v263_v34 }
  0xc5   :  { %v301_v7 = vadd.f32 %v300_v5, %v286_v61  ;;  %v337_v8 = vadd.f32 %v336_v19, %v322_v3  ;;  %530 = vst [vmem:[%s740_s4 + $0x38] sm:$0xff] %v515_v2  }
  0xc6   :  { %v328_v57 = vmul.f32 %v291_v24, %v291_v24  ;;  %v332_v46 = vmul.f32 %v295_v40, %v295_v40 }
  0xc7   :  { %v302_v10 = vadd.f32 %v301_v7, %v287_v4  ;;  %v338_v12 = vadd.f32 %v337_v8, %v323_v51 }
  0xc9   :  { %v303_v16 = vadd.f32 %v302_v10, %v288_v6  ;;  %v339_v17 = vadd.f32 %v338_v12, %v324_v11 }
  0xcb   :  { %v340_v22 = vadd.f32 %v339_v17, %v325_v15  ;;  %v304_v23 = vadd.f32 %v303_v16, %v289_v59 }
  0xcd   :  { %v305_v26 = vadd.f32 %v304_v23, %v290_v18  ;;  %v341_v28 = vadd.f32 %v340_v22, %v326_v21 }
  0xcf   :  { %v342_v32 = vadd.f32 %v341_v28, %v327_v27  ;;  %v306_v33 = vadd.f32 %v305_v26, %v291_v24 }
  0xd1   :  { %v307_v36 = vadd.f32 %v306_v33, %v292_v25  ;;  %v343_v31 = vadd.f32 %v342_v32, %v328_v57 }
  0xd3   :  { %v344_v60 = vadd.f32 %v343_v31, %v329_v35  ;;  %v308_v38 = vadd.f32 %v307_v36, %v293_v30 }
  0xd5   :  { %v309_v41 = vadd.f32 %v308_v38, %v294_v37  ;;  %v345_v43 = vadd.f32 %v344_v60, %v330_v39 }
  0xd7   :  { %v346_v44 = vadd.f32 %v345_v43, %v331_v42  ;;  %v310_v45 = vadd.f32 %v309_v41, %v295_v40 }
  0xd9   :  { %v311_v47 = vrot.slane %v310_v45, 4  ;;  %v347_v48 = vadd.f32 %v346_v44, %v332_v46 }
  0xdb   :  { %v312_v49 = vadd.f32 %v311_v47, %v310_v45  ;;  %v348_v50 = vrot.slane %v347_v48, 4 }
  0xdd   :  { %v313_v52 = vrot.slane %v312_v49, 2  ;;  %v349_v53 = vadd.f32 %v348_v50, %v347_v48 }
  0xdf   :  { %v314_v54 = vadd.f32 %v313_v52, %v312_v49  ;;  %v350_v55 = vrot.slane %v349_v53, 2 }
  0xe1   :  { %v315_v56 = vrot.slane %v314_v54, 1  ;;  %v351_v58 = vadd.f32 %v350_v55, %v349_v53 }
  0xe3   :  { %v352_v61 = vrot.slane %v351_v58, 1  ;;  %v316_v62 = vadd.f32 %v315_v56, %v314_v54 }
  0xe5   :  { %v353_v63 = vadd.f32 %v352_v61, %v351_v58 }
  0xe7   :  { %v355_v0 = vsel %vm354_vm0, %v316_v62, %v353_v63 }
  0xe8   :  { %356 = vst [vmem:[%s741_s5] sm:$0x3] %v355_v0 }

// kernel: mlp_model_forward.11
= control target key start
LH: loop header
LB: loop body
LE: loop exit
PB: predicated region body
PF: predicated region fallthrough
CT: control target
= control target key end

     0   :  { %v872_v3 = vmov 0   ;;  %s1376_s0 = inlined_call_operand.vmem [shape: bf16[128,128], index: 0, kind: input, shape index: {}]   ;;  %s1377_s1 = inlined_call_operand.vmem [shape: f32[128,3], index: 1, kind: input, shape index: {}]   ;;  %s1378_s2 = inlined_call_operand.vmem [shape: f32[2,128], index: 2, kind: input, shape index: {}]   ;;  %s1379_s3 = inlined_call_operand.vmem [shape: bf16[128,120], index: 3, kind: input, shape index: {}]   ;;  %s1380_s4 = inlined_call_operand.vmem [shape: f32[1,120], index: 4, kind: input, shape index: {}]   ;;  %s1381_s5 = inlined_call_operand.vmem [shape: f32[3,120], index: 5, kind: input, shape index: {}]   ;;  %s1382_s6 = inlined_call_operand.hbm [shape: f32[128,120], index: 6, kind: output, shape index: {}]  }
   0x1   :  { %v916_v0 = vld [vmem:[%s1377_s1 + $0x20] sm:$0xff]  ;;  %v921_v1 = vld [vmem:[%s1377_s1 + $0x10] sm:$0xff]  ;;  %801 = vset.pattern.permute.xlu2 %v872_v3  ;;  %800 = vset.pattern.permute.xlu1 %v872_v3  ;;  %v729_v4 = vld [vmem:[%s1379_s3 + $0x38] sm:$0xff] }
   0x2   :  { %v926_v2 = vld [vmem:[%s1377_s1] sm:$0xff]  ;;  %799 = vset.pattern.permute.xlu0 %v872_v3  ;;  %352 = vperm.xlu2 %801, %v916_v0   ;;  %v728_v5 = vld [vmem:[%s1379_s3 + $0x30] sm:$0xff]  ;;  %v940_v6 = vld [vmem:[%s1377_s1 + $0x28] sm:$0xff] }
   0x3   :  { %342 = vperm.xlu1 %800, %v921_v1   ;;  %332 = vperm.xlu0 %799, %v926_v2   ;;  %v945_v7 = vld [vmem:[%s1377_s1 + $0x18] sm:$0xff]  ;;  %v950_v8 = vld [vmem:[%s1377_s1 + $0x8] sm:$0xff]  ;;  %v731_v10 = vld [vmem:[%s1376_s0] sm:$0xff]  }
   0x4   :  { %264 = vmatpush.bf16.msra.mxu0 %v729_v4  ;;  %769 = vmatpush.bf16.msra.mxu1 %v729_v4  ;;  %v727_v9 = vld [vmem:[%s1379_s3 + $0x28] sm:$0xff]  ;;  %v732_v11 = vunpack.c.l.bf16 %v731_v10  ;;  %v733_v12 = vunpack.c.h.bf16 %v731_v10  ;;  %v961_v13 = vld [vmem:[%s1378_s2] ss:$0 sm:$0xff]  ;;  %v966_v14 = vld [vmem:[%s1378_s2 + $0x1] ss:$0 sm:$0xff] }
   0x5   :  { %770 = vmatpush.bf16.msra.mxu2 %v729_v4  ;;  %771 = vmatpush.bf16.msra.mxu3 %v729_v4  ;;  %v763_v15 = vld [vmem:[%s1376_s0 + $0x10] sm:$0xff]   ;;  %v762_v16 = vld [vmem:[%s1376_s0 + $0x8] sm:$0xff]   ;;  %v765_v21 = vld [vmem:[%s1376_s0 + $0x20] sm:$0xff]  }
   0x6   :  { %v58_v17 = vmul.f32 %v961_v13, %v732_v11  ;;  %v59_v18 = vmul.f32 %v961_v13, %v733_v12  ;;  %v740_v19 = vunpack.c.l.bf16 %v763_v15  ;;  %v741_v20 = vunpack.c.h.bf16 %v763_v15  ;;  %v726_v25 = vld [vmem:[%s1379_s3 + $0x20] sm:$0xff] }
   0x7   :  { %v736_v22 = vunpack.c.l.bf16 %v762_v16  ;;  %v737_v23 = vunpack.c.h.bf16 %v762_v16  ;;  %v748_v24 = vunpack.c.l.bf16 %v765_v21  ;;  %v749_v29 = vunpack.c.h.bf16 %v765_v21 }
   0x8   :  { %265 = vmatpush.bf16.msra.mxu0 %v728_v5  ;;  %772 = vmatpush.bf16.msra.mxu1 %v728_v5  ;;  %v986_v26 = vadd.f32 %v966_v14, %v58_v17  ;;  %v989_v27 = vadd.f32 %v966_v14, %v59_v18  ;;  %v62_v28 = vmul.f32 %v961_v13, %v740_v19 }
   0x9   :  { %773 = vmatpush.bf16.msra.mxu2 %v728_v5  ;;  %774 = vmatpush.bf16.msra.mxu3 %v728_v5 }
   0xa   :  { %357 = vperm.xlu2 %801, %v940_v6  }
   0xb   :  { %347 = vperm.xlu1 %800, %v945_v7   ;;  %337 = vperm.xlu0 %799, %v950_v8  }
   0xc   :  { %266 = vmatpush.bf16.msra.mxu0 %v727_v9  ;;  %775 = vmatpush.bf16.msra.mxu1 %v727_v9 }
   0xd   :  { %11 = vsyncpa [#allocation3], 0  ;;  %776 = vmatpush.bf16.msra.mxu2 %v727_v9  ;;  %v63_v30 = vmul.f32 %v961_v13, %v741_v20  ;;  %777 = vmatpush.bf16.msra.mxu3 %v727_v9  ;;  %v60_v31 = vmul.f32 %v961_v13, %v736_v22  ;;  %v61_v32 = vmul.f32 %v961_v13, %v737_v23  ;;  %v108_v33 = vmin.f32 %v986_v26, 0.0  ;;  %v1000_v35 = vld [vmem:[%s1377_s1 + $0x40] sm:$0xff]  ;;  %v1005_v36 = vld [vmem:[%s1377_s1 + $0x38] sm:$0xff]  ;;  %s662_s22 = sshll.u32 %s1382_s6, 4  ;;  %s663_s22 = int_to_ptr.hbm [resolvable:$true] %s662_s22 }
   0xe   :  { %v109_v34 = vmin.f32 %v989_v27, 0.0  ;;  %v1008_v37 = vadd.f32 %v966_v14, %v62_v28  ;;  %v1019_v40 = vld [vmem:[%s1377_s1 + $0x30] sm:$0xff]  ;;  %v725_v41 = vld [vmem:[%s1379_s3 + $0x18] sm:$0xff]  ;;  %v66_v44 = vmul.f32 %v961_v13, %v748_v24  ;;  %v67_v45 = vmul.f32 %v961_v13, %v749_v29  ;;  %v1065_v11 = vld [vmem:[%s1377_s1 + $0x48] sm:$0xff]  ;;  %s876_s23 = smov 128   ;;  %s877_s24 = smov 8  }
   0xf   :  { %v1011_v38 = vadd.f32 %v966_v14, %v63_v30  ;;  %v1014_v39 = vadd.f32 %v966_v14, %v60_v31  ;;  %v124_v42 = vmul.f32 1.442695, %v108_v33  ;;  %v1029_v48 = vadd.f32 %v966_v14, %v61_v32  ;;  %v764_v49 = vld [vmem:[%s1376_s0 + $0x18] sm:$0xff]   ;;  %v724_v55 = vld [vmem:[%s1379_s3 + $0x10] sm:$0xff]  ;;  %v723_v12 = vld [vmem:[%s1379_s3 + $0x8] sm:$0xff] }
  0x10   :  { %267 = vmatpush.bf16.msra.mxu0 %v726_v25  ;;  %778 = vmatpush.bf16.msra.mxu1 %v726_v25  ;;  %v126_v43 = vmul.f32 1.442695, %v109_v34  ;;  %v112_v46 = vmin.f32 %v1008_v37, 0.0  ;;  %v1037_v51 = vadd.f32 %v966_v14, %v66_v44  ;;  %v1042_v54 = vadd.f32 %v966_v14, %v67_v45  ;;  %v1054_v63 = vld [vmem:[%s1377_s1 + $0x58] sm:$0xff]  ;;  %v1059_v3 = vld [vmem:[%s1377_s1 + $0x50] sm:$0xff]  ;;  %v766_v16 = vld [vmem:[%s1376_s0 + $0x28] sm:$0xff]  }
  0x11   :  { %779 = vmatpush.bf16.msra.mxu2 %v726_v25  ;;  %v113_v47 = vmin.f32 %v1011_v38, 0.0  ;;  %780 = vmatpush.bf16.msra.mxu3 %v726_v25  ;;  %814 = vpow2.f32 %v124_v42  ;;  %v110_v50 = vmin.f32 %v1014_v39, 0.0  ;;  %v744_v57 = vunpack.c.l.bf16 %v764_v49  ;;  %v722_v28 = vld [vmem:[%s1379_s3] sm:$0xff] }
  0x12   :  { %372 = vperm.xlu2 %801, %v1000_v35   ;;  %816 = vpow2.f32 %v126_v43  ;;  %v132_v52 = vmul.f32 1.442695, %v112_v46  ;;  %v116_v56 = vmin.f32 %v1037_v51, 0.0  ;;  %v111_v58 = vmin.f32 %v1029_v48, 0.0 }
  0x13   :  { %367 = vperm.xlu1 %800, %v1005_v36   ;;  %362 = vperm.xlu0 %799, %v1019_v40   ;;  %v134_v53 = vmul.f32 1.442695, %v113_v47  ;;  %v117_v59 = vmin.f32 %v1042_v54, 0.0  ;;  %v745_v60 = vunpack.c.h.bf16 %v764_v49  ;;  %v64_v62 = vmul.f32 %v961_v13, %v744_v57  ;;  %v1117_v49 = vld [vmem:[%s1377_s1 + $0x68] sm:$0xff] }
  0x14   :  { %268 = vmatpush.bf16.msra.mxu0 %v725_v41  ;;  %781 = vmatpush.bf16.msra.mxu1 %v725_v41  ;;  %818 = vpow2.f32 %v132_v52  ;;  %v140_v61 = vmul.f32 1.442695, %v116_v56  ;;  %v128_v4 = vmul.f32 1.442695, %v110_v50  ;;  %vm92_vm0 = vcmp.gt.f32.partialorder %v986_v26, 0.0  ;;  %v1122_v50 = vld [vmem:[%s1377_s1 + $0x60] sm:$0xff] }
  0x15   :  { %782 = vmatpush.bf16.msra.mxu2 %v725_v41  ;;  %783 = vmatpush.bf16.msra.mxu3 %v725_v41  ;;  %820 = vpow2.f32 %v134_v53  ;;  %v142_v5 = vmul.f32 1.442695, %v117_v59  ;;  %v65_v9 = vmul.f32 %v961_v13, %v745_v60  ;;  %v1072_v15 = vadd.f32 %v966_v14, %v64_v62 }
  0x16   :  { %vm93_vm1 = vcmp.gt.f32.partialorder %v989_v27, 0.0  ;;  %v130_v19 = vmul.f32 1.442695, %v111_v58  ;;  %822 = vpow2.f32 %v140_v61  ;;  %vm96_vm2 = vcmp.gt.f32.partialorder %v1008_v37, 0.0 }
  0x17   :  { %v815_v10 = vpop.eup %814  ;;  %824 = vpow2.f32 %v142_v5  ;;  %v1080_v21 = vadd.f32 %v966_v14, %v65_v9  ;;  %v114_v22 = vmin.f32 %v1072_v15, 0.0  ;;  %vm97_vm3 = vcmp.gt.f32.partialorder %v1011_v38, 0.0 }
  0x18   :  { %269 = vmatpush.bf16.msra.mxu0 %v724_v55  ;;  %784 = vmatpush.bf16.msra.mxu1 %v724_v55  ;;  %v817_v17 = vpop.eup %816  ;;  %v674_v18 = vadd.f32 -1.0, %v815_v10  ;;  %826 = vpow2.f32 %v128_v4  ;;  %v752_v24 = vunpack.c.l.bf16 %v766_v16  ;;  %v753_v41 = vunpack.c.h.bf16 %v766_v16 }
  0x19   :  { %785 = vmatpush.bf16.msra.mxu2 %v724_v55  ;;  %786 = vmatpush.bf16.msra.mxu3 %v724_v55  ;;  %v675_v20 = vadd.f32 -1.0, %v817_v17  ;;  %v115_v32 = vmin.f32 %v1080_v21, 0.0  ;;  %v136_v34 = vmul.f32 1.442695, %v114_v22  ;;  %828 = vpow2.f32 %v130_v19  ;;  %v767_v55 = vld [vmem:[%s1376_s0 + $0x30] sm:$0xff]   ;;  %v1146_v22 = vld [vmem:[%s1377_s1 + $0x78] sm:$0xff] }
  0x1a   :  { %387 = vperm.xlu2 %801, %v1054_v63   ;;  %v819_v23 = vpop.eup %818  ;;  %v172_v29 = vsel %vm92_vm0, %v986_v26, %v674_v18  ;;  %v68_v42 = vmul.f32 %v961_v13, %v752_v24  ;;  %vm100_vm4 = vcmp.gt.f32.partialorder %v1037_v51, 0.0  ;;  %v69_v46 = vmul.f32 %v961_v13, %v753_v41 }
  0x1b   :  { %382 = vperm.xlu1 %800, %v1059_v3   ;;  %377 = vperm.xlu0 %799, %v1065_v11   ;;  %v821_v25 = vpop.eup %820  ;;  %v173_v30 = vsel %vm93_vm1, %v989_v27, %v675_v20  ;;  %v678_v31 = vadd.f32 -1.0, %v819_v23  ;;  %v138_v26 = vmul.f32 1.442695, %v115_v32  ;;  %v1104_v27 = vld [vmem:[%s1377_s1 + $0x70] sm:$0xff]  ;;  %vm101_vm5 = vcmp.gt.f32.partialorder %v1042_v54, 0.0 }
  0x1c   :  { %270 = vmatpush.bf16.msra.mxu0 %v723_v12  ;;  %787 = vmatpush.bf16.msra.mxu1 %v723_v12  ;;  %v679_v33 = vadd.f32 -1.0, %v821_v25  ;;  %v823_v44 = vpop.eup %822  ;;  %v1112_v47 = vadd.f32 %v966_v14, %v68_v42  ;;  %830 = vpow2.f32 %v136_v34  ;;  %v87_v59 = vadd.f32 %v966_v14, %v69_v46 }
  0x1d   :  { %788 = vmatpush.bf16.msra.mxu2 %v723_v12  ;;  %789 = vmatpush.bf16.msra.mxu3 %v723_v12  ;;  %v176_v43 = vsel %vm96_vm2, %v1008_v37, %v678_v31  ;;  %v825_v37 = vpop.eup %824  ;;  %v682_v53 = vadd.f32 -1.0, %v823_v44  ;;  %832 = vpow2.f32 %v138_v26  ;;  %v756_v62 = vunpack.c.l.bf16 %v767_v55 }
  0x1e   :  { %v177_v45 = vsel %vm97_vm3, %v1011_v38, %v679_v33  ;;  %v188_v38 = vpack.c.bf16 %v173_v30, %v172_v29  ;;  %v827_v56 = vpop.eup %826  ;;  %v683_v57 = vadd.f32 -1.0, %v825_v37  ;;  %v118_v60 = vmin.f32 %v1112_v47, 0.0 }
  0x1f   :  { %v190_v52 = vpack.c.bf16 %v177_v45, %v176_v43  ;;  %v180_v58 = vsel %vm100_vm4, %v1037_v51, %v682_v53  ;;  %v757_v4 = vunpack.c.h.bf16 %v767_v55  ;;  %v829_v5 = vpop.eup %828  ;;  %v119_v10 = vmin.f32 %v87_v59, 0.0 }
  0x20   :  { %271 = vmatpush.bf16.msra.mxu0 %v722_v28  ;;  %790 = vmatpush.bf16.msra.mxu1 %v722_v28  ;;  %v181_v61 = vsel %vm101_vm5, %v1042_v54, %v683_v57  ;;  %v144_v12 = vmul.f32 1.442695, %v118_v60  ;;  %v70_v51 = vmul.f32 %v961_v13, %v756_v62  ;;  %v676_v23 = vadd.f32 -1.0, %v827_v56 }
  0x21   :  { %791 = vmatpush.bf16.msra.mxu2 %v722_v28  ;;  %792 = vmatpush.bf16.msra.mxu3 %v722_v28  ;;  %v192_v9 = vpack.c.bf16 %v181_v61, %v180_v58  ;;  %v71_v16 = vmul.f32 %v961_v13, %v757_v4  ;;  %v146_v17 = vmul.f32 1.442695, %v119_v10  ;;  %v873_v28 = vmov 1  }
  0x22   :  { %402 = vperm.xlu2 %801, %v1104_v27   ;;  %834 = vpow2.f32 %v144_v12  ;;  %v831_v18 = vpop.eup %830  ;;  %v88_v19 = vadd.f32 %v966_v14, %v70_v51  ;;  %vm94_vm6 = vcmp.gt.f32.partialorder %v1014_v39, 0.0  ;;  %v677_v29 = vadd.f32 -1.0, %v829_v5 }
  0x23   :  { %397 = vperm.xlu1 %800, %v1117_v49   ;;  %392 = vperm.xlu0 %799, %v1122_v50   ;;  %v1141_v54 = vadd.f32 %v966_v14, %v71_v16  ;;  %v833_v20 = vpop.eup %832  ;;  %836 = vpow2.f32 %v146_v17  ;;  %v680_v30 = vadd.f32 -1.0, %v831_v18  ;;  %vm95_vm7 = vcmp.gt.f32.partialorder %v1029_v48, 0.0 }
  0x24   :  { %272 = vmatmul.bf16.vlgmr.msra.gmra.mxu0 %v188_v38  ;;  %282 = vmatmul.bf16.vlgmr.msra.gmra.mxu1 %v190_v52  ;;  %v120_v24 = vmin.f32 %v88_v19, 0.0  ;;  %vm98_vm8 = vcmp.gt.f32.partialorder %v1072_v15, 0.0  ;;  %v681_v31 = vadd.f32 -1.0, %v833_v20  ;;  %vm99_vm9 = vcmp.gt.f32.partialorder %v1080_v21, 0.0  ;;  %v768_v38 = vld [vmem:[%s1376_s0 + $0x38] sm:$0xff]  }
  0x25   :  { %292 = vmatmul.bf16.vlgmr.msra.gmra.mxu2 %v192_v9  ;;  %v121_v25 = vmin.f32 %v1141_v54, 0.0  ;;  %vm102_vm10 = vcmp.gt.f32.partialorder %v1112_v47, 0.0  ;;  %v174_v41 = vsel %vm94_vm6, %v1014_v39, %v676_v23  ;;  %v175_v26 = vsel %vm95_vm7, %v1029_v48, %v677_v29 }
  0x26   :  { %v148_v33 = vmul.f32 1.442695, %v120_v24  ;;  %v178_v44 = vsel %vm98_vm8, %v1072_v15, %v680_v30  ;;  %vm103_vm11 = vcmp.gt.f32.partialorder %v87_v59, 0.0  ;;  %v179_v45 = vsel %vm99_vm9, %v1080_v21, %v681_v31 }
  0x27   :  { %v150_v34 = vmul.f32 1.442695, %v121_v25  ;;  %v189_v52 = vpack.c.bf16 %v175_v26, %v174_v41  ;;  %v760_v53 = vunpack.c.l.bf16 %v768_v38  ;;  %v761_v55 = vunpack.c.h.bf16 %v768_v38 }
  0x28   :  { %v835_v32 = vpop.eup %834  ;;  %838 = vpow2.f32 %v148_v33  ;;  %v191_v56 = vpack.c.bf16 %v179_v45, %v178_v44  ;;  %vm104_vm12 = vcmp.gt.f32.partialorder %v88_v19, 0.0  ;;  %vm105_vm13 = vcmp.gt.f32.partialorder %v1141_v54, 0.0 }
  0x29   :  { %v684_v42 = vadd.f32 -1.0, %v835_v32  ;;  %v837_v43 = vpop.eup %836  ;;  %840 = vpow2.f32 %v150_v34  ;;  %v72_v15 = vmul.f32 %v961_v13, %v760_v53  ;;  %v73_v57 = vmul.f32 %v961_v13, %v761_v55 }
  0x2a   :  { %803 = vset.pattern.permute.xlu2 %v873_v28  ;;  %v685_v46 = vadd.f32 -1.0, %v837_v43  ;;  %v874_v20 = vmov 2   ;;  %vm639_vm0 = vcmask 982016  }
  0x2b   :  { %802 = vset.pattern.permute.xlu1 %v873_v28  ;;  %407 = vperm.xlu0 %799, %v1146_v22   ;;  %v182_v37 = vsel %vm102_vm10, %v1112_v47, %v684_v42  ;;  %v91_v60 = vadd.f32 %v966_v14, %v73_v57 }
  0x2c   :  { %433 = vperm.xlu2 %803, %v950_v8   ;;  %429 = vperm.xlu1 %802, %v926_v2   ;;  %v183_v39 = vsel %vm103_vm11, %v87_v59, %v685_v46  ;;  %v90_v59 = vadd.f32 %v966_v14, %v72_v15 }
  0x2d   :  { %v193_v48 = vpack.c.bf16 %v183_v39, %v182_v37  ;;  %v123_v4 = vmin.f32 %v91_v60, 0.0  ;;  %vm107_vm15 = vcmp.gt.f32.partialorder %v91_v60, 0.0 }
  0x2e   :  { %v839_v21 = vpop.eup %838  ;;  %v122_v62 = vmin.f32 %v90_v59, 0.0  ;;  %vm106_vm14 = vcmp.gt.f32.partialorder %v90_v59, 0.0 }
  0x2f   :  { %v841_v47 = vpop.eup %840  ;;  %v686_v58 = vadd.f32 -1.0, %v839_v21  ;;  %v154_v12 = vmul.f32 1.442695, %v123_v4 }
  0x30   :  { %v687_v13 = vadd.f32 -1.0, %v841_v47  ;;  %v152_v10 = vmul.f32 1.442695, %v122_v62  ;;  %v1264_v62 = vld [vmem:[%s1381_s5 + $0x2] ss:$0 sm:$0xff] }
  0x31   :  { %v184_v61 = vsel %vm104_vm12, %v88_v19, %v686_v58 }
  0x32   :  { %v185_v5 = vsel %vm105_vm13, %v1141_v54, %v687_v13  ;;  %842 = vpow2.f32 %v152_v10 }
  0x33   :  { %804 = vset.pattern.permute.xlu0 %v873_v28  ;;  %v194_v9 = vpack.c.bf16 %v185_v5, %v184_v61  ;;  %844 = vpow2.f32 %v154_v12  ;;  %v1259_v61 = vld [vmem:[%s1380_s4] ss:$0 sm:$0xff]  ;;  %s875_s4 = smov [#allocation2]  }
  0x34   :  { %445 = vperm.xlu2 %803, %v916_v0   ;;  %441 = vperm.xlu1 %802, %v945_v7  }
  0x35   :  { %437 = vperm.xlu0 %804, %v921_v1   ;;  %277 = vmatmul.bf16.gmra.mxu0 %v189_v52 }
  0x36   :  { %287 = vmatmul.bf16.gmra.mxu1 %v191_v56  ;;  %297 = vmatmul.bf16.gmra.mxu2 %v193_v48 }
  0x37   :  { %302 = vmatmul.bf16.vlgmr.msra.gmra.mxu3 %v194_v9 }
  0x38   :  { %v843_v14 = vpop.eup %842 }
  0x39   :  { %v845_v51 = vpop.eup %844  ;;  %v688_v16 = vadd.f32 -1.0, %v843_v14 }
  0x3a   :  { %v689_v17 = vadd.f32 -1.0, %v845_v51 }
  0x3b   :  { %v186_v18 = vsel %vm106_vm14, %v90_v59, %v688_v16 }
  0x3c   :  { %453 = vperm.xlu2 %803, %v1019_v40   ;;  %449 = vperm.xlu1 %802, %v940_v6   ;;  %v187_v19 = vsel %vm107_vm15, %v91_v60, %v689_v17 }
  0x3d   :  { %457 = vperm.xlu0 %804, %v1005_v36   ;;  %v195_v54 = vpack.c.bf16 %v187_v19, %v186_v18 }
  0x44   :  { %465 = vperm.xlu2 %803, %v1065_v11   ;;  %461 = vperm.xlu1 %802, %v1000_v35  }
  0x45   :  { %469 = vperm.xlu0 %804, %v1059_v3  }
  0x47   :  { %307 = vmatmul.bf16.gmra.mxu3 %v195_v54 }
  0x4c   :  { %477 = vperm.xlu2 %803, %v1122_v50   ;;  %473 = vperm.xlu1 %802, %v1054_v63  }
  0x4d   :  { %481 = vperm.xlu0 %804, %v1117_v49  }
  0x54   :  { %489 = vperm.xlu2 %803, %v1146_v22   ;;  %485 = vperm.xlu1 %802, %v1104_v27  }
  0x55   :  { %805 = vset.pattern.permute.xlu0 %v874_v20 }
  0x56   :  { %527 = vperm.xlu0 %805, %v926_v2  }
  0x5c   :  { %807 = vset.pattern.permute.xlu2 %v874_v20  ;;  %806 = vset.pattern.permute.xlu1 %v874_v20  ;;  %v1186_v23 = vpop.permute.xlu2 %352 }
  0x5d   :  { %535 = vperm.xlu2 %807, %v921_v1   ;;  %531 = vperm.xlu1 %806, %v950_v8  }
  0x5e   :  { %547 = vperm.xlu0 %805, %v940_v6  }
  0x64   :  { %v1191_v24 = vpop.permute.xlu2 %357 }
  0x65   :  { %543 = vperm.xlu2 %807, %v916_v0   ;;  %539 = vperm.xlu1 %806, %v945_v7  }
  0x66   :  { %559 = vperm.xlu0 %805, %v1000_v35   ;;  %v1217_v35 = vld [vmem:[%s1381_s5] ss:$0 sm:$0xff] }
  0x6c   :  { %v1196_v25 = vpop.permute.xlu2 %372 }
  0x6d   :  { %555 = vperm.xlu2 %807, %v1005_v36   ;;  %551 = vperm.xlu1 %806, %v1019_v40   ;;  %v1222_v36 = vld [vmem:[%s1381_s5 + $0x1] ss:$0 sm:$0xff]  ;;  %s660_s5 = sshll.u32 %s875_s4, 4  ;;  %s661_s5 = int_to_ptr.vmem [resolvable:$true] %s660_s5 }
  0x6e   :  { %571 = vperm.xlu0 %805, %v1054_v63  }
  0x74   :  { %v1201_v1 = vpop.permute.xlu2 %387 }
  0x75   :  { %v343_v2 = vpop.permute.xlu1 %342  ;;  %567 = vperm.xlu2 %807, %v1059_v3   ;;  %563 = vperm.xlu1 %806, %v1065_v11   ;;  %v1205_v0 = vpop.permute.xlu0 %332 }
  0x76   :  { %583 = vperm.xlu0 %805, %v1104_v27   ;;  %v413_v5 = vmul.f32 %v1217_v35, %v343_v2  ;;  %v415_v2 = vmul.f32 %v1217_v35, %v1186_v23 }
  0x7c   :  { %v1208_v6 = vpop.permute.xlu2 %402 }
  0x7d   :  { %v1210_v7 = vpop.permute.xlu1 %347  ;;  %579 = vperm.xlu2 %807, %v1117_v49   ;;  %575 = vperm.xlu1 %806, %v1122_v50   ;;  %v338_v8 = vpop.permute.xlu0 %337 }
  0x7e   :  { %v412_v40 = vmul.f32 %v1217_v35, %v338_v8 }
  0x85   :  { %v1225_v63 = vpop.permute.xlu1 %367  ;;  %587 = vperm.xlu1 %806, %v1146_v22   ;;  %v363_v3 = vpop.permute.xlu0 %362 }
  0x86   :  { %v434_v11 = vpop.permute.xlu2 %433  ;;  %v417_v33 = vmul.f32 %v1217_v35, %v363_v3 }
  0x87   :  { %v494_v27 = vmul.f32 %v1222_v36, %v434_v11 }
  0x89   :  { %v1229_v49 = vadd.f32 %v494_v27, %v412_v40 }
  0x8d   :  { %v1231_v50 = vpop.permute.xlu1 %382  ;;  %v378_v28 = vpop.permute.xlu0 %377 }
  0x8e   :  { %v446_v29 = vpop.permute.xlu2 %445  ;;  %v420_v44 = vmul.f32 %v1217_v35, %v378_v28 }
  0x8f   :  { %v497_v54 = vmul.f32 %v1222_v36, %v446_v29 }
  0x91   :  { %v513_v11 = vadd.f32 %v497_v54, %v415_v2 }
  0x95   :  { %v1233_v30 = vpop.permute.xlu1 %397  ;;  %v393_v31 = vpop.permute.xlu0 %392 }
  0x96   :  { %v454_v32 = vpop.permute.xlu2 %453  ;;  %v423_v39 = vmul.f32 %v1217_v35, %v393_v31 }
  0x97   :  { %v499_v34 = vmul.f32 %v1222_v36, %v454_v32 }
  0x99   :  { %v1237_v41 = vadd.f32 %v499_v34, %v417_v33 }
  0x9d   :  { %v408_v22 = vpop.permute.xlu0 %407 }
  0x9e   :  { %v426_v42 = vmul.f32 %v1217_v35, %v408_v22  ;;  %v466_v43 = vpop.permute.xlu2 %465  ;;  %v430_v26 = vpop.permute.xlu1 %429  ;;  %v418_v22 = vmul.f32 %v1217_v35, %v1225_v63 }
  0x9f   :  { %v502_v45 = vmul.f32 %v1222_v36, %v466_v43  ;;  %v493_v34 = vmul.f32 %v1222_v36, %v430_v26  ;;  %v411_v43 = vmul.f32 %v1217_v35, %v1205_v0 }
  0xa1   :  { %v1242_v46 = vadd.f32 %v502_v45, %v420_v44  ;;  %v273_v37 = vpop.f32.mrf.mxu0  ;;  %v283_v56 = vpop.f32.mrf.mxu1 }
  0xa2   :  { %v284_v27 = vadd.f32 %v1259_v61, %v283_v56  ;;  %v274_v26 = vadd.f32 %v1259_v61, %v273_v37  ;;  %v416_v37 = vmul.f32 %v1217_v35, %v1191_v24 }
  0xa6   :  { %v478_v38 = vpop.permute.xlu2 %477  ;;  %v1244_v52 = vpop.permute.xlu1 %441 }
  0xa7   :  { %v505_v53 = vmul.f32 %v1222_v36, %v478_v38  ;;  %v438_v55 = vpop.permute.xlu0 %437 }
  0xa8   :  { %v495_v13 = vmul.f32 %v1222_v36, %v438_v55  ;;  %v1271_v17 = vpop.f32.mrf.mxu2  ;;  %v509_v55 = vadd.f32 %v493_v34, %v411_v43  ;;  %v414_v34 = vmul.f32 %v1217_v35, %v1210_v7 }
  0xa9   :  { %v1248_v48 = vadd.f32 %v505_v53, %v423_v39  ;;  %v275_v15 = vpop.f32.mrf.mxu0  ;;  %v1253_v60 = vpop.f32.mrf.mxu1 }
  0xaa   :  { %v511_v14 = vadd.f32 %v495_v13, %v413_v5  ;;  %v286_v2 = vadd.f32 %v1259_v61, %v1253_v60 }
  0xae   :  { %v490_v57 = vpop.permute.xlu2 %489  ;;  %v450_v21 = vpop.permute.xlu1 %449 }
  0xaf   :  { %v508_v47 = vmul.f32 %v1222_v36, %v490_v57  ;;  %v458_v58 = vpop.permute.xlu0 %457  ;;  %v498_v0 = vmul.f32 %v1222_v36, %v450_v21 }
  0xb0   :  { %v1283_v32 = vpop.f32.mrf.mxu2  ;;  %v500_v29 = vmul.f32 %v1222_v36, %v458_v58 }
  0xb1   :  { %v1251_v59 = vadd.f32 %v508_v47, %v426_v42 }
  0xb2   :  { %v278_v4 = vpop.f32.mrf.mxu0  ;;  %v516_v45 = vadd.f32 %v500_v29, %v418_v22 }
  0xb3   :  { %v279_v16 = vadd.f32 %v1259_v61, %v278_v4  ;;  %v1273_v19 = vpop.f32.mrf.mxu1 }
  0xb6   :  { %v1267_v9 = vpop.permute.xlu1 %461 }
  0xb7   :  { %v470_v10 = vpop.permute.xlu0 %469  ;;  %v536_v12 = vpop.permute.xlu2 %535  ;;  %v501_v60 = vmul.f32 %v1222_v36, %v1267_v9 }
  0xb8   :  { %v593_v51 = vmul.f32 %v1264_v62, %v536_v12  ;;  %v503_v58 = vmul.f32 %v1222_v36, %v470_v10  ;;  %v421_v12 = vmul.f32 %v1217_v35, %v1231_v50  ;;  %v514_v50 = vadd.f32 %v498_v0, %v416_v37 }
  0xb9   :  { %v298_v5 = vpop.f32.mrf.mxu2 }
  0xba   :  { %v609_v18 = vadd.f32 %v593_v51, %v511_v14  ;;  %v1298_v47 = vpop.f32.mrf.mxu3  ;;  %v276_v14 = vadd.f32 %v1259_v61, %v275_v15  ;;  %v519_v10 = vadd.f32 %v503_v58, %v421_v12  ;;  %v289_v12 = vadd.f32 %v1259_v61, %v1273_v19 }
  0xbb   :  { %v290_v23 = vpop.f32.mrf.mxu1 }
  0xbc   :  { %v625_v20 = vadd.f32 %v609_v18, %v279_v16  ;;  %v291_v53 = vadd.f32 %v1259_v61, %v290_v23 }
  0xbe   :  { %642 = vst.msk [vmem:[#allocation2 + $0x10] sm:$0xff] %vm639_vm0, %v625_v20  ;;  %v1279_v8 = vpop.permute.xlu1 %473  ;;  %v299_v20 = vadd.f32 %v1259_v61, %v298_v5  ;;  %v422_v5 = vmul.f32 %v1217_v35, %v1201_v1 }
  0xbf   :  { %v482_v40 = vpop.permute.xlu0 %481  ;;  %v544_v3 = vpop.permute.xlu2 %543 }
  0xc0   :  { %v595_v28 = vmul.f32 %v1264_v62, %v544_v3 }
  0xc2   :  { %v611_v31 = vadd.f32 %v595_v28, %v513_v11  ;;  %v496_v11 = vmul.f32 %v1222_v36, %v1244_v52  ;;  %v506_v28 = vmul.f32 %v1222_v36, %v482_v40  ;;  %v305_v22 = vpop.f32.mrf.mxu3  ;;  %v419_v52 = vmul.f32 %v1217_v35, %v1196_v25 }
  0xc3   :  { %v294_v25 = vadd.f32 %v1259_v61, %v1271_v17 }
  0xc4   :  { %v627_v33 = vadd.f32 %v611_v31, %v284_v27  ;;  %v512_v40 = vadd.f32 %v496_v11, %v414_v34 }
  0xc6   :  { %644 = vst.msk [vmem:[#allocation2 + $0x20] sm:$0xff] %vm639_vm0, %v627_v33  ;;  %v1290_v42 = vpop.permute.xlu1 %485  ;;  %v280_v33 = vpop.f32.mrf.mxu0 }
  0xc7   :  { %v556_v44 = vpop.permute.xlu2 %555  ;;  %v281_v7 = vadd.f32 %v1259_v61, %v280_v33 }
  0xc8   :  { %v598_v38 = vmul.f32 %v1264_v62, %v556_v44  ;;  %v528_v39 = vpop.permute.xlu0 %527 }
  0xc9   :  { %v591_v56 = vmul.f32 %v1264_v62, %v528_v39  ;;  %v306_v39 = vadd.f32 %v1259_v61, %v305_v22 }
  0xca   :  { %v614_v63 = vadd.f32 %v598_v38, %v516_v45  ;;  %v308_v19 = vpop.f32.mrf.mxu3 }
  0xcb   :  { %v607_v57 = vadd.f32 %v591_v56, %v509_v55 }
  0xcc   :  { %v630_v13 = vadd.f32 %v614_v63, %v291_v53  ;;  %v517_v53 = vadd.f32 %v501_v60, %v419_v52 }
  0xcd   :  { %v623_v4 = vadd.f32 %v607_v57, %v274_v26 }
  0xce   :  { %647 = vst.msk [vmem:[#allocation2 + $0x38] sm:$0xff] %vm639_vm0, %v630_v13  ;;  %v504_v13 = vmul.f32 %v1222_v36, %v1279_v8 }
  0xcf   :  { %640 = vst.msk [vmem:[#allocation2] sm:$0xff] %vm639_vm0, %v623_v4  ;;  %v568_v51 = vpop.permute.xlu2 %567  ;;  %v532_v16 = vpop.permute.xlu1 %531 }
  0xd0   :  { %v601_v18 = vmul.f32 %v1264_v62, %v568_v51  ;;  %v592_v21 = vmul.f32 %v1264_v62, %v532_v16  ;;  %v548_v54 = vpop.permute.xlu0 %547  ;;  %v300_v4 = vpop.f32.mrf.mxu2  ;;  %v520_v51 = vadd.f32 %v504_v13, %v422_v5 }
  0xd1   :  { %v596_v24 = vmul.f32 %v1264_v62, %v548_v54  ;;  %v301_v16 = vadd.f32 %v1259_v61, %v300_v4 }
  0xd2   :  { %v617_v3 = vadd.f32 %v601_v18, %v519_v10  ;;  %v608_v15 = vadd.f32 %v592_v21, %v1229_v49  ;;  %v424_v49 = vmul.f32 %v1217_v35, %v1233_v30  ;;  %v507_v21 = vmul.f32 %v1222_v36, %v1290_v42 }
  0xd3   :  { %v612_v27 = vadd.f32 %v596_v24, %v514_v50  ;;  %v296_v36 = vadd.f32 %v1259_v61, %v1283_v32  ;;  %v310_v32 = vpop.f32.mrf.mxu3 }
  0xd4   :  { %v624_v31 = vadd.f32 %v608_v15, %v276_v14  ;;  %v633_v29 = vadd.f32 %v617_v3, %v299_v20  ;;  %v522_v45 = vadd.f32 %v506_v28, %v424_v49  ;;  %v425_v20 = vmul.f32 %v1217_v35, %v1208_v6 }
  0xd5   :  { %v628_v23 = vadd.f32 %v612_v27, %v286_v2  ;;  %v309_v15 = vadd.f32 %v1259_v61, %v308_v19  ;;  %v311_v60 = vadd.f32 %v1259_v61, %v310_v32 }
  0xd6   :  { %641 = vst.msk [vmem:[#allocation2 + $0x8] sm:$0xff] %vm639_vm0, %v624_v31  ;;  %v523_v3 = vadd.f32 %v507_v21, %v425_v20  ;;  %v304_v31 = vadd.f32 %v1259_v61, %v1298_v47 }
  0xd7   :  { %645 = vst.msk [vmem:[#allocation2 + $0x28] sm:$0xff] %vm639_vm0, %v628_v23  ;;  %v580_v43 = vpop.permute.xlu2 %579  ;;  %v540_v44 = vpop.permute.xlu1 %539 }
  0xd8   :  { %650 = vst.msk [vmem:[#allocation2 + $0x50] sm:$0xff] %vm639_vm0, %v633_v29  ;;  %v604_v9 = vmul.f32 %v1264_v62, %v580_v43  ;;  %v594_v38 = vmul.f32 %v1264_v62, %v540_v44  ;;  %v560_v30 = vpop.permute.xlu0 %559 }
  0xd9   :  { %v599_v55 = vmul.f32 %v1264_v62, %v560_v30 }
  0xda   :  { %v620_v26 = vadd.f32 %v604_v9, %v522_v45  ;;  %v610_v56 = vadd.f32 %v594_v38, %v512_v40 }
  0xdb   :  { %v615_v63 = vadd.f32 %v599_v55, %v517_v53 }
  0xdc   :  { %v626_v57 = vadd.f32 %v610_v56, %v281_v7  ;;  %v636_v58 = vadd.f32 %v620_v26, %v306_v39 }
  0xdd   :  { %v631_v0 = vadd.f32 %v615_v63, %v294_v25 }
  0xde   :  { %643 = vst.msk [vmem:[#allocation2 + $0x18] sm:$0xff] %vm639_vm0, %v626_v57 }
  0xdf   :  { %648 = vst.msk [vmem:[#allocation2 + $0x40] sm:$0xff] %vm639_vm0, %v631_v0  ;;  %v552_v17 = vpop.permute.xlu1 %551 }
  0xe0   :  { %653 = vst.msk [vmem:[#allocation2 + $0x68] sm:$0xff] %vm639_vm0, %v636_v58  ;;  %v597_v37 = vmul.f32 %v1264_v62, %v552_v17  ;;  %v572_v14 = vpop.permute.xlu0 %571 }
  0xe1   :  { %v602_v8 = vmul.f32 %v1264_v62, %v572_v14 }
  0xe2   :  { %v613_v10 = vadd.f32 %v597_v37, %v1237_v41 }
  0xe3   :  { %v618_v18 = vadd.f32 %v602_v8, %v520_v51 }
  0xe4   :  { %v629_v1 = vadd.f32 %v613_v10, %v289_v12 }
  0xe5   :  { %v634_v54 = vadd.f32 %v618_v18, %v301_v16 }
  0xe6   :  { %646 = vst.msk [vmem:[#allocation2 + $0x30] sm:$0xff] %vm639_vm0, %v629_v1 }
  0xe7   :  { %651 = vst.msk [vmem:[#allocation2 + $0x58] sm:$0xff] %vm639_vm0, %v634_v54  ;;  %v564_v50 = vpop.permute.xlu1 %563 }
  0xe8   :  { %v600_v2 = vmul.f32 %v1264_v62, %v564_v50  ;;  %v584_v24 = vpop.permute.xlu0 %583 }
  0xe9   :  { %v605_v41 = vmul.f32 %v1264_v62, %v584_v24 }
  0xea   :  { %v616_v42 = vadd.f32 %v600_v2, %v1242_v46 }
  0xeb   :  { %v621_v11 = vadd.f32 %v605_v41, %v523_v3 }
  0xec   :  { %v632_v27 = vadd.f32 %v616_v42, %v296_v36 }
  0xed   :  { %v637_v28 = vadd.f32 %v621_v11, %v309_v15 }
  0xee   :  { %649 = vst.msk [vmem:[#allocation2 + $0x48] sm:$0xff] %vm639_vm0, %v632_v27 }
  0xef   :  { %654 = vst.msk [vmem:[#allocation2 + $0x70] sm:$0xff] %vm639_vm0, %v637_v28  ;;  %v576_v6 = vpop.permute.xlu1 %575 }
  0xf0   :  { %v603_v35 = vmul.f32 %v1264_v62, %v576_v6 }
  0xf2   :  { %v619_v29 = vadd.f32 %v603_v35, %v1248_v48 }
  0xf4   :  { %v635_v33 = vadd.f32 %v619_v29, %v304_v31 }
  0xf6   :  { %652 = vst.msk [vmem:[#allocation2 + $0x60] sm:$0xff] %vm639_vm0, %v635_v33 }
  0xf7   :  { %v588_v46 = vpop.permute.xlu1 %587 }
  0xf8   :  { %v606_v34 = vmul.f32 %v1264_v62, %v588_v46 }
  0xfa   :  { %v622_v23 = vadd.f32 %v606_v34, %v1251_v59 }
  0xfc   :  { %v638_v48 = vadd.f32 %v622_v23, %v311_v60 }
  0xfe   :  { %655 = vst.msk [vmem:[#allocation2 + $0x78] sm:$0xff] %vm639_vm0, %v638_v48 }
  0xff   :  { %668 = dma.vmem_to_hbm [thread:$0]  %s661_s5, 2048, %s663_s22, [#allocation3], %s876_s23, %s876_s23, %s877_s24  }
 0x100   :  { %870 = dma.done.wait [#allocation3], 2048  }
 0x101   :  { %871 = vsyncadd [#allocation3], 4294965248 }
 0x102   :  { %673 = vsyncpa [#allocation3], 1 }

</bundles_post_ra>
